<compile_context>
chip_gen: v7x
topology: tpu7x:2x2x1
jax: 0.10.0
libtpu: 0.0.40
codegen_flags: <defaults>
</compile_context>

<pallas_src>
import functools
import math

import jax
import jax.numpy as jnp
from jax.experimental import pallas as pl
from jax.experimental.pallas import tpu as pltpu

KERNEL_SIZE = 3   # Gaussian mixture components per GMMConv
ATTR_DIM = 2      # pseudo-coordinate (edge_attr) dimension
EPS = 1e-15
LANE = 128        # channel dims padded to 128 -> lane-dense stores, aligned slabs


def _tpu_generation():
    try:
        kind = jax.devices()[0].device_kind.lower()
    except Exception:
        return 0
    for g in (7, 6, 5, 4):
        if f"v{g}" in kind:
            return g
    return 0


_GEN = _tpu_generation()
# Node tile = "parallel" grid axis of the scatter kernel and M dim of the scatter matmul.
# 256 fills the 256x256 MXU on v6e/v7x; 128 fills the 128x128 MXU on v5e.
N_TILE = 256 if _GEN >= 6 else 128
# Edge tile = M dim of the message matmul and contraction dim of the scatter matmul.
E_TILE = 256
# Per-pallas_call VMEM cap: v7x has 64 MiB/TC (vs 128 MiB on v5e/v6e); be conservative
# when the generation cannot be detected.
_VMEM_CAP = (100 << 20) if _GEN in (5, 6) else (56 << 20)


def _round_up(x, m):
    return ((x + m - 1) // m) * m


def _vmem_limit(tile_bytes, scratch_bytes=0):
    """Double-buffered tile bytes + scratch + headroom, clamped to the per-gen cap."""
    need = 2 * sum(tile_bytes) + scratch_bytes
    need = int(need * 1.3) + (2 << 20)
    return int(max(32 << 20, min(need, _VMEM_CAP)))


def _gelu(x):
    # tanh-approximate GELU (VPU/EUP only).
    # TODO(synk): PyTorch F.gelu defaults to the exact erf form -> tiny numeric drift.
    c = math.sqrt(2.0 / math.pi)
    return 0.5 * x * (1.0 + jnp.tanh(c * (x + 0.044715 * x * x * x)))


# ----------------------------- Pallas kernels -------------------------------- #

def gmm_message_kernel(w_ref, xs_ref, g_ref, msg_ref, *, K, C_pad):
    """Per-edge GMM message, computed exactly once per edge tile.

      h_e   = x_src_e @ [G_0 | ... | G_{K-1}]   (single fused bf16 MXU matmul)
      msg_e = sum_k w_ek * h_e[:, k-th 128-aligned slab]
    """
    h = jnp.dot(xs_ref[...], g_ref[...], preferred_element_type=jnp.float32)
    w = w_ref[...]                                   # (E_TILE, K) f32
    msg = w[:, 0:1] * h[:, 0:C_pad]
    for k in range(1, K):                            # static unroll, 128-aligned slabs
        msg = msg + w[:, k:k + 1] * h[:, k * C_pad:(k + 1) * C_pad]
    msg_ref[...] = msg.astype(msg_ref.dtype)


def gmm_combine_kernel(scat_ref, msg_ref, x_ref, root_ref, bias_ref, invdeg_ref,
                       *rest, apply_act, extra_act, has_skip):
    """Scatter-mean + root/bias with fused (block GELU, skip add, net-level GELU).

      out_n = [gelu]( [gelu]( (1/deg_n) * sum_{e: dst(e)=n} msg_e
                              + x_n @ W_root + b ) [+ skip_n] )
    """
    if has_skip:
        skip_ref, out_ref, acc_ref = rest
    else:
        out_ref, acc_ref = rest

    j = pl.program_id(1)

    @pl.when(j == 0)
    def _():
        acc_ref[...] = jnp.zeros_like(acc_ref)

    # 0/1 bf16 scatter matrix, f32 MXU accumulation.
    acc_ref[...] += jnp.dot(scat_ref[...], msg_ref[...],
                            preferred_element_type=jnp.float32)

    @pl.when(j == pl.num_programs(1) - 1)
    def _():
        out = acc_ref[...] * invdeg_ref[...]          # mean over incoming edges
        out = out + jnp.dot(x_ref[...], root_ref[...],
                            preferred_element_type=jnp.float32)
        out = out + bias_ref[...]
        if apply_act:                                 # GMMResBlock's own activation
            out = _gelu(out)
        if has_skip:                                  # U-Net skip connection
            out = out + skip_ref[...].astype(jnp.float32)
        if extra_act:                                 # net-level activation
            out = _gelu(out)
        out_ref[...] = out.astype(out_ref.dtype)


# ------------------------------ layer wrapper -------------------------------- #

def gmm_conv(x, graph, p, *, apply_act, extra_act=False, skip=None,
             out_dtype=jnp.bfloat16):
    """One GMMConv (MoNet) layer with fused activations / skip-add.

    x: (N_pad, Cin_pad) node features (zeros in padded rows / lanes, bf16 or f32).
    """
    N_pad, Cin_pad = x.shape
    E_pad = graph["scat"].shape[1]
    K = p["mu"].shape[0]
    C_pad = p["root"].shape[1]

    # Per-edge Gaussian mixture weights (E_pad, K): trivial XLA glue, kept in f32.
    d = graph["edge_attr"][:, None, :] - p["mu"][None, :, :]
    w = jnp.exp(jnp.sum(-0.5 * d * d / (EPS + p["sigma"][None, :, :] ** 2), axis=-1))

    x_bf = x.astype(jnp.bfloat16)
    # TODO(synk): for large graphs move this gather in-kernel (x resident via
    # memory_space=pl.ANY + scalar-prefetched src indices) to avoid a (E, Cin)
    # HBM round trip per layer.
    x_src = jnp.take(x_bf, graph["src"], axis=0)

    # ----- kernel 1: per-edge messages, O(E) work with no node-tile redundancy -----
    msg_vmem = _vmem_limit([
        E_TILE * K * 4,                # mixture weights (f32)
        E_TILE * Cin_pad * 2,          # gathered x_src (bf16)
        Cin_pad * K * C_pad * 2,       # fused G (bf16, resident)
        E_TILE * C_pad * 2,            # msg out (bf16)
    ])
    # TODO(synk): add an output-channel grid axis over K*C_pad when the resident
    # fused-G slab no longer fits the per-generation VMEM cap (wide layers on v7x).
    msg = pl.pallas_call(
        functools.partial(gmm_message_kernel, K=K, C_pad=C_pad),
        out_shape=jax.ShapeDtypeStruct((E_pad, C_pad), jnp.bfloat16),
        grid_spec=pltpu.PrefetchScalarGridSpec(
            num_scalar_prefetch=0,
            grid=(E_pad // E_TILE,),
            in_specs=[
                pl.BlockSpec((E_TILE, K), lambda e: (e, 0)),           # mixture weights
                pl.BlockSpec((E_TILE, Cin_pad), lambda e: (e, 0)),     # gathered x_src
                pl.BlockSpec((Cin_pad, K * C_pad), lambda e: (0, 0)),  # fused G
            ],
            out_specs=pl.BlockSpec((E_TILE, C_pad), lambda e: (e, 0)),
        ),
        compiler_params=pltpu.CompilerParams(
            dimension_semantics=("parallel",),
            vmem_limit_bytes=msg_vmem,
        ),
    )(w, x_src, p["g"])

    # ----- kernel 2: scatter-mean + root + bias + fused activations / skip --------
    has_skip = skip is not None
    out_itemsize = 4 if out_dtype == jnp.float32 else 2
    comb_tiles = [
        N_TILE * E_TILE * 2,           # scat (bf16)
        E_TILE * C_pad * 2,            # msg (bf16)
        N_TILE * Cin_pad * 2,          # x (bf16)
        Cin_pad * C_pad * 2,           # root (bf16)
        C_pad * 4,                     # bias (f32)
        N_TILE * 4,                    # 1/deg (f32)
        N_TILE * C_pad * out_itemsize, # out
    ]
    if has_skip:
        comb_tiles.append(N_TILE * C_pad * 2)
    comb_vmem = _vmem_limit(comb_tiles, scratch_bytes=N_TILE * C_pad * 4)

    in_specs = [
        pl.BlockSpec((N_TILE, E_TILE), lambda i, j: (i, j)),      # 0/1 scatter (bf16)
        pl.BlockSpec((E_TILE, C_pad), lambda i, j: (j, 0)),       # messages (bf16)
        pl.BlockSpec((N_TILE, Cin_pad), lambda i, j: (i, 0)),     # node features (bf16)
        pl.BlockSpec((Cin_pad, C_pad), lambda i, j: (0, 0)),      # root weight (bf16)
        pl.BlockSpec((1, C_pad), lambda i, j: (0, 0)),            # bias (f32)
        pl.BlockSpec((N_TILE, 1), lambda i, j: (i, 0)),           # 1/deg (f32)
    ]
    args = [graph["scat"], msg, x_bf, p["root"], p["bias"], graph["inv_deg"]]
    if has_skip:
        in_specs.append(pl.BlockSpec((N_TILE, C_pad), lambda i, j: (i, 0)))
        args.append(skip.astype(jnp.bfloat16))

    kernel = functools.partial(gmm_combine_kernel, apply_act=apply_act,
                               extra_act=extra_act, has_skip=has_skip)
    # TODO(synk): replace the dense (N, E) scatter matmul with a sorted-edge
    # segment-sum (scalar-prefetched per-node-tile edge offsets) for large graphs;
    # the dense form costs O(N*E*C) MXU MACs and N*E bytes of HBM per layer.
    return pl.pallas_call(
        kernel,
        out_shape=jax.ShapeDtypeStruct((N_pad, C_pad), out_dtype),
        grid_spec=pltpu.PrefetchScalarGridSpec(
            num_scalar_prefetch=0,
            grid=(N_pad // N_TILE, E_pad // E_TILE),
            in_specs=in_specs,
            out_specs=pl.BlockSpec((N_TILE, C_pad), lambda i, j: (i, 0)),
            scratch_shapes=[pltpu.VMEM((N_TILE, C_pad), jnp.float32)],
        ),
        compiler_params=pltpu.CompilerParams(
            # NOTE(v7x): keep >= 2 node tiles on real graphs so the "parallel" axis
            # can shard across the two TensorCores.
            dimension_semantics=("parallel", "arbitrary"),
            vmem_limit_bytes=comb_vmem,
        ),
    )(*args)


# ------------------------- graph-constant preprocessing ---------------------- #

def build_graph(edge_index, edge_attr, num_nodes):
    """Built ONCE per forward pass and reused by every conv layer (edge_index is constant)."""
    E, D = edge_attr.shape
    N_pad = _round_up(num_nodes, N_TILE)
    E_pad = _round_up(E, E_TILE)
    src = jnp.zeros((E_pad,), jnp.int32).at[:E].set(edge_index[0])
    dst = edge_index[1]
    # Pure 0/1 scatter matrix (padded edge columns / node rows stay zero); bf16 is
    # exact for {0,1}.  Padded edges scatter nowhere and padded node rows accumulate
    # nothing, so padding never leaks into real rows (padded rows only end up as
    # gelu(bias) and are sliced off at the end of the forward pass).
    # TODO(synk): fp8(e4m3) scat on v7x, or a sorted-edge segment-sum, for big graphs.
    onehot = (dst[None, :] == jnp.arange(N_pad, dtype=dst.dtype)[:, None]).astype(jnp.float32)
    scat = jnp.zeros((N_pad, E_pad), jnp.float32).at[:, :E].set(onehot)
    deg = jnp.maximum(jnp.sum(scat, axis=1, keepdims=True), 1.0)
    ea = jnp.zeros((E_pad, D), jnp.float32).at[:E].set(edge_attr)
    return {
        "src": src,
        "scat": scat.astype(jnp.bfloat16),
        "inv_deg": (1.0 / deg).astype(jnp.float32),   # (N_pad, 1) f32, applied post-matmul
        "edge_attr": ea,
    }


# --------------------------- parameter construction ------------------------- #

def init_gmm_conv(key, cin, cout, dim=ATTR_DIM, K=KERNEL_SIZE):
    cin_p, cout_p = _round_up(cin, LANE), _round_up(cout, LANE)
    k1, k2, k3, k4 = jax.random.split(key, 4)
    g = (1.0 / math.sqrt(cin * K)) * jax.random.normal(k1, (cin, K, cout), jnp.float32)
    g_pad = jnp.zeros((cin_p, K, cout_p), jnp.float32).at[:cin, :, :cout].set(g)
    root = (1.0 / math.sqrt(cin)) * jax.random.normal(k4, (cin, cout), jnp.float32)
    root_pad = jnp.zeros((cin_p, cout_p), jnp.float32).at[:cin, :cout].set(root)
    return {
        # fused weight (Cin_p, K*Cout_p): component k occupies lanes [k*Cout_p, (k+1)*Cout_p)
        "g": g_pad.reshape(cin_p, K * cout_p).astype(jnp.bfloat16),
        "mu": jax.random.normal(k2, (K, dim), jnp.float32),
        "sigma": 1.0 + 0.1 * jax.random.normal(k3, (K, dim), jnp.float32),
        "root": root_pad.astype(jnp.bfloat16),
        "bias": jnp.zeros((1, cout_p), jnp.float32),
    }


def init_resblock(key, cin, cout, basic_block):
    k1, k2 = jax.random.split(key)
    p = {"conv": init_gmm_conv(k1, cin, cout)}
    if basic_block:
        p["conv1"] = init_gmm_conv(k2, cout, cout)
    return p


def init_gmmnet_u(key, in_dim, out_dim, width, depth):
    layer_dims = []
    c = in_dim
    for i in range(depth):                         # encoders (basic_block=True)
        layer_dims.append((c, (2 ** i) * width, True))
        c = (2 ** i) * width
    layer_dims.append((c, 2 * c, True))            # bottleneck (basic_block=True)
    c = 2 * c
    for i in range(depth, 0, -1):                  # decoders (basic_block=False)
        layer_dims.append((c, (2 ** (i - 1)) * width, False))
        c = (2 ** (i - 1)) * width
    layer_dims.append((c, out_dim, False))         # head conv1 (basic_block=False)
    keys = jax.random.split(key, len(layer_dims))
    layers = [init_resblock(k, ci, co, bb) for k, (ci, co, bb) in zip(keys, layer_dims)]
    return {"layers": layers, "half_layers": depth + 1, "all_layers": len(layer_dims),
            "out_dim": out_dim}


# -------------------------------- forward ----------------------------------- #

def gmmnet_u_forward(params, x, edge_index, edge_attr):
    # Activation placement (matches PyTorch GMMResBlock/GMMNet_U, residual=False,
    # dropout=0.0 -> identity):
    #   basic block : conv -> act -> conv1 -> act, then the net-level act (fused into
    #                 the conv1 kernel via extra_act=True -> back-to-back GELU).
    #   decoder     : act(conv(x)), += skip, net-level act (all fused in one kernel).
    #   head        : act(conv(x)) from the block itself, no net-level act after it.
    # TODO(synk): fuse conv + conv1 of a basic block into one pallas_call keeping the
    # intermediate activation resident in VMEM (requires in-kernel x_src gather).
    N, cin = x.shape
    graph = build_graph(edge_index, edge_attr, N)   # hoisted: shared by all conv layers
    N_pad = _round_up(N, N_TILE)
    cin_pad = _round_up(cin, LANE)
    x = jnp.zeros((N_pad, cin_pad), jnp.bfloat16).at[:N, :cin].set(x.astype(jnp.bfloat16))

    half, allL, layers = params["half_layers"], params["all_layers"], params["layers"]
    h = []
    for i in range(half - 1):                       # encoder path, store bf16 skips
        x = gmm_conv(x, graph, layers[i]["conv"], apply_act=True)
        x = gmm_conv(x, graph, layers[i]["conv1"], apply_act=True, extra_act=True)
        h.append(x)
    x = gmm_conv(x, graph, layers[half - 1]["conv"], apply_act=True)          # bottleneck
    x = gmm_conv(x, graph, layers[half - 1]["conv1"], apply_act=True, extra_act=True)
    for i in range(half, allL - 1):                 # decoder path, fused skip-add + act
        x = gmm_conv(x, graph, layers[i]["conv"], apply_act=True, extra_act=True,
                     skip=h[allL - 2 - i])
    x = gmm_conv(x, graph, layers[-1]["conv"], apply_act=True,                # head
                 out_dtype=jnp.float32)
    return x[:N, :params["out_dim"]]


# --------------------------------- main -------------------------------------- #

if __name__ == "__main__":
    key = jax.random.PRNGKey(0)
    kx, ke, ka, kp = jax.random.split(key, 4)

    N, E = 16, 200                     # nodes, edges
    IN_DIM, OUT_DIM, WIDTH, DEPTH = 4, 3, 8, 2

    x = jax.random.normal(kx, (N, IN_DIM), jnp.float32)
    edge_index = jax.random.randint(ke, (2, E), 0, N, dtype=jnp.int32)
    edge_attr = jax.random.uniform(ka, (E, ATTR_DIM), dtype=jnp.float32)

    params = init_gmmnet_u(kp, IN_DIM, OUT_DIM, WIDTH, DEPTH)

    fwd = jax.jit(functools.partial(gmmnet_u_forward, params))
    out = fwd(x, edge_index, edge_attr)
    jax.block_until_ready(out)
    assert out.shape == (N, OUT_DIM) and out.dtype == jnp.float32
    print("KERNEL_OK")
</pallas_src>

<mosaic_0001>
module attributes {stable_mosaic.version = 11 : i64} {
  func.func @gmm_combine_kernel(%arg0: i32, %arg1: i32, %arg2: memref<128x256xbf16, #tpu.memory_space<vmem>>, %arg3: memref<256x128xbf16, #tpu.memory_space<vmem>>, %arg4: memref<128x128xbf16, #tpu.memory_space<vmem>>, %arg5: memref<128x128xbf16, #tpu.memory_space<vmem>>, %arg6: memref<1x128xf32, #tpu.memory_space<vmem>>, %arg7: memref<128x1xf32, #tpu.memory_space<vmem>>, %arg8: memref<128x128xbf16, #tpu.memory_space<vmem>>, %arg9: memref<128x128xf32, #tpu.memory_space<vmem>>) attributes {dimension_semantics = [#tpu.dimension_semantics<parallel>, #tpu.dimension_semantics<arbitrary>], iteration_bounds = array<i64: 1, 1>, scalar_prefetch = 0 : i64, scratch_operands = 1 : i64, tpu.core_type = #tpu.core_type<tc>, window_params = [{transform_indices = @transform_0, window_bounds = array<i64: 128, 256>}, {transform_indices = @transform_1, window_bounds = array<i64: 256, 128>}, {transform_indices = @transform_2, window_bounds = array<i64: 128, 128>}, {pipeline_mode = #tpu.pipeline_mode<synchronous>, transform_indices = @transform_3, window_bounds = array<i64: 128, 128>}, {pipeline_mode = #tpu.pipeline_mode<synchronous>, transform_indices = @transform_4, window_bounds = array<i64: 1, 128>}, {transform_indices = @transform_5, window_bounds = array<i64: 128, 1>}, {transform_indices = @transform_6, window_bounds = array<i64: 128, 128>}]} {
    %c0_i32 = arith.constant 0 : i32
    %0 = arith.cmpi eq, %arg1, %c0_i32 : i32
    %1 = arith.extui %0 : i1 to i32
    %c0_i32_0 = arith.constant 0 : i32
    %2 = arith.cmpi ne, %1, %c0_i32_0 : i32
    scf.if %2 {
      %cst_10 = arith.constant 0.000000e+00 : f32
      %12 = vector.broadcast %cst_10 : f32 to vector<128x128xf32>
      %c0_11 = arith.constant 0 : index
      %c0_12 = arith.constant 0 : index
      %13 = vector.load %arg9[%c0_11, %c0_12] : memref<128x128xf32, #tpu.memory_space<vmem>>, vector<128x128xf32>
      tpu.vector_store %arg9[%c0_11, %c0_12], %12 {strides = array<i32>} : memref<128x128xf32, #tpu.memory_space<vmem>>, vector<128x128xf32>,
    } else {
    }
    %c0 = arith.constant 0 : index
    %c0_1 = arith.constant 0 : index
    %3 = vector.load %arg9[%c0, %c0_1] : memref<128x128xf32, #tpu.memory_space<vmem>>, vector<128x128xf32>
    %c0_2 = arith.constant 0 : index
    %c0_3 = arith.constant 0 : index
    %4 = vector.load %arg2[%c0_2, %c0_3] : memref<128x256xbf16, #tpu.memory_space<vmem>>, vector<128x256xbf16>
    %c0_4 = arith.constant 0 : index
    %c0_5 = arith.constant 0 : index
    %5 = vector.load %arg3[%c0_4, %c0_5] : memref<256x128xbf16, #tpu.memory_space<vmem>>, vector<256x128xbf16>
    %cst = arith.constant dense<0.000000e+00> : vector<128x128xf32>
    %6 = tpu.matmul %4, %5, %cst {dimension_numbers = #tpu.dot_dimension_numbers<[1], [0], [0], [1], [0, 0, 1, 1], [], []>} : vector<128x256xbf16>, vector<256x128xbf16>, vector<128x128xf32> -> vector<128x128xf32>
    %7 = arith.addf %3, %6 : vector<128x128xf32>
    %c0_6 = arith.constant 0 : index
    %c0_7 = arith.constant 0 : index
    %8 = vector.load %arg9[%c0_6, %c0_7] : memref<128x128xf32, #tpu.memory_space<vmem>>, vector<128x128xf32>
    tpu.vector_store %arg9[%c0_6, %c0_7], %7 {strides = array<i32>} : memref<128x128xf32, #tpu.memory_space<vmem>>, vector<128x128xf32>,
    %c0_i32_8 = arith.constant 0 : i32
    %9 = arith.cmpi eq, %arg1, %c0_i32_8 : i32
    %10 = arith.extui %9 : i1 to i32
    %c0_i32_9 = arith.constant 0 : i32
    %11 = arith.cmpi ne, %10, %c0_i32_9 : i32
    scf.if %11 {
      %c0_10 = arith.constant 0 : index
      %c0_11 = arith.constant 0 : index
      %12 = vector.load %arg9[%c0_10, %c0_11] : memref<128x128xf32, #tpu.memory_space<vmem>>, vector<128x128xf32>
      %c0_12 = arith.constant 0 : index
      %c0_13 = arith.constant 0 : index
      %13 = vector.load %arg7[%c0_12, %c0_13] : memref<128x1xf32, #tpu.memory_space<vmem>>, vector<128x1xf32>
      %14 = vector.broadcast %13 : vector<128x1xf32> to vector<128x128xf32>
      %15 = arith.mulf %12, %14 : vector<128x128xf32>
      %c0_14 = arith.constant 0 : index
      %c0_15 = arith.constant 0 : index
      %16 = vector.load %arg4[%c0_14, %c0_15] : memref<128x128xbf16, #tpu.memory_space<vmem>>, vector<128x128xbf16>
      %c0_16 = arith.constant 0 : index
      %c0_17 = arith.constant 0 : index
      %17 = vector.load %arg5[%c0_16, %c0_17] : memref<128x128xbf16, #tpu.memory_space<vmem>>, vector<128x128xbf16>
      %cst_18 = arith.constant dense<0.000000e+00> : vector<128x128xf32>
      %18 = tpu.matmul %16, %17, %cst_18 {dimension_numbers = #tpu.dot_dimension_numbers<[1], [0], [0], [1], [0, 0, 1, 1], [], []>} : vector<128x128xbf16>, vector<128x128xbf16>, vector<128x128xf32> -> vector<128x128xf32>
      %19 = arith.addf %15, %18 : vector<128x128xf32>
      %c0_19 = arith.constant 0 : index
      %c0_20 = arith.constant 0 : index
      %20 = vector.load %arg6[%c0_19, %c0_20] : memref<1x128xf32, #tpu.memory_space<vmem>>, vector<1x128xf32>
      %21 = vector.broadcast %20 : vector<1x128xf32> to vector<128x128xf32>
      %22 = arith.addf %19, %21 : vector<128x128xf32>
      %cst_21 = arith.constant 5.000000e-01 : f32
      %23 = vector.broadcast %cst_21 : f32 to vector<128x128xf32>
      %24 = arith.mulf %23, %22 : vector<128x128xf32>
      %cst_22 = arith.constant 4.471500e-02 : f32
      %25 = vector.broadcast %cst_22 : f32 to vector<128x128xf32>
      %26 = arith.mulf %25, %22 : vector<128x128xf32>
      %27 = arith.mulf %26, %22 : vector<128x128xf32>
      %28 = arith.mulf %27, %22 : vector<128x128xf32>
      %29 = arith.addf %22, %28 : vector<128x128xf32>
      %cst_23 = arith.constant 0.797884583 : f32
      %30 = vector.broadcast %cst_23 : f32 to vector<128x128xf32>
      %31 = arith.mulf %30, %29 : vector<128x128xf32>
      %32 = math.tanh %31 : vector<128x128xf32>
      %cst_24 = arith.constant 1.000000e+00 : f32
      %33 = vector.broadcast %cst_24 : f32 to vector<128x128xf32>
      %34 = arith.addf %33, %32 : vector<128x128xf32>
      %35 = arith.mulf %24, %34 : vector<128x128xf32>
      %36 = arith.truncf %35 : vector<128x128xf32> to vector<128x128xbf16>
      %c0_25 = arith.constant 0 : index
      %c0_26 = arith.constant 0 : index
      %37 = vector.load %arg8[%c0_25, %c0_26] : memref<128x128xbf16, #tpu.memory_space<vmem>>, vector<128x128xbf16>
      tpu.vector_store %arg8[%c0_25, %c0_26], %36 {strides = array<i32>} : memref<128x128xbf16, #tpu.memory_space<vmem>>, vector<128x128xbf16>,
    } else {
    }
    return
  }
  func.func @transform_0(%arg0: i32, %arg1: i32) -> (i32, i32) {
    %c0_i32 = arith.constant 0 : i32
    return %arg0, %arg1 : i32, i32
  }
  func.func @transform_1(%arg0: i32, %arg1: i32) -> (i32, i32) {
    %c0_i32 = arith.constant 0 : i32
    %c0_i32_0 = arith.constant 0 : i32
    return %arg1, %c0_i32 : i32, i32
  }
  func.func @transform_2(%arg0: i32, %arg1: i32) -> (i32, i32) {
    %c0_i32 = arith.constant 0 : i32
    %c0_i32_0 = arith.constant 0 : i32
    return %arg0, %c0_i32 : i32, i32
  }
  func.func @transform_3(%arg0: i32, %arg1: i32) -> (i32, i32) {
    %c0_i32 = arith.constant 0 : i32
    %c0_i32_0 = arith.constant 0 : i32
    %c0_i32_1 = arith.constant 0 : i32
    return %c0_i32, %c0_i32_0 : i32, i32
  }
  func.func @transform_4(%arg0: i32, %arg1: i32) -> (i32, i32) {
    %c0_i32 = arith.constant 0 : i32
    %c0_i32_0 = arith.constant 0 : i32
    %c0_i32_1 = arith.constant 0 : i32
    return %c0_i32, %c0_i32_0 : i32, i32
  }
  func.func @transform_5(%arg0: i32, %arg1: i32) -> (i32, i32) {
    %c0_i32 = arith.constant 0 : i32
    %c0_i32_0 = arith.constant 0 : i32
    return %arg0, %c0_i32 : i32, i32
  }
  func.func @transform_6(%arg0: i32, %arg1: i32) -> (i32, i32) {
    %c0_i32 = arith.constant 0 : i32
    %c0_i32_0 = arith.constant 0 : i32
    return %arg0, %c0_i32 : i32, i32
  }
}

module attributes {stable_mosaic.version = 11 : i64} {
  func.func @gmm_message_kernel(%arg0: i32, %arg1: memref<256x3xf32, #tpu.memory_space<vmem>>, %arg2: memref<256x128xbf16, #tpu.memory_space<vmem>>, %arg3: memref<128x384xbf16, #tpu.memory_space<vmem>>, %arg4: memref<256x128xbf16, #tpu.memory_space<vmem>>) attributes {dimension_semantics = [#tpu.dimension_semantics<parallel>], iteration_bounds = array<i64: 1>, scalar_prefetch = 0 : i64, scratch_operands = 0 : i64, tpu.core_type = #tpu.core_type<tc>, window_params = [{transform_indices = @transform_0, window_bounds = array<i64: 256, 3>}, {transform_indices = @transform_1, window_bounds = array<i64: 256, 128>}, {pipeline_mode = #tpu.pipeline_mode<synchronous>, transform_indices = @transform_2, window_bounds = array<i64: 128, 384>}, {transform_indices = @transform_3, window_bounds = array<i64: 256, 128>}]} {
    %c0 = arith.constant 0 : index
    %c0_0 = arith.constant 0 : index
    %0 = vector.load %arg2[%c0, %c0_0] : memref<256x128xbf16, #tpu.memory_space<vmem>>, vector<256x128xbf16>
    %c0_1 = arith.constant 0 : index
    %c0_2 = arith.constant 0 : index
    %1 = vector.load %arg3[%c0_1, %c0_2] : memref<128x384xbf16, #tpu.memory_space<vmem>>, vector<128x384xbf16>
    %cst = arith.constant dense<0.000000e+00> : vector<256x384xf32>
    %2 = tpu.matmul %0, %1, %cst {dimension_numbers = #tpu.dot_dimension_numbers<[1], [0], [0], [1], [0, 0, 1, 1], [], []>} : vector<256x128xbf16>, vector<128x384xbf16>, vector<256x384xf32> -> vector<256x384xf32>
    %c0_3 = arith.constant 0 : index
    %c0_4 = arith.constant 0 : index
    %3 = vector.load %arg1[%c0_3, %c0_4] : memref<256x3xf32, #tpu.memory_space<vmem>>, vector<256x3xf32>
    %4 = vector.extract_strided_slice %3 {offsets = [0, 0], sizes = [256, 1], strides = [1, 1]} : vector<256x3xf32> to vector<256x1xf32>
    %5 = vector.extract_strided_slice %2 {offsets = [0, 0], sizes = [256, 128], strides = [1, 1]} : vector<256x384xf32> to vector<256x128xf32>
    %6 = vector.broadcast %4 : vector<256x1xf32> to vector<256x128xf32>
    %7 = arith.mulf %6, %5 : vector<256x128xf32>
    %8 = vector.extract_strided_slice %3 {offsets = [0, 1], sizes = [256, 1], strides = [1, 1]} : vector<256x3xf32> to vector<256x1xf32>
    %9 = vector.extract_strided_slice %2 {offsets = [0, 128], sizes = [256, 128], strides = [1, 1]} : vector<256x384xf32> to vector<256x128xf32>
    %10 = vector.broadcast %8 : vector<256x1xf32> to vector<256x128xf32>
    %11 = arith.mulf %10, %9 : vector<256x128xf32>
    %12 = arith.addf %7, %11 : vector<256x128xf32>
    %13 = vector.extract_strided_slice %3 {offsets = [0, 2], sizes = [256, 1], strides = [1, 1]} : vector<256x3xf32> to vector<256x1xf32>
    %14 = vector.extract_strided_slice %2 {offsets = [0, 256], sizes = [256, 128], strides = [1, 1]} : vector<256x384xf32> to vector<256x128xf32>
    %15 = vector.broadcast %13 : vector<256x1xf32> to vector<256x128xf32>
    %16 = arith.mulf %15, %14 : vector<256x128xf32>
    %17 = arith.addf %12, %16 : vector<256x128xf32>
    %18 = arith.truncf %17 : vector<256x128xf32> to vector<256x128xbf16>
    %c0_5 = arith.constant 0 : index
    %c0_6 = arith.constant 0 : index
    %19 = vector.load %arg4[%c0_5, %c0_6] : memref<256x128xbf16, #tpu.memory_space<vmem>>, vector<256x128xbf16>
    tpu.vector_store %arg4[%c0_5, %c0_6], %18 {strides = array<i32>} : memref<256x128xbf16, #tpu.memory_space<vmem>>, vector<256x128xbf16>,
    return
  }
  func.func @transform_0(%arg0: i32) -> (i32, i32) {
    %c0_i32 = arith.constant 0 : i32
    %c0_i32_0 = arith.constant 0 : i32
    return %arg0, %c0_i32 : i32, i32
  }
  func.func @transform_1(%arg0: i32) -> (i32, i32) {
    %c0_i32 = arith.constant 0 : i32
    %c0_i32_0 = arith.constant 0 : i32
    return %arg0, %c0_i32 : i32, i32
  }
  func.func @transform_2(%arg0: i32) -> (i32, i32) {
    %c0_i32 = arith.constant 0 : i32
    %c0_i32_0 = arith.constant 0 : i32
    %c0_i32_1 = arith.constant 0 : i32
    return %c0_i32, %c0_i32_0 : i32, i32
  }
  func.func @transform_3(%arg0: i32) -> (i32, i32) {
    %c0_i32 = arith.constant 0 : i32
    %c0_i32_0 = arith.constant 0 : i32
    return %arg0, %c0_i32 : i32, i32
  }
}

module attributes {stable_mosaic.version = 11 : i64} {
  func.func @gmm_combine_kernel(%arg0: i32, %arg1: i32, %arg2: memref<128x256xbf16, #tpu.memory_space<vmem>>, %arg3: memref<256x128xbf16, #tpu.memory_space<vmem>>, %arg4: memref<128x128xbf16, #tpu.memory_space<vmem>>, %arg5: memref<128x128xbf16, #tpu.memory_space<vmem>>, %arg6: memref<1x128xf32, #tpu.memory_space<vmem>>, %arg7: memref<128x1xf32, #tpu.memory_space<vmem>>, %arg8: memref<128x128xbf16, #tpu.memory_space<vmem>>, %arg9: memref<128x128xf32, #tpu.memory_space<vmem>>) attributes {dimension_semantics = [#tpu.dimension_semantics<parallel>, #tpu.dimension_semantics<arbitrary>], iteration_bounds = array<i64: 1, 1>, scalar_prefetch = 0 : i64, scratch_operands = 1 : i64, tpu.core_type = #tpu.core_type<tc>, window_params = [{transform_indices = @transform_0, window_bounds = array<i64: 128, 256>}, {transform_indices = @transform_1, window_bounds = array<i64: 256, 128>}, {transform_indices = @transform_2, window_bounds = array<i64: 128, 128>}, {pipeline_mode = #tpu.pipeline_mode<synchronous>, transform_indices = @transform_3, window_bounds = array<i64: 128, 128>}, {pipeline_mode = #tpu.pipeline_mode<synchronous>, transform_indices = @transform_4, window_bounds = array<i64: 1, 128>}, {transform_indices = @transform_5, window_bounds = array<i64: 128, 1>}, {transform_indices = @transform_6, window_bounds = array<i64: 128, 128>}]} {
    %c0_i32 = arith.constant 0 : i32
    %0 = arith.cmpi eq, %arg1, %c0_i32 : i32
    %1 = arith.extui %0 : i1 to i32
    %c0_i32_0 = arith.constant 0 : i32
    %2 = arith.cmpi ne, %1, %c0_i32_0 : i32
    scf.if %2 {
      %cst_10 = arith.constant 0.000000e+00 : f32
      %12 = vector.broadcast %cst_10 : f32 to vector<128x128xf32>
      %c0_11 = arith.constant 0 : index
      %c0_12 = arith.constant 0 : index
      %13 = vector.load %arg9[%c0_11, %c0_12] : memref<128x128xf32, #tpu.memory_space<vmem>>, vector<128x128xf32>
      tpu.vector_store %arg9[%c0_11, %c0_12], %12 {strides = array<i32>} : memref<128x128xf32, #tpu.memory_space<vmem>>, vector<128x128xf32>,
    } else {
    }
    %c0 = arith.constant 0 : index
    %c0_1 = arith.constant 0 : index
    %3 = vector.load %arg9[%c0, %c0_1] : memref<128x128xf32, #tpu.memory_space<vmem>>, vector<128x128xf32>
    %c0_2 = arith.constant 0 : index
    %c0_3 = arith.constant 0 : index
    %4 = vector.load %arg2[%c0_2, %c0_3] : memref<128x256xbf16, #tpu.memory_space<vmem>>, vector<128x256xbf16>
    %c0_4 = arith.constant 0 : index
    %c0_5 = arith.constant 0 : index
    %5 = vector.load %arg3[%c0_4, %c0_5] : memref<256x128xbf16, #tpu.memory_space<vmem>>, vector<256x128xbf16>
    %cst = arith.constant dense<0.000000e+00> : vector<128x128xf32>
    %6 = tpu.matmul %4, %5, %cst {dimension_numbers = #tpu.dot_dimension_numbers<[1], [0], [0], [1], [0, 0, 1, 1], [], []>} : vector<128x256xbf16>, vector<256x128xbf16>, vector<128x128xf32> -> vector<128x128xf32>
    %7 = arith.addf %3, %6 : vector<128x128xf32>
    %c0_6 = arith.constant 0 : index
    %c0_7 = arith.constant 0 : index
    %8 = vector.load %arg9[%c0_6, %c0_7] : memref<128x128xf32, #tpu.memory_space<vmem>>, vector<128x128xf32>
    tpu.vector_store %arg9[%c0_6, %c0_7], %7 {strides = array<i32>} : memref<128x128xf32, #tpu.memory_space<vmem>>, vector<128x128xf32>,
    %c0_i32_8 = arith.constant 0 : i32
    %9 = arith.cmpi eq, %arg1, %c0_i32_8 : i32
    %10 = arith.extui %9 : i1 to i32
    %c0_i32_9 = arith.constant 0 : i32
    %11 = arith.cmpi ne, %10, %c0_i32_9 : i32
    scf.if %11 {
      %c0_10 = arith.constant 0 : index
      %c0_11 = arith.constant 0 : index
      %12 = vector.load %arg9[%c0_10, %c0_11] : memref<128x128xf32, #tpu.memory_space<vmem>>, vector<128x128xf32>
      %c0_12 = arith.constant 0 : index
      %c0_13 = arith.constant 0 : index
      %13 = vector.load %arg7[%c0_12, %c0_13] : memref<128x1xf32, #tpu.memory_space<vmem>>, vector<128x1xf32>
      %14 = vector.broadcast %13 : vector<128x1xf32> to vector<128x128xf32>
      %15 = arith.mulf %12, %14 : vector<128x128xf32>
      %c0_14 = arith.constant 0 : index
      %c0_15 = arith.constant 0 : index
      %16 = vector.load %arg4[%c0_14, %c0_15] : memref<128x128xbf16, #tpu.memory_space<vmem>>, vector<128x128xbf16>
      %c0_16 = arith.constant 0 : index
      %c0_17 = arith.constant 0 : index
      %17 = vector.load %arg5[%c0_16, %c0_17] : memref<128x128xbf16, #tpu.memory_space<vmem>>, vector<128x128xbf16>
      %cst_18 = arith.constant dense<0.000000e+00> : vector<128x128xf32>
      %18 = tpu.matmul %16, %17, %cst_18 {dimension_numbers = #tpu.dot_dimension_numbers<[1], [0], [0], [1], [0, 0, 1, 1], [], []>} : vector<128x128xbf16>, vector<128x128xbf16>, vector<128x128xf32> -> vector<128x128xf32>
      %19 = arith.addf %15, %18 : vector<128x128xf32>
      %c0_19 = arith.constant 0 : index
      %c0_20 = arith.constant 0 : index
      %20 = vector.load %arg6[%c0_19, %c0_20] : memref<1x128xf32, #tpu.memory_space<vmem>>, vector<1x128xf32>
      %21 = vector.broadcast %20 : vector<1x128xf32> to vector<128x128xf32>
      %22 = arith.addf %19, %21 : vector<128x128xf32>
      %cst_21 = arith.constant 5.000000e-01 : f32
      %23 = vector.broadcast %cst_21 : f32 to vector<128x128xf32>
      %24 = arith.mulf %23, %22 : vector<128x128xf32>
      %cst_22 = arith.constant 4.471500e-02 : f32
      %25 = vector.broadcast %cst_22 : f32 to vector<128x128xf32>
      %26 = arith.mulf %25, %22 : vector<128x128xf32>
      %27 = arith.mulf %26, %22 : vector<128x128xf32>
      %28 = arith.mulf %27, %22 : vector<128x128xf32>
      %29 = arith.addf %22, %28 : vector<128x128xf32>
      %cst_23 = arith.constant 0.797884583 : f32
      %30 = vector.broadcast %cst_23 : f32 to vector<128x128xf32>
      %31 = arith.mulf %30, %29 : vector<128x128xf32>
      %32 = math.tanh %31 : vector<128x128xf32>
      %cst_24 = arith.constant 1.000000e+00 : f32
      %33 = vector.broadcast %cst_24 : f32 to vector<128x128xf32>
      %34 = arith.addf %33, %32 : vector<128x128xf32>
      %35 = arith.mulf %24, %34 : vector<128x128xf32>
      %cst_25 = arith.constant 5.000000e-01 : f32
      %36 = vector.broadcast %cst_25 : f32 to vector<128x128xf32>
      %37 = arith.mulf %36, %35 : vector<128x128xf32>
      %cst_26 = arith.constant 4.471500e-02 : f32
      %38 = vector.broadcast %cst_26 : f32 to vector<128x128xf32>
      %39 = arith.mulf %38, %35 : vector<128x128xf32>
      %40 = arith.mulf %39, %35 : vector<128x128xf32>
      %41 = arith.mulf %40, %35 : vector<128x128xf32>
      %42 = arith.addf %35, %41 : vector<128x128xf32>
      %cst_27 = arith.constant 0.797884583 : f32
      %43 = vector.broadcast %cst_27 : f32 to vector<128x128xf32>
      %44 = arith.mulf %43, %42 : vector<128x128xf32>
      %45 = math.tanh %44 : vector<128x128xf32>
      %cst_28 = arith.constant 1.000000e+00 : f32
      %46 = vector.broadcast %cst_28 : f32 to vector<128x128xf32>
      %47 = arith.addf %46, %45 : vector<128x128xf32>
      %48 = arith.mulf %37, %47 : vector<128x128xf32>
      %49 = arith.truncf %48 : vector<128x128xf32> to vector<128x128xbf16>
      %c0_29 = arith.constant 0 : index
      %c0_30 = arith.constant 0 : index
      %50 = vector.load %arg8[%c0_29, %c0_30] : memref<128x128xbf16, #tpu.memory_space<vmem>>, vector<128x128xbf16>
      tpu.vector_store %arg8[%c0_29, %c0_30], %49 {strides = array<i32>} : memref<128x128xbf16, #tpu.memory_space<vmem>>, vector<128x128xbf16>,
    } else {
    }
    return
  }
  func.func @transform_0(%arg0: i32, %arg1: i32) -> (i32, i32) {
    %c0_i32 = arith.constant 0 : i32
    return %arg0, %arg1 : i32, i32
  }
  func.func @transform_1(%arg0: i32, %arg1: i32) -> (i32, i32) {
    %c0_i32 = arith.constant 0 : i32
    %c0_i32_0 = arith.constant 0 : i32
    return %arg1, %c0_i32 : i32, i32
  }
  func.func @transform_2(%arg0: i32, %arg1: i32) -> (i32, i32) {
    %c0_i32 = arith.constant 0 : i32
    %c0_i32_0 = arith.constant 0 : i32
    return %arg0, %c0_i32 : i32, i32
  }
  func.func @transform_3(%arg0: i32, %arg1: i32) -> (i32, i32) {
    %c0_i32 = arith.constant 0 : i32
    %c0_i32_0 = arith.constant 0 : i32
    %c0_i32_1 = arith.constant 0 : i32
    return %c0_i32, %c0_i32_0 : i32, i32
  }
  func.func @transform_4(%arg0: i32, %arg1: i32) -> (i32, i32) {
    %c0_i32 = arith.constant 0 : i32
    %c0_i32_0 = arith.constant 0 : i32
    %c0_i32_1 = arith.constant 0 : i32
    return %c0_i32, %c0_i32_0 : i32, i32
  }
  func.func @transform_5(%arg0: i32, %arg1: i32) -> (i32, i32) {
    %c0_i32 = arith.constant 0 : i32
    %c0_i32_0 = arith.constant 0 : i32
    return %arg0, %c0_i32 : i32, i32
  }
  func.func @transform_6(%arg0: i32, %arg1: i32) -> (i32, i32) {
    %c0_i32 = arith.constant 0 : i32
    %c0_i32_0 = arith.constant 0 : i32
    return %arg0, %c0_i32 : i32, i32
  }
}

module attributes {stable_mosaic.version = 11 : i64} {
  func.func @gmm_combine_kernel(%arg0: i32, %arg1: i32, %arg2: memref<128x256xbf16, #tpu.memory_space<vmem>>, %arg3: memref<256x128xbf16, #tpu.memory_space<vmem>>, %arg4: memref<128x128xbf16, #tpu.memory_space<vmem>>, %arg5: memref<128x128xbf16, #tpu.memory_space<vmem>>, %arg6: memref<1x128xf32, #tpu.memory_space<vmem>>, %arg7: memref<128x1xf32, #tpu.memory_space<vmem>>, %arg8: memref<128x128xbf16, #tpu.memory_space<vmem>>, %arg9: memref<128x128xbf16, #tpu.memory_space<vmem>>, %arg10: memref<128x128xf32, #tpu.memory_space<vmem>>) attributes {dimension_semantics = [#tpu.dimension_semantics<parallel>, #tpu.dimension_semantics<arbitrary>], iteration_bounds = array<i64: 1, 1>, scalar_prefetch = 0 : i64, scratch_operands = 1 : i64, tpu.core_type = #tpu.core_type<tc>, window_params = [{transform_indices = @transform_0, window_bounds = array<i64: 128, 256>}, {transform_indices = @transform_1, window_bounds = array<i64: 256, 128>}, {transform_indices = @transform_2, window_bounds = array<i64: 128, 128>}, {pipeline_mode = #tpu.pipeline_mode<synchronous>, transform_indices = @transform_3, window_bounds = array<i64: 128, 128>}, {pipeline_mode = #tpu.pipeline_mode<synchronous>, transform_indices = @transform_4, window_bounds = array<i64: 1, 128>}, {transform_indices = @transform_5, window_bounds = array<i64: 128, 1>}, {transform_indices = @transform_6, window_bounds = array<i64: 128, 128>}, {transform_indices = @transform_7, window_bounds = array<i64: 128, 128>}]} {
    %c0_i32 = arith.constant 0 : i32
    %0 = arith.cmpi eq, %arg1, %c0_i32 : i32
    %1 = arith.extui %0 : i1 to i32
    %c0_i32_0 = arith.constant 0 : i32
    %2 = arith.cmpi ne, %1, %c0_i32_0 : i32
    scf.if %2 {
      %cst_10 = arith.constant 0.000000e+00 : f32
      %12 = vector.broadcast %cst_10 : f32 to vector<128x128xf32>
      %c0_11 = arith.constant 0 : index
      %c0_12 = arith.constant 0 : index
      %13 = vector.load %arg10[%c0_11, %c0_12] : memref<128x128xf32, #tpu.memory_space<vmem>>, vector<128x128xf32>
      tpu.vector_store %arg10[%c0_11, %c0_12], %12 {strides = array<i32>} : memref<128x128xf32, #tpu.memory_space<vmem>>, vector<128x128xf32>,
    } else {
    }
    %c0 = arith.constant 0 : index
    %c0_1 = arith.constant 0 : index
    %3 = vector.load %arg10[%c0, %c0_1] : memref<128x128xf32, #tpu.memory_space<vmem>>, vector<128x128xf32>
    %c0_2 = arith.constant 0 : index
    %c0_3 = arith.constant 0 : index
    %4 = vector.load %arg2[%c0_2, %c0_3] : memref<128x256xbf16, #tpu.memory_space<vmem>>, vector<128x256xbf16>
    %c0_4 = arith.constant 0 : index
    %c0_5 = arith.constant 0 : index
    %5 = vector.load %arg3[%c0_4, %c0_5] : memref<256x128xbf16, #tpu.memory_space<vmem>>, vector<256x128xbf16>
    %cst = arith.constant dense<0.000000e+00> : vector<128x128xf32>
    %6 = tpu.matmul %4, %5, %cst {dimension_numbers = #tpu.dot_dimension_numbers<[1], [0], [0], [1], [0, 0, 1, 1], [], []>} : vector<128x256xbf16>, vector<256x128xbf16>, vector<128x128xf32> -> vector<128x128xf32>
    %7 = arith.addf %3, %6 : vector<128x128xf32>
    %c0_6 = arith.constant 0 : index
    %c0_7 = arith.constant 0 : index
    %8 = vector.load %arg10[%c0_6, %c0_7] : memref<128x128xf32, #tpu.memory_space<vmem>>, vector<128x128xf32>
    tpu.vector_store %arg10[%c0_6, %c0_7], %7 {strides = array<i32>} : memref<128x128xf32, #tpu.memory_space<vmem>>, vector<128x128xf32>,
    %c0_i32_8 = arith.constant 0 : i32
    %9 = arith.cmpi eq, %arg1, %c0_i32_8 : i32
    %10 = arith.extui %9 : i1 to i32
    %c0_i32_9 = arith.constant 0 : i32
    %11 = arith.cmpi ne, %10, %c0_i32_9 : i32
    scf.if %11 {
      %c0_10 = arith.constant 0 : index
      %c0_11 = arith.constant 0 : index
      %12 = vector.load %arg10[%c0_10, %c0_11] : memref<128x128xf32, #tpu.memory_space<vmem>>, vector<128x128xf32>
      %c0_12 = arith.constant 0 : index
      %c0_13 = arith.constant 0 : index
      %13 = vector.load %arg7[%c0_12, %c0_13] : memref<128x1xf32, #tpu.memory_space<vmem>>, vector<128x1xf32>
      %14 = vector.broadcast %13 : vector<128x1xf32> to vector<128x128xf32>
      %15 = arith.mulf %12, %14 : vector<128x128xf32>
      %c0_14 = arith.constant 0 : index
      %c0_15 = arith.constant 0 : index
      %16 = vector.load %arg4[%c0_14, %c0_15] : memref<128x128xbf16, #tpu.memory_space<vmem>>, vector<128x128xbf16>
      %c0_16 = arith.constant 0 : index
      %c0_17 = arith.constant 0 : index
      %17 = vector.load %arg5[%c0_16, %c0_17] : memref<128x128xbf16, #tpu.memory_space<vmem>>, vector<128x128xbf16>
      %cst_18 = arith.constant dense<0.000000e+00> : vector<128x128xf32>
      %18 = tpu.matmul %16, %17, %cst_18 {dimension_numbers = #tpu.dot_dimension_numbers<[1], [0], [0], [1], [0, 0, 1, 1], [], []>} : vector<128x128xbf16>, vector<128x128xbf16>, vector<128x128xf32> -> vector<128x128xf32>
      %19 = arith.addf %15, %18 : vector<128x128xf32>
      %c0_19 = arith.constant 0 : index
      %c0_20 = arith.constant 0 : index
      %20 = vector.load %arg6[%c0_19, %c0_20] : memref<1x128xf32, #tpu.memory_space<vmem>>, vector<1x128xf32>
      %21 = vector.broadcast %20 : vector<1x128xf32> to vector<128x128xf32>
      %22 = arith.addf %19, %21 : vector<128x128xf32>
      %cst_21 = arith.constant 5.000000e-01 : f32
      %23 = vector.broadcast %cst_21 : f32 to vector<128x128xf32>
      %24 = arith.mulf %23, %22 : vector<128x128xf32>
      %cst_22 = arith.constant 4.471500e-02 : f32
      %25 = vector.broadcast %cst_22 : f32 to vector<128x128xf32>
      %26 = arith.mulf %25, %22 : vector<128x128xf32>
      %27 = arith.mulf %26, %22 : vector<128x128xf32>
      %28 = arith.mulf %27, %22 : vector<128x128xf32>
      %29 = arith.addf %22, %28 : vector<128x128xf32>
      %cst_23 = arith.constant 0.797884583 : f32
      %30 = vector.broadcast %cst_23 : f32 to vector<128x128xf32>
      %31 = arith.mulf %30, %29 : vector<128x128xf32>
      %32 = math.tanh %31 : vector<128x128xf32>
      %cst_24 = arith.constant 1.000000e+00 : f32
      %33 = vector.broadcast %cst_24 : f32 to vector<128x128xf32>
      %34 = arith.addf %33, %32 : vector<128x128xf32>
      %35 = arith.mulf %24, %34 : vector<128x128xf32>
      %c0_25 = arith.constant 0 : index
      %c0_26 = arith.constant 0 : index
      %36 = vector.load %arg8[%c0_25, %c0_26] : memref<128x128xbf16, #tpu.memory_space<vmem>>, vector<128x128xbf16>
      %37 = arith.extf %36 : vector<128x128xbf16> to vector<128x128xf32>
      %38 = arith.addf %35, %37 : vector<128x128xf32>
      %cst_27 = arith.constant 5.000000e-01 : f32
      %39 = vector.broadcast %cst_27 : f32 to vector<128x128xf32>
      %40 = arith.mulf %39, %38 : vector<128x128xf32>
      %cst_28 = arith.constant 4.471500e-02 : f32
      %41 = vector.broadcast %cst_28 : f32 to vector<128x128xf32>
      %42 = arith.mulf %41, %38 : vector<128x128xf32>
      %43 = arith.mulf %42, %38 : vector<128x128xf32>
      %44 = arith.mulf %43, %38 : vector<128x128xf32>
      %45 = arith.addf %38, %44 : vector<128x128xf32>
      %cst_29 = arith.constant 0.797884583 : f32
      %46 = vector.broadcast %cst_29 : f32 to vector<128x128xf32>
      %47 = arith.mulf %46, %45 : vector<128x128xf32>
      %48 = math.tanh %47 : vector<128x128xf32>
      %cst_30 = arith.constant 1.000000e+00 : f32
      %49 = vector.broadcast %cst_30 : f32 to vector<128x128xf32>
      %50 = arith.addf %49, %48 : vector<128x128xf32>
      %51 = arith.mulf %40, %50 : vector<128x128xf32>
      %52 = arith.truncf %51 : vector<128x128xf32> to vector<128x128xbf16>
      %c0_31 = arith.constant 0 : index
      %c0_32 = arith.constant 0 : index
      %53 = vector.load %arg9[%c0_31, %c0_32] : memref<128x128xbf16, #tpu.memory_space<vmem>>, vector<128x128xbf16>
      tpu.vector_store %arg9[%c0_31, %c0_32], %52 {strides = array<i32>} : memref<128x128xbf16, #tpu.memory_space<vmem>>, vector<128x128xbf16>,
    } else {
    }
    return
  }
  func.func @transform_0(%arg0: i32, %arg1: i32) -> (i32, i32) {
    %c0_i32 = arith.constant 0 : i32
    return %arg0, %arg1 : i32, i32
  }
  func.func @transform_1(%arg0: i32, %arg1: i32) -> (i32, i32) {
    %c0_i32 = arith.constant 0 : i32
    %c0_i32_0 = arith.constant 0 : i32
    return %arg1, %c0_i32 : i32, i32
  }
  func.func @transform_2(%arg0: i32, %arg1: i32) -> (i32, i32) {
    %c0_i32 = arith.constant 0 : i32
    %c0_i32_0 = arith.constant 0 : i32
    return %arg0, %c0_i32 : i32, i32
  }
  func.func @transform_3(%arg0: i32, %arg1: i32) -> (i32, i32) {
    %c0_i32 = arith.constant 0 : i32
    %c0_i32_0 = arith.constant 0 : i32
    %c0_i32_1 = arith.constant 0 : i32
    return %c0_i32, %c0_i32_0 : i32, i32
  }
  func.func @transform_4(%arg0: i32, %arg1: i32) -> (i32, i32) {
    %c0_i32 = arith.constant 0 : i32
    %c0_i32_0 = arith.constant 0 : i32
    %c0_i32_1 = arith.constant 0 : i32
    return %c0_i32, %c0_i32_0 : i32, i32
  }
  func.func @transform_5(%arg0: i32, %arg1: i32) -> (i32, i32) {
    %c0_i32 = arith.constant 0 : i32
    %c0_i32_0 = arith.constant 0 : i32
    return %arg0, %c0_i32 : i32, i32
  }
  func.func @transform_6(%arg0: i32, %arg1: i32) -> (i32, i32) {
    %c0_i32 = arith.constant 0 : i32
    %c0_i32_0 = arith.constant 0 : i32
    return %arg0, %c0_i32 : i32, i32
  }
  func.func @transform_7(%arg0: i32, %arg1: i32) -> (i32, i32) {
    %c0_i32 = arith.constant 0 : i32
    %c0_i32_0 = arith.constant 0 : i32
    return %arg0, %c0_i32 : i32, i32
  }
}

module attributes {stable_mosaic.version = 11 : i64} {
  func.func @gmm_combine_kernel(%arg0: i32, %arg1: i32, %arg2: memref<128x256xbf16, #tpu.memory_space<vmem>>, %arg3: memref<256x128xbf16, #tpu.memory_space<vmem>>, %arg4: memref<128x128xbf16, #tpu.memory_space<vmem>>, %arg5: memref<128x128xbf16, #tpu.memory_space<vmem>>, %arg6: memref<1x128xf32, #tpu.memory_space<vmem>>, %arg7: memref<128x1xf32, #tpu.memory_space<vmem>>, %arg8: memref<128x128xf32, #tpu.memory_space<vmem>>, %arg9: memref<128x128xf32, #tpu.memory_space<vmem>>) attributes {dimension_semantics = [#tpu.dimension_semantics<parallel>, #tpu.dimension_semantics<arbitrary>], iteration_bounds = array<i64: 1, 1>, scalar_prefetch = 0 : i64, scratch_operands = 1 : i64, tpu.core_type = #tpu.core_type<tc>, window_params = [{transform_indices = @transform_0, window_bounds = array<i64: 128, 256>}, {transform_indices = @transform_1, window_bounds = array<i64: 256, 128>}, {transform_indices = @transform_2, window_bounds = array<i64: 128, 128>}, {pipeline_mode = #tpu.pipeline_mode<synchronous>, transform_indices = @transform_3, window_bounds = array<i64: 128, 128>}, {pipeline_mode = #tpu.pipeline_mode<synchronous>, transform_indices = @transform_4, window_bounds = array<i64: 1, 128>}, {transform_indices = @transform_5, window_bounds = array<i64: 128, 1>}, {transform_indices = @transform_6, window_bounds = array<i64: 128, 128>}]} {
    %c0_i32 = arith.constant 0 : i32
    %0 = arith.cmpi eq, %arg1, %c0_i32 : i32
    %1 = arith.extui %0 : i1 to i32
    %c0_i32_0 = arith.constant 0 : i32
    %2 = arith.cmpi ne, %1, %c0_i32_0 : i32
    scf.if %2 {
      %cst_10 = arith.constant 0.000000e+00 : f32
      %12 = vector.broadcast %cst_10 : f32 to vector<128x128xf32>
      %c0_11 = arith.constant 0 : index
      %c0_12 = arith.constant 0 : index
      %13 = vector.load %arg9[%c0_11, %c0_12] : memref<128x128xf32, #tpu.memory_space<vmem>>, vector<128x128xf32>
      tpu.vector_store %arg9[%c0_11, %c0_12], %12 {strides = array<i32>} : memref<128x128xf32, #tpu.memory_space<vmem>>, vector<128x128xf32>,
    } else {
    }
    %c0 = arith.constant 0 : index
    %c0_1 = arith.constant 0 : index
    %3 = vector.load %arg9[%c0, %c0_1] : memref<128x128xf32, #tpu.memory_space<vmem>>, vector<128x128xf32>
    %c0_2 = arith.constant 0 : index
    %c0_3 = arith.constant 0 : index
    %4 = vector.load %arg2[%c0_2, %c0_3] : memref<128x256xbf16, #tpu.memory_space<vmem>>, vector<128x256xbf16>
    %c0_4 = arith.constant 0 : index
    %c0_5 = arith.constant 0 : index
    %5 = vector.load %arg3[%c0_4, %c0_5] : memref<256x128xbf16, #tpu.memory_space<vmem>>, vector<256x128xbf16>
    %cst = arith.constant dense<0.000000e+00> : vector<128x128xf32>
    %6 = tpu.matmul %4, %5, %cst {dimension_numbers = #tpu.dot_dimension_numbers<[1], [0], [0], [1], [0, 0, 1, 1], [], []>} : vector<128x256xbf16>, vector<256x128xbf16>, vector<128x128xf32> -> vector<128x128xf32>
    %7 = arith.addf %3, %6 : vector<128x128xf32>
    %c0_6 = arith.constant 0 : index
    %c0_7 = arith.constant 0 : index
    %8 = vector.load %arg9[%c0_6, %c0_7] : memref<128x128xf32, #tpu.memory_space<vmem>>, vector<128x128xf32>
    tpu.vector_store %arg9[%c0_6, %c0_7], %7 {strides = array<i32>} : memref<128x128xf32, #tpu.memory_space<vmem>>, vector<128x128xf32>,
    %c0_i32_8 = arith.constant 0 : i32
    %9 = arith.cmpi eq, %arg1, %c0_i32_8 : i32
    %10 = arith.extui %9 : i1 to i32
    %c0_i32_9 = arith.constant 0 : i32
    %11 = arith.cmpi ne, %10, %c0_i32_9 : i32
    scf.if %11 {
      %c0_10 = arith.constant 0 : index
      %c0_11 = arith.constant 0 : index
      %12 = vector.load %arg9[%c0_10, %c0_11] : memref<128x128xf32, #tpu.memory_space<vmem>>, vector<128x128xf32>
      %c0_12 = arith.constant 0 : index
      %c0_13 = arith.constant 0 : index
      %13 = vector.load %arg7[%c0_12, %c0_13] : memref<128x1xf32, #tpu.memory_space<vmem>>, vector<128x1xf32>
      %14 = vector.broadcast %13 : vector<128x1xf32> to vector<128x128xf32>
      %15 = arith.mulf %12, %14 : vector<128x128xf32>
      %c0_14 = arith.constant 0 : index
      %c0_15 = arith.constant 0 : index
      %16 = vector.load %arg4[%c0_14, %c0_15] : memref<128x128xbf16, #tpu.memory_space<vmem>>, vector<128x128xbf16>
      %c0_16 = arith.constant 0 : index
      %c0_17 = arith.constant 0 : index
      %17 = vector.load %arg5[%c0_16, %c0_17] : memref<128x128xbf16, #tpu.memory_space<vmem>>, vector<128x128xbf16>
      %cst_18 = arith.constant dense<0.000000e+00> : vector<128x128xf32>
      %18 = tpu.matmul %16, %17, %cst_18 {dimension_numbers = #tpu.dot_dimension_numbers<[1], [0], [0], [1], [0, 0, 1, 1], [], []>} : vector<128x128xbf16>, vector<128x128xbf16>, vector<128x128xf32> -> vector<128x128xf32>
      %19 = arith.addf %15, %18 : vector<128x128xf32>
      %c0_19 = arith.constant 0 : index
      %c0_20 = arith.constant 0 : index
      %20 = vector.load %arg6[%c0_19, %c0_20] : memref<1x128xf32, #tpu.memory_space<vmem>>, vector<1x128xf32>
      %21 = vector.broadcast %20 : vector<1x128xf32> to vector<128x128xf32>
      %22 = arith.addf %19, %21 : vector<128x128xf32>
      %cst_21 = arith.constant 5.000000e-01 : f32
      %23 = vector.broadcast %cst_21 : f32 to vector<128x128xf32>
      %24 = arith.mulf %23, %22 : vector<128x128xf32>
      %cst_22 = arith.constant 4.471500e-02 : f32
      %25 = vector.broadcast %cst_22 : f32 to vector<128x128xf32>
      %26 = arith.mulf %25, %22 : vector<128x128xf32>
      %27 = arith.mulf %26, %22 : vector<128x128xf32>
      %28 = arith.mulf %27, %22 : vector<128x128xf32>
      %29 = arith.addf %22, %28 : vector<128x128xf32>
      %cst_23 = arith.constant 0.797884583 : f32
      %30 = vector.broadcast %cst_23 : f32 to vector<128x128xf32>
      %31 = arith.mulf %30, %29 : vector<128x128xf32>
      %32 = math.tanh %31 : vector<128x128xf32>
      %cst_24 = arith.constant 1.000000e+00 : f32
      %33 = vector.broadcast %cst_24 : f32 to vector<128x128xf32>
      %34 = arith.addf %33, %32 : vector<128x128xf32>
      %35 = arith.mulf %24, %34 : vector<128x128xf32>
      %c0_25 = arith.constant 0 : index
      %c0_26 = arith.constant 0 : index
      %36 = vector.load %arg8[%c0_25, %c0_26] : memref<128x128xf32, #tpu.memory_space<vmem>>, vector<128x128xf32>
      tpu.vector_store %arg8[%c0_25, %c0_26], %35 {strides = array<i32>} : memref<128x128xf32, #tpu.memory_space<vmem>>, vector<128x128xf32>,
    } else {
    }
    return
  }
  func.func @transform_0(%arg0: i32, %arg1: i32) -> (i32, i32) {
    %c0_i32 = arith.constant 0 : i32
    return %arg0, %arg1 : i32, i32
  }
  func.func @transform_1(%arg0: i32, %arg1: i32) -> (i32, i32) {
    %c0_i32 = arith.constant 0 : i32
    %c0_i32_0 = arith.constant 0 : i32
    return %arg1, %c0_i32 : i32, i32
  }
  func.func @transform_2(%arg0: i32, %arg1: i32) -> (i32, i32) {
    %c0_i32 = arith.constant 0 : i32
    %c0_i32_0 = arith.constant 0 : i32
    return %arg0, %c0_i32 : i32, i32
  }
  func.func @transform_3(%arg0: i32, %arg1: i32) -> (i32, i32) {
    %c0_i32 = arith.constant 0 : i32
    %c0_i32_0 = arith.constant 0 : i32
    %c0_i32_1 = arith.constant 0 : i32
    return %c0_i32, %c0_i32_0 : i32, i32
  }
  func.func @transform_4(%arg0: i32, %arg1: i32) -> (i32, i32) {
    %c0_i32 = arith.constant 0 : i32
    %c0_i32_0 = arith.constant 0 : i32
    %c0_i32_1 = arith.constant 0 : i32
    return %c0_i32, %c0_i32_0 : i32, i32
  }
  func.func @transform_5(%arg0: i32, %arg1: i32) -> (i32, i32) {
    %c0_i32 = arith.constant 0 : i32
    %c0_i32_0 = arith.constant 0 : i32
    return %arg0, %c0_i32 : i32, i32
  }
  func.func @transform_6(%arg0: i32, %arg1: i32) -> (i32, i32) {
    %c0_i32 = arith.constant 0 : i32
    %c0_i32_0 = arith.constant 0 : i32
    return %arg0, %c0_i32 : i32, i32
  }
}

</mosaic_0001>

<bundles_post_ra>
// kernel: gmmnet_u_forward.21
= control target key start
LH: loop header
LB: loop body
LE: loop exit
PB: predicated region body
PF: predicated region fallthrough
CT: control target
= control target key end

     0   :  { %v1543_v1 = vmov 0   ;;  %s2056_s1 = inlined_call_operand.vmem [shape: bf16[256,128], index: 1, kind: input, shape index: {}]   ;;  %s2057_s3 = inlined_call_operand.vmem [shape: bf16[128,128], index: 3, kind: input, shape index: {}]   ;;  %s2058_s0 = inlined_call_operand.vmem [shape: bf16[128,256], index: 0, kind: input, shape index: {}]   ;;  %s2059_s2 = inlined_call_operand.vmem [shape: bf16[128,128], index: 2, kind: input, shape index: {}]   ;;  %s2060_s5 = inlined_call_operand.vmem [shape: f32[128,1], index: 5, kind: input, shape index: {}]   ;;  %s2061_s4 = inlined_call_operand.vmem [shape: f32[1,128], index: 4, kind: input, shape index: {}]   ;;  %s2062_s6 = inlined_call_operand.vmem [shape: bf16[128,128], index: 6, kind: output, shape index: {}]  }
   0x1   :  { %v1423_v0 = vld [vmem:[%s2056_s1 + $0x40] sm:$0xff]   ;;  %1421 = vset.pattern.permute.xlu0 %v1543_v1  ;;  %1422 = vset.pattern.permute.xlu1 %v1543_v1  ;;  %v1425_v3 = vld [vmem:[%s2056_s1 + $0x48] sm:$0xff]   ;;  %v1428_v6 = vld [vmem:[%s2056_s1 + $0x50] sm:$0xff]  }
   0x2   :  { %v1424_v2 = vld [vmem:[%s2056_s1] sm:$0xff]   ;;  %1308 = vmatprep.subr.bf16.mxu0 %v1423_v0  ;;  %v1427_v5 = vld [vmem:[%s2056_s1 + $0x8] sm:$0xff]   ;;  %v1430_v8 = vld [vmem:[%s2056_s1 + $0x10] sm:$0xff]  }
   0x3   :  { %1309 = vmatpush3.bf16.msra.mxu0 %v1424_v2  ;;  %v1426_v4 = vld [vmem:[%s2057_s3] sm:$0xff]   ;;  %v1429_v7 = vld [vmem:[%s2057_s3 + $0x8] sm:$0xff]   ;;  %v1431_v9 = vld [vmem:[%s2056_s1 + $0x58] sm:$0xff]  }
   0x4   :  { %1310 = vmatprep.subr.bf16.mxu0 %v1425_v3  ;;  %1388 = vmatprep.subr.bf16.mxu1 %v1426_v4  ;;  %v1432_v10 = vld [vmem:[%s2057_s3 + $0x10] sm:$0xff]   ;;  %v1433_v11 = vld [vmem:[%s2056_s1 + $0x18] sm:$0xff]   ;;  %v1434_v12 = vld [vmem:[%s2056_s1 + $0x60] sm:$0xff]  }
   0x5   :  { %1389 = vmatpush3.bf16.msra.mxu1 %v1426_v4  ;;  %v1435_v13 = vld [vmem:[%s2057_s3 + $0x18] sm:$0xff]   ;;  %v1436_v14 = vld [vmem:[%s2056_s1 + $0x20] sm:$0xff]   ;;  %v1437_v16 = vld [vmem:[%s2056_s1 + $0x68] sm:$0xff]  }
   0x6   :  { %1390 = vmatprep.subr.bf16.mxu1 %v1429_v7  ;;  %v1438_v15 = vld [vmem:[%s2057_s3 + $0x20] sm:$0xff]   ;;  %v1439_v17 = vld [vmem:[%s2056_s1 + $0x28] sm:$0xff]   ;;  %v1440_v19 = vld [vmem:[%s2056_s1 + $0x70] sm:$0xff]  }
   0x7   :  { %1311 = vmatpush3.bf16.msra.mxu0 %v1427_v5  ;;  %v1441_v18 = vld [vmem:[%s2057_s3 + $0x28] sm:$0xff]   ;;  %v1442_v20 = vld [vmem:[%s2056_s1 + $0x30] sm:$0xff]   ;;  %v1443_v21 = vld [vmem:[%s2056_s1 + $0x78] sm:$0xff]  }
   0x8   :  { %1312 = vmatprep.subr.bf16.mxu0 %v1428_v6  ;;  %v1444_v22 = vld [vmem:[%s2057_s3 + $0x30] sm:$0xff]   ;;  %v1448_v23 = vld [vmem:[%s2058_s0 + $0x4] ss:$8 sps:$4 sm:$0xff]   ;;  %v1445_v24 = vld [vmem:[%s2056_s1 + $0x38] sm:$0xff]  }
   0x9   :  { %1391 = vmatpush3.bf16.msra.mxu1 %v1429_v7  ;;  %316 = vmatprep.mubr.bf16.mxu0 %v1448_v23  ;;  %v1450_v25 = vld [vmem:[%s2059_s2] sm:$0xff]   ;;  %v1449_v26 = vld [vmem:[%s2057_s3 + $0x38] sm:$0xff]   ;;  %v1451_v29 = vld [vmem:[%s2059_s2 + $0x8] sm:$0xff]  }
   0xa   :  { %1392 = vmatprep.subr.bf16.mxu1 %v1432_v10  ;;  %1404 = vmatprep.mubr.bf16.mxu1 %v1450_v25  ;;  %v1446_v27 = vld [vmem:[%s2058_s0] ss:$8 sps:$4 sm:$0xff]   ;;  %v1452_v28 = vld [vmem:[%s2058_s0 + $0x14] ss:$8 sps:$4 sm:$0xff]   ;;  %v1454_v31 = vld [vmem:[%s2058_s0 + $0x10] ss:$8 sps:$4 sm:$0xff]  }
   0xb   :  { %1313 = vmatpush3.bf16.msra.mxu0 %v1430_v8  ;;  %v1458_v30 = vld [vmem:[%s2059_s2 + $0x10] sm:$0xff]   ;;  %v1455_v32 = vld [vmem:[%s2058_s0 + $0x24] ss:$8 sps:$4 sm:$0xff]   ;;  %v1459_v33 = vld [vmem:[%s2059_s2 + $0x18] sm:$0xff]  }
   0xc   :  { %1314 = vmatprep.subr.bf16.mxu0 %v1431_v9  ;;  %v1466_v34 = vld [vmem:[%s2059_s2 + $0x20] sm:$0xff]   ;;  %v434_v36 = vld [vmem:[%s2060_s5 + $0x10] sm:$0xff]  ;;  %v433_v37 = vld [vmem:[%s2060_s5 + $0x8] sm:$0xff] }
   0xd   :  { %1393 = vmatpush3.bf16.msra.mxu1 %v1432_v10  ;;  %v432_v35 = vld [vmem:[%s2060_s5] sm:$0xff]  ;;  %460 = vperm.xlu1 %1422, %v434_v36   ;;  %v435_v38 = vld [vmem:[%s2060_s5 + $0x18] sm:$0xff]  ;;  %v1467_v42 = vld [vmem:[%s2059_s2 + $0x28] sm:$0xff]  }
   0xe   :  { %1394 = vmatprep.subr.bf16.mxu1 %v1435_v13  ;;  %450 = vperm.xlu0 %1421, %v432_v35   ;;  %v1457_v39 = vld [vmem:[%s2058_s0 + $0x20] ss:$8 sps:$4 sm:$0xff]   ;;  %v1460_v40 = vld [vmem:[%s2058_s0 + $0x34] ss:$8 sps:$4 sm:$0xff]   ;;  %v1462_v47 = vld [vmem:[%s2058_s0 + $0x30] ss:$8 sps:$4 sm:$0xff]  }
   0xf   :  { %1315 = vmatpush3.bf16.msra.mxu0 %v1433_v11  ;;  %v436_v41 = vld [vmem:[%s2060_s5 + $0x20] sm:$0xff]  ;;  %v437_v43 = vld [vmem:[%s2060_s5 + $0x28] sm:$0xff]  ;;  %v1474_v44 = vld [vmem:[%s2059_s2 + $0x30] sm:$0xff]  }
  0x10   :  { %1316 = vmatprep.subr.bf16.mxu0 %v1434_v12  ;;  %v438_v45 = vld [vmem:[%s2060_s5 + $0x30] sm:$0xff]  ;;  %v439_v46 = vld [vmem:[%s2060_s5 + $0x38] sm:$0xff]  ;;  %v1463_v48 = vld [vmem:[%s2058_s0 + $0x44] ss:$8 sps:$4 sm:$0xff]  }
  0x11   :  { %1395 = vmatpush3.bf16.msra.mxu1 %v1435_v13  ;;  %465 = vperm.xlu1 %1422, %v435_v38   ;;  %v440_v49 = vld [vmem:[%s2060_s5 + $0x40] sm:$0xff]  ;;  %v1475_v50 = vld [vmem:[%s2059_s2 + $0x38] sm:$0xff]   ;;  %v441_v51 = vld [vmem:[%s2060_s5 + $0x48] sm:$0xff] }
  0x12   :  { %1396 = vmatprep.subr.bf16.mxu1 %v1438_v15  ;;  %455 = vperm.xlu0 %1421, %v433_v37   ;;  %v442_v52 = vld [vmem:[%s2060_s5 + $0x50] sm:$0xff]  ;;  %v443_v53 = vld [vmem:[%s2060_s5 + $0x58] sm:$0xff]  ;;  %v1465_v54 = vld [vmem:[%s2058_s0 + $0x40] ss:$8 sps:$4 sm:$0xff]  }
  0x13   :  { %1317 = vmatpush3.bf16.msra.mxu0 %v1436_v14  ;;  %v1468_v55 = vld [vmem:[%s2058_s0 + $0x54] ss:$8 sps:$4 sm:$0xff]   ;;  %v444_v56 = vld [vmem:[%s2060_s5 + $0x60] sm:$0xff]  ;;  %v445_v57 = vld [vmem:[%s2060_s5 + $0x68] sm:$0xff] }
  0x14   :  { %1318 = vmatprep.subr.bf16.mxu0 %v1437_v16  ;;  %v446_v58 = vld [vmem:[%s2060_s5 + $0x70] sm:$0xff]  ;;  %v447_v59 = vld [vmem:[%s2060_s5 + $0x78] sm:$0xff]  ;;  %v1471_v61 = vld [vmem:[%s2058_s0 + $0x64] ss:$8 sps:$4 sm:$0xff]  }
  0x15   :  { %1397 = vmatpush3.bf16.msra.mxu1 %v1438_v15  ;;  %475 = vperm.xlu1 %1422, %v437_v43   ;;  %v1470_v60 = vld [vmem:[%s2058_s0 + $0x50] ss:$8 sps:$4 sm:$0xff]   ;;  %v1473_v62 = vld [vmem:[%s2058_s0 + $0x60] ss:$8 sps:$4 sm:$0xff]   ;;  %v1476_v63 = vld [vmem:[%s2058_s0 + $0x74] ss:$8 sps:$4 sm:$0xff]  }
  0x16   :  { %1398 = vmatprep.subr.bf16.mxu1 %v1441_v18  ;;  %470 = vperm.xlu0 %1421, %v436_v41   ;;  %v1478_v0 = vld [vmem:[%s2058_s0 + $0x70] ss:$8 sps:$4 sm:$0xff]   ;;  %v1774_v12 = vld [vmem:[%s2061_s4] ss:$0 sm:$0xff] }
  0x17   :  { %1319 = vmatpush3.bf16.msra.mxu0 %v1439_v17 }
  0x18   :  { %1320 = vmatprep.subr.bf16.mxu0 %v1440_v19 }
  0x19   :  { %1399 = vmatpush3.bf16.msra.mxu1 %v1441_v18  ;;  %485 = vperm.xlu1 %1422, %v439_v46  }
  0x1a   :  { %1400 = vmatprep.subr.bf16.mxu1 %v1444_v22  ;;  %480 = vperm.xlu0 %1421, %v438_v45  }
  0x1b   :  { %1321 = vmatpush3.bf16.msra.mxu0 %v1442_v20 }
  0x1c   :  { %1322 = vmatprep.subr.bf16.mxu0 %v1443_v21 }
  0x1d   :  { %1401 = vmatpush3.bf16.msra.mxu1 %v1444_v22  ;;  %495 = vperm.xlu1 %1422, %v441_v51  }
  0x1e   :  { %1402 = vmatprep.subr.bf16.mxu1 %v1449_v26  ;;  %490 = vperm.xlu0 %1421, %v440_v49  }
  0x1f   :  { %1323 = vmatpush3.bf16.msra.mxu0 %v1445_v24 }
  0x21   :  { %1403 = vmatpush3.bf16.msra.mxu1 %v1449_v26  ;;  %505 = vperm.xlu1 %1422, %v443_v53  }
  0x22   :  { %317 = vmatmul.mubr.bf16.vlgmr.msra.gmra.mrb[0].mxu0 %v1446_v27  ;;  %500 = vperm.xlu0 %1421, %v442_v52  }
  0x23   :  { %324 = vmatprep.mubr.bf16.mxu0 %v1452_v28 }
  0x24   :  { %1405 = vmatmul.mubr.bf16.vlgmr.msra.gmra.mrb[0].mxu1 %v1451_v29 }
  0x25   :  { %1408 = vmatprep.mubr.bf16.mxu1 %v1458_v30  ;;  %515 = vperm.xlu1 %1422, %v445_v57  }
  0x26   :  { %510 = vperm.xlu0 %1421, %v444_v56  }
  0x29   :  { %525 = vperm.xlu1 %1422, %v447_v59  }
  0x2a   :  { %325 = vmatmul.mubr.bf16.gmra.mrb[4].mxu0 %v1454_v31  ;;  %520 = vperm.xlu0 %1421, %v446_v58  }
  0x2b   :  { %332 = vmatprep.mubr.bf16.mxu0 %v1455_v32 }
  0x2c   :  { %1409 = vmatmul.mubr.bf16.gmra.mrb[4].mxu1 %v1459_v33 }
  0x2d   :  { %1412 = vmatprep.mubr.bf16.mxu1 %v1466_v34 }
  0x32   :  { %333 = vmatmul.mubr.bf16.gmra.mrb[8].mxu0 %v1457_v39 }
  0x33   :  { %340 = vmatprep.mubr.bf16.mxu0 %v1460_v40 }
  0x34   :  { %1413 = vmatmul.mubr.bf16.gmra.mrb[8].mxu1 %v1467_v42 }
  0x35   :  { %1416 = vmatprep.mubr.bf16.mxu1 %v1474_v44 }
  0x3a   :  { %341 = vmatmul.mubr.bf16.gmra.mrb[12].mxu0 %v1462_v47 }
  0x3b   :  { %348 = vmatprep.mubr.bf16.mxu0 %v1463_v48 }
  0x3c   :  { %1417 = vmatmul.mubr.bf16.gmra.mrb[12].mxu1 %v1475_v50 }
  0x42   :  { %349 = vmatmul.mubr.bf16.gmra.mrb[16].mxu0 %v1465_v54 }
  0x43   :  { %356 = vmatprep.mubr.bf16.mxu0 %v1468_v55 }
  0x4a   :  { %357 = vmatmul.mubr.bf16.gmra.mrb[20].mxu0 %v1470_v60 }
  0x4b   :  { %364 = vmatprep.mubr.bf16.mxu0 %v1471_v61 }
  0x52   :  { %365 = vmatmul.mubr.bf16.gmra.mrb[24].mxu0 %v1473_v62 }
  0x53   :  { %372 = vmatprep.mubr.bf16.mxu0 %v1476_v63 }
  0x5a   :  { %373 = vmatmul.mubr.bf16.gmra.mrb[28].mxu0 %v1478_v0 }
  0x8c   :  { %v461_v17 = vpop.permute.xlu1 %460 }
  0x8d   :  { %v451_v1 = vpop.permute.xlu0 %450 }
  0x90   :  { %v466_v36 = vpop.permute.xlu1 %465 }
  0x91   :  { %v456_v6 = vpop.permute.xlu0 %455 }
  0x94   :  { %v476_v60 = vpop.permute.xlu1 %475 }
  0x95   :  { %v471_v56 = vpop.permute.xlu0 %470 }
  0xf5   :  { %v1324_v2 = vpop.f32.mrb[0].mxu0 }
  0xf6   :  { %v1325_v3 = vpop.f32.mrb[1].mxu0 }
  0xf7   :  { %v1326_v4 = vadd.f32 %v1325_v3, %v1324_v2  ;;  %v1327_v5 = vpop.f32.mrb[2].mxu0  ;;  %v1406_v8 = vpop.f32.mrb[0].mxu1 }
  0xf8   :  { %v1328_v7 = vpop.f32.mrb[3].mxu0  ;;  %v706_v11 = vpop.f32.mrb[1].mxu1 }
  0xf9   :  { %v1329_v9 = vadd.f32 %v1328_v7, %v1327_v5  ;;  %v528_v10 = vmul.f32 %v1326_v4, %v451_v1  ;;  %v1407_v13 = vpop.f32.mrb[2].mxu1 }
  0xfa   :  { %v709_v16 = vpop.f32.mrb[3].mxu1 }
  0xfb   :  { %v529_v14 = vmul.f32 %v1329_v9, %v456_v6  ;;  %v769_v15 = vadd.f32 %v706_v11, %v528_v10  ;;  %v481_v11 = vpop.permute.xlu0 %480 }
  0xfd   :  { %v1777_v18 = vadd.f32 %v1774_v12, %v769_v15  ;;  %v770_v19 = vadd.f32 %v709_v16, %v529_v14  ;;  %v1330_v20 = vpop.f32.mrb[4].mxu0 }
  0xfe   :  { %v1331_v21 = vpop.f32.mrb[5].mxu0 }
  0xff   :  { %v824_v22 = vmul.f32 0.044715, %v1777_v18  ;;  %v1781_v23 = vadd.f32 %v1774_v12, %v770_v19  ;;  %v1332_v24 = vadd.f32 %v1331_v21, %v1330_v20  ;;  %v1333_v25 = vpop.f32.mrb[6].mxu0  ;;  %v1783_v27 = vpop.f32.mrb[4].mxu1 }
 0x100   :  { %v1334_v26 = vpop.f32.mrb[7].mxu0  ;;  %v722_v31 = vpop.f32.mrb[5].mxu1 }
 0x101   :  { %v840_v28 = vmul.f32 %v824_v22, %v1777_v18  ;;  %v825_v29 = vmul.f32 0.044715, %v1781_v23  ;;  %v530_v30 = vmul.f32 %v1332_v24, %v461_v17  ;;  %v1335_v32 = vadd.f32 %v1334_v26, %v1333_v25  ;;  %v1787_v33 = vpop.f32.mrb[6].mxu1 }
 0x102   :  { %v725_v38 = vpop.f32.mrb[7].mxu1 }
 0x103   :  { %v856_v34 = vmul.f32 %v840_v28, %v1777_v18  ;;  %v841_v35 = vmul.f32 %v825_v29, %v1781_v23  ;;  %v771_v37 = vadd.f32 %v1406_v8, %v530_v30  ;;  %v531_v39 = vmul.f32 %v1335_v32, %v466_v36  ;;  %v486_v32 = vpop.permute.xlu1 %485 }
 0x105   :  { %v872_v40 = vadd.f32 %v856_v34, %v1777_v18  ;;  %v857_v41 = vmul.f32 %v841_v35, %v1781_v23  ;;  %v1794_v42 = vadd.f32 %v1774_v12, %v771_v37  ;;  %v1336_v43 = vpop.f32.mrb[8].mxu0  ;;  %v772_v44 = vadd.f32 %v1407_v13, %v531_v39 }
 0x106   :  { %v1337_v45 = vpop.f32.mrb[9].mxu0 }
 0x107   :  { %v888_v46 = vmul.f32 0.7978846, %v872_v40  ;;  %v873_v47 = vadd.f32 %v857_v41, %v1781_v23  ;;  %v826_v48 = vmul.f32 0.044715, %v1794_v42  ;;  %v1339_v49 = vpop.f32.mrb[10].mxu0  ;;  %v1799_v50 = vadd.f32 %v1774_v12, %v772_v44  ;;  %v1801_v53 = vpop.f32.mrb[8].mxu1 }
 0x108   :  { %v1338_v51 = vadd.f32 %v1337_v45, %v1336_v43  ;;  %v1340_v52 = vpop.f32.mrb[11].mxu0  ;;  %v1804_v58 = vpop.f32.mrb[9].mxu1  ;;  %v809_v41 = vmul.f32 0.5, %v1781_v23 }
 0x109   :  { %1479 = vtanh.f32 %v888_v46  ;;  %v889_v54 = vmul.f32 0.7978846, %v873_v47  ;;  %v842_v55 = vmul.f32 %v826_v48, %v1794_v42  ;;  %v1341_v57 = vadd.f32 %v1340_v52, %v1339_v49  ;;  %v1807_v62 = vpop.f32.mrb[10].mxu1 }
 0x10a   :  { %v827_v59 = vmul.f32 0.044715, %v1799_v50  ;;  %v532_v61 = vmul.f32 %v1338_v51, %v471_v56  ;;  %v1810_v1 = vpop.f32.mrb[11].mxu1 }
 0x10b   :  { %1481 = vtanh.f32 %v889_v54  ;;  %v858_v63 = vmul.f32 %v842_v55, %v1794_v42  ;;  %v533_v0 = vmul.f32 %v1341_v57, %v476_v60 }
 0x10c   :  { %v843_v2 = vmul.f32 %v827_v59, %v1799_v50  ;;  %v773_v3 = vadd.f32 %v722_v31, %v532_v61  ;;  %v808_v31 = vmul.f32 0.5, %v1777_v18 }
 0x10d   :  { %v874_v4 = vadd.f32 %v858_v63, %v1794_v42  ;;  %v774_v5 = vadd.f32 %v725_v38, %v533_v0  ;;  %v1342_v6 = vpop.f32.mrb[12].mxu0 }
 0x10e   :  { %v859_v7 = vmul.f32 %v843_v2, %v1799_v50  ;;  %v1816_v8 = vadd.f32 %v1774_v12, %v773_v3  ;;  %v1343_v9 = vpop.f32.mrb[13].mxu0  ;;  %v810_v3 = vmul.f32 0.5, %v1794_v42 }
 0x10f   :  { %v890_v10 = vmul.f32 0.7978846, %v874_v4  ;;  %v1819_v13 = vadd.f32 %v1774_v12, %v774_v5  ;;  %v1344_v14 = vadd.f32 %v1343_v9, %v1342_v6  ;;  %v1345_v15 = vpop.f32.mrb[14].mxu0  ;;  %v1823_v20 = vpop.f32.mrb[12].mxu1 }
 0x110   :  { %v875_v16 = vadd.f32 %v859_v7, %v1799_v50  ;;  %v828_v17 = vmul.f32 0.044715, %v1816_v8  ;;  %v1346_v19 = vpop.f32.mrb[15].mxu0  ;;  %v1826_v24 = vpop.f32.mrb[13].mxu1 }
 0x111   :  { %1483 = vtanh.f32 %v890_v10  ;;  %v829_v21 = vmul.f32 0.044715, %v1819_v13  ;;  %v534_v22 = vmul.f32 %v1344_v14, %v481_v11  ;;  %v1347_v28 = vadd.f32 %v1346_v19, %v1345_v15  ;;  %v1829_v29 = vpop.f32.mrb[14].mxu1  ;;  %v491_v4 = vpop.permute.xlu0 %490 }
 0x112   :  { %v891_v25 = vmul.f32 0.7978846, %v875_v16  ;;  %v844_v26 = vmul.f32 %v828_v17, %v1816_v8  ;;  %v1834_v36 = vpop.f32.mrb[15].mxu1  ;;  %v496_v11 = vpop.permute.xlu1 %495  ;;  %v811_v15 = vmul.f32 0.5, %v1799_v50 }
 0x113   :  { %v1480_v30 = vpop.eup %1479  ;;  %v845_v34 = vmul.f32 %v829_v21, %v1819_v13  ;;  %v775_v35 = vadd.f32 %v1783_v27, %v534_v22  ;;  %v535_v39 = vmul.f32 %v1347_v28, %v486_v32 }
 0x114   :  { %v920_v37 = vadd.f32 1.0, %v1480_v30  ;;  %1485 = vtanh.f32 %v891_v25  ;;  %v860_v38 = vmul.f32 %v844_v26, %v1816_v8 }
 0x115   :  { %v1482_v40 = vpop.eup %1481  ;;  %v861_v43 = vmul.f32 %v845_v34, %v1819_v13  ;;  %v1840_v44 = vadd.f32 %v1774_v12, %v775_v35  ;;  %v1348_v18 = vpop.f32.mrb[16].mxu0  ;;  %v776_v47 = vadd.f32 %v1787_v33, %v535_v39 }
 0x116   :  { %v1842_v45 = vmul.f32 %v920_v37, %v808_v31  ;;  %v921_v46 = vadd.f32 1.0, %v1482_v40  ;;  %v876_v27 = vadd.f32 %v860_v38, %v1816_v8  ;;  %v1349_v48 = vpop.f32.mrb[17].mxu0  ;;  %v812_v40 = vmul.f32 0.5, %v1816_v8 }
 0x117   :  { %v877_v49 = vadd.f32 %v861_v43, %v1819_v13  ;;  %v830_v51 = vmul.f32 0.044715, %v1840_v44  ;;  %v1350_v52 = vadd.f32 %v1349_v48, %v1348_v18  ;;  %v1351_v23 = vpop.f32.mrb[18].mxu0  ;;  %v1853_v61 = vadd.f32 %v1774_v12, %v776_v47 }
 0x118   :  { %v968_v54 = vmul.f32 0.044715, %v1842_v45  ;;  %v1849_v55 = vmul.f32 %v921_v46, %v809_v41  ;;  %v892_v56 = vmul.f32 0.7978846, %v876_v27  ;;  %v1352_v57 = vpop.f32.mrb[19].mxu0  ;;  %v813_v8 = vmul.f32 0.5, %v1819_v13 }
 0x119   :  { %v893_v59 = vmul.f32 0.7978846, %v877_v49  ;;  %v846_v60 = vmul.f32 %v830_v51, %v1840_v44  ;;  %v1353_v33 = vadd.f32 %v1352_v57, %v1351_v23  ;;  %v831_v6 = vmul.f32 0.044715, %v1853_v61 }
 0x11a   :  { %v984_v63 = vmul.f32 %v968_v54, %v1842_v45  ;;  %v969_v0 = vmul.f32 0.044715, %v1849_v55  ;;  %1487 = vtanh.f32 %v892_v56  ;;  %v536_v14 = vmul.f32 %v1350_v52, %v491_v4  ;;  %v501_v4 = vpop.permute.xlu0 %500 }
 0x11b   :  { %v1484_v2 = vpop.eup %1483  ;;  %1489 = vtanh.f32 %v893_v59  ;;  %v862_v5 = vmul.f32 %v846_v60, %v1840_v44  ;;  %v847_v17 = vmul.f32 %v831_v6, %v1853_v61  ;;  %v537_v42 = vmul.f32 %v1353_v33, %v496_v11 }
 0x11c   :  { %v1000_v7 = vmul.f32 %v984_v63, %v1842_v45  ;;  %v985_v9 = vmul.f32 %v969_v0, %v1849_v55  ;;  %v922_v10 = vadd.f32 1.0, %v1484_v2  ;;  %v777_v28 = vadd.f32 %v1804_v58, %v536_v14 }
 0x11d   :  { %v878_v16 = vadd.f32 %v862_v5, %v1840_v44  ;;  %v1354_v19 = vpop.f32.mrb[20].mxu0  ;;  %v863_v50 = vmul.f32 %v847_v17, %v1853_v61  ;;  %v778_v34 = vadd.f32 %v1810_v1, %v537_v42  ;;  %v814_v48 = vmul.f32 0.5, %v1840_v44 }
 0x11e   :  { %v1486_v21 = vpop.eup %1485  ;;  %v1016_v22 = vadd.f32 %v1000_v7, %v1842_v45  ;;  %v1001_v25 = vmul.f32 %v985_v9, %v1849_v55  ;;  %v1867_v26 = vmul.f32 %v922_v10, %v810_v3  ;;  %v1355_v30 = vpop.f32.mrb[21].mxu0  ;;  %v1879_v18 = vadd.f32 %v1774_v12, %v777_v28 }
 0x11f   :  { %v923_v31 = vadd.f32 1.0, %v1486_v21  ;;  %v894_v32 = vmul.f32 0.7978846, %v878_v16  ;;  %v1357_v35 = vpop.f32.mrb[22].mxu0  ;;  %v879_v58 = vadd.f32 %v863_v50, %v1853_v61  ;;  %v1883_v27 = vadd.f32 %v1774_v12, %v778_v34 }
 0x120   :  { %v1032_v37 = vmul.f32 0.7978846, %v1016_v22  ;;  %v1017_v38 = vadd.f32 %v1001_v25, %v1849_v55  ;;  %v970_v39 = vmul.f32 0.044715, %v1867_v26  ;;  %v1358_v41 = vpop.f32.mrb[23].mxu0  ;;  %v1889_v52 = vmul.f32 0.5, %v1842_v45 }
 0x121   :  { %v1875_v43 = vmul.f32 %v923_v31, %v811_v15  ;;  %1491 = vtanh.f32 %v894_v32  ;;  %v895_v49 = vmul.f32 0.7978846, %v879_v58  ;;  %v832_v54 = vmul.f32 0.044715, %v1879_v18  ;;  %v506_v32 = vpop.permute.xlu1 %505 }
 0x122   :  { %1493 = vtanh.f32 %v1032_v37  ;;  %v1033_v46 = vmul.f32 0.7978846, %v1017_v38  ;;  %v986_v1 = vmul.f32 %v970_v39, %v1867_v26  ;;  %v833_v60 = vmul.f32 0.044715, %v1883_v27 }
 0x123   :  { %v971_v47 = vmul.f32 0.044715, %v1875_v43  ;;  %v848_v45 = vmul.f32 %v832_v54, %v1879_v18  ;;  %v1356_v63 = vadd.f32 %v1355_v30, %v1354_v19  ;;  %v1359_v6 = vadd.f32 %v1358_v41, %v1357_v35 }
 0x124   :  { %v1488_v51 = vpop.eup %1487  ;;  %1495 = vtanh.f32 %v1033_v46  ;;  %v1002_v23 = vmul.f32 %v986_v1, %v1867_v26  ;;  %v849_v5 = vmul.f32 %v833_v60, %v1883_v27  ;;  %v953_v16 = vmul.f32 0.5, %v1849_v55 }
 0x125   :  { %v1490_v56 = vpop.eup %1489  ;;  %v987_v57 = vmul.f32 %v971_v47, %v1875_v43  ;;  %v924_v59 = vadd.f32 1.0, %v1488_v51  ;;  %1497 = vtanh.f32 %v895_v49  ;;  %v1895_v13 = vpop.f32.mrb[24].mxu0  ;;  %v864_v11 = vmul.f32 %v848_v45, %v1879_v18 }
 0x126   :  { %v1018_v44 = vadd.f32 %v1002_v23, %v1867_v26  ;;  %v925_v33 = vadd.f32 1.0, %v1490_v56  ;;  %v1899_v0 = vpop.f32.mrb[25].mxu0  ;;  %v538_v14 = vmul.f32 %v1356_v63, %v501_v4  ;;  %v865_v19 = vmul.f32 %v849_v5, %v1883_v27 }
 0x127   :  { %v1003_v2 = vmul.f32 %v987_v57, %v1875_v43  ;;  %v1902_v3 = vmul.f32 %v924_v59, %v812_v40  ;;  %v1905_v7 = vpop.f32.mrb[26].mxu0  ;;  %v815_v22 = vmul.f32 0.5, %v1853_v61  ;;  %v880_v25 = vadd.f32 %v864_v11, %v1879_v18 }
 0x128   :  { %v1034_v9 = vmul.f32 0.7978846, %v1018_v44  ;;  %v1907_v10 = vmul.f32 %v925_v33, %v813_v8  ;;  %v1910_v15 = vpop.f32.mrb[27].mxu0  ;;  %v881_v55 = vadd.f32 %v865_v19, %v1883_v27  ;;  %v779_v50 = vadd.f32 %v1801_v53, %v538_v14 }
 0x129   :  { %v1019_v17 = vadd.f32 %v1003_v2, %v1875_v43  ;;  %v972_v42 = vmul.f32 0.044715, %v1902_v3  ;;  %v896_v38 = vmul.f32 0.7978846, %v880_v25  ;;  %v539_v39 = vmul.f32 %v1359_v6, %v506_v32 }
 0x12a   :  { %1499 = vtanh.f32 %v1034_v9  ;;  %v973_v21 = vmul.f32 0.044715, %v1907_v10  ;;  %v897_v41 = vmul.f32 0.7978846, %v881_v55  ;;  %v1928_v53 = vadd.f32 %v1774_v12, %v779_v50 }
 0x12b   :  { %v1492_v28 = vpop.eup %1491  ;;  %v1035_v30 = vmul.f32 0.7978846, %v1019_v17  ;;  %v988_v31 = vmul.f32 %v972_v42, %v1902_v3  ;;  %v954_v23 = vmul.f32 0.5, %v1867_v26  ;;  %v955_v57 = vmul.f32 0.5, %v1875_v43  ;;  %v511_v42 = vpop.permute.xlu0 %510 }
 0x12c   :  { %v1494_v34 = vpop.eup %1493  ;;  %v989_v35 = vmul.f32 %v973_v21, %v1907_v10  ;;  %v926_v37 = vadd.f32 1.0, %v1492_v28  ;;  %v834_v26 = vmul.f32 0.044715, %v1928_v53  ;;  %v780_v43 = vadd.f32 %v1807_v62, %v539_v39 }
 0x12d   :  { %v1064_v40 = vadd.f32 1.0, %v1494_v34  ;;  %1501 = vtanh.f32 %v1035_v30  ;;  %v1004_v61 = vmul.f32 %v988_v31, %v1902_v3  ;;  %v1366_v58 = vpop.f32.mrb[28].mxu0  ;;  %v1362_v11 = vadd.f32 %v1899_v0, %v1895_v13 }
 0x12e   :  { %v1496_v46 = vpop.eup %1495  ;;  %v1005_v1 = vmul.f32 %v989_v35, %v1907_v10  ;;  %v1925_v47 = vmul.f32 %v926_v37, %v814_v48  ;;  %1503 = vtanh.f32 %v896_v38  ;;  %v1367_v8 = vpop.f32.mrb[29].mxu0  ;;  %v850_v9 = vmul.f32 %v834_v26, %v1928_v53 }
 0x12f   :  { %v1498_v49 = vpop.eup %1497  ;;  %v1065_v51 = vadd.f32 1.0, %v1496_v46  ;;  %v1020_v54 = vadd.f32 %v1004_v61, %v1902_v3  ;;  %1505 = vtanh.f32 %v897_v41  ;;  %v1932_v56 = vpop.f32.mrb[30].mxu0  ;;  %v1080_v33 = vmul.f32 %v1064_v40, %v1889_v52 }
 0x130   :  { %v1021_v59 = vadd.f32 %v1005_v1, %v1907_v10  ;;  %v974_v48 = vmul.f32 0.044715, %v1925_v47  ;;  %v927_v60 = vadd.f32 1.0, %v1498_v49  ;;  %v1937_v44 = vpop.f32.mrb[31].mxu0  ;;  %v816_v17 = vmul.f32 0.5, %v1879_v18 }
 0x131   :  { %v1081_v45 = vmul.f32 %v1065_v51, %v953_v16  ;;  %v1036_v63 = vmul.f32 0.7978846, %v1020_v54  ;;  %v866_v19 = vmul.f32 %v850_v9, %v1928_v53  ;;  %v1956_v21 = vadd.f32 %v1774_v12, %v780_v43 }
 0x132   :  { %v1037_v2 = vmul.f32 0.7978846, %v1021_v59  ;;  %v990_v4 = vmul.f32 %v974_v48, %v1925_v47  ;;  %v1942_v5 = vmul.f32 %v927_v60, %v815_v22  ;;  %v1365_v13 = vadd.f32 %v1910_v15, %v1905_v7  ;;  %v516_v7 = vpop.permute.xlu1 %515 }
 0x133   :  { %v1264_v6 = vpack.c.bf16 %v1081_v45, %v1080_v33  ;;  %1507 = vtanh.f32 %v1036_v63  ;;  %v540_v25 = vmul.f32 %v1362_v11, %v511_v42  ;;  %v1368_v18 = vadd.f32 %v1367_v8, %v1366_v58 }
 0x134   :  { %v1500_v14 = vpop.eup %1499  ;;  %1509 = vtanh.f32 %v1037_v2  ;;  %v1006_v52 = vmul.f32 %v990_v4, %v1925_v47  ;;  %v975_v16 = vmul.f32 0.044715, %v1942_v5  ;;  %v817_v31 = vmul.f32 0.5, %v1883_v27 }
 0x135   :  { %1265 = vst [vmem:[%s2062_s6] sm:$0xff] %v1264_v6   ;;  %v1066_v62 = vadd.f32 1.0, %v1500_v14  ;;  %v882_v32 = vadd.f32 %v866_v19, %v1928_v53  ;;  %v835_v55 = vmul.f32 0.044715, %v1956_v21  ;;  %v781_v15 = vadd.f32 %v1826_v24, %v540_v25 }
 0x136   :  { %v1022_v0 = vadd.f32 %v1006_v52, %v1925_v47  ;;  %v991_v22 = vmul.f32 %v975_v16, %v1942_v5  ;;  %v541_v41 = vmul.f32 %v1365_v13, %v516_v7  ;;  %v957_v63 = vmul.f32 0.5, %v1907_v10 }
 0x137   :  { %v1502_v28 = vpop.eup %1501  ;;  %v1082_v30 = vmul.f32 %v1066_v62, %v954_v23  ;;  %v898_v40 = vmul.f32 0.7978846, %v882_v32  ;;  %v851_v61 = vmul.f32 %v835_v55, %v1956_v21  ;;  %v1973_v49 = vadd.f32 %v1774_v12, %v781_v15 }
 0x138   :  { %v1504_v50 = vpop.eup %1503  ;;  %v1067_v34 = vadd.f32 1.0, %v1502_v28  ;;  %v1038_v35 = vmul.f32 0.7978846, %v1022_v0  ;;  %v1007_v37 = vmul.f32 %v991_v22, %v1942_v5  ;;  %v782_v54 = vadd.f32 %v1834_v36, %v541_v41  ;;  %v521_v36 = vpop.permute.xlu0 %520 }
 0x139   :  { %v1506_v38 = vpop.eup %1505  ;;  %v928_v39 = vadd.f32 1.0, %v1504_v50  ;;  %v867_v8 = vmul.f32 %v851_v61, %v1956_v21  ;;  %v836_v43 = vmul.f32 0.044715, %v1973_v49  ;;  %v542_v14 = vmul.f32 %v1368_v18, %v521_v36  ;;  %v526_v18 = vpop.permute.xlu1 %525 }
 0x13a   :  { %v1083_v58 = vmul.f32 %v1067_v34, %v955_v57  ;;  %1511 = vtanh.f32 %v1038_v35  ;;  %v1023_v27 = vadd.f32 %v1007_v37, %v1942_v5  ;;  %v929_v46 = vadd.f32 1.0, %v1506_v38 }
 0x13b   :  { %v1969_v1 = vmul.f32 %v928_v39, %v816_v17  ;;  %1513 = vtanh.f32 %v898_v40  ;;  %v956_v57 = vmul.f32 0.5, %v1902_v3  ;;  %v883_v60 = vadd.f32 %v867_v8, %v1956_v21 }
 0x13c   :  { %v1269_v24 = vpack.c.bf16 %v1083_v58, %v1082_v30  ;;  %v1039_v51 = vmul.f32 0.7978846, %v1023_v27  ;;  %v1975_v23 = vmul.f32 %v929_v46, %v817_v31  ;;  %v1990_v11 = vadd.f32 %v1774_v12, %v782_v54 }
 0x13d   :  { %v1508_v59 = vpop.eup %1507  ;;  %v976_v48 = vmul.f32 0.044715, %v1969_v1  ;;  %v899_v3 = vmul.f32 0.7978846, %v883_v60  ;;  %v852_v16 = vmul.f32 %v836_v43, %v1973_v49  ;;  %v783_v42 = vadd.f32 %v1823_v20, %v542_v14 }
 0x13e   :  { %v1510_v33 = vpop.eup %1509  ;;  %1301 = vst [vmem:[%s2062_s6 + $0x8] sm:$0xff] %v1269_v24   ;;  %v1068_v45 = vadd.f32 1.0, %v1508_v59  ;;  %1515 = vtanh.f32 %v1039_v51  ;;  %v977_v26 = vmul.f32 0.044715, %v1975_v23  ;;  %v837_v62 = vmul.f32 0.044715, %v1990_v11 }
 0x13f   :  { %v1069_v2 = vadd.f32 1.0, %v1510_v33  ;;  %v992_v4 = vmul.f32 %v976_v48, %v1969_v1  ;;  %1517 = vtanh.f32 %v899_v3  ;;  %v868_v0 = vmul.f32 %v852_v16, %v1973_v49 }
 0x140   :  { %v1084_v6 = vmul.f32 %v1068_v45, %v956_v57  ;;  %v993_v9 = vmul.f32 %v977_v26, %v1975_v23  ;;  %v1371_v22 = vadd.f32 %v1937_v44, %v1932_v56  ;;  %v853_v30 = vmul.f32 %v837_v62, %v1990_v11 }
 0x141   :  { %v1085_v52 = vmul.f32 %v1069_v2, %v957_v63  ;;  %v1008_v10 = vmul.f32 %v992_v4, %v1969_v1  ;;  %v2004_v31 = vadd.f32 %v1774_v12, %v783_v42  ;;  %v958_v20 = vmul.f32 0.5, %v1925_v47 }
 0x142   :  { %v1009_v17 = vmul.f32 %v993_v9, %v1975_v23  ;;  %v884_v50 = vadd.f32 %v868_v0, %v1973_v49  ;;  %v543_v56 = vmul.f32 %v1371_v22, %v526_v18  ;;  %v818_v34 = vmul.f32 0.5, %v1928_v53 }
 0x143   :  { %v1274_v19 = vpack.c.bf16 %v1085_v52, %v1084_v6  ;;  %v1024_v13 = vadd.f32 %v1008_v10, %v1969_v1  ;;  %v869_v37 = vmul.f32 %v853_v30, %v1990_v11  ;;  %v838_v38 = vmul.f32 0.044715, %v2004_v31 }
 0x144   :  { %v1512_v25 = vpop.eup %1511  ;;  %v1025_v28 = vadd.f32 %v1009_v17, %v1975_v23  ;;  %v900_v15 = vmul.f32 0.7978846, %v884_v50  ;;  %v784_v61 = vadd.f32 %v1829_v29, %v543_v56  ;;  %v959_v41 = vmul.f32 0.5, %v1942_v5 }
 0x145   :  { %v1514_v32 = vpop.eup %1513  ;;  %1302 = vst [vmem:[%s2062_s6 + $0x10] sm:$0xff] %v1274_v19   ;;  %v1040_v55 = vmul.f32 0.7978846, %v1024_v13  ;;  %v1070_v7 = vadd.f32 1.0, %v1512_v25  ;;  %v885_v47 = vadd.f32 %v869_v37, %v1990_v11  ;;  %v854_v53 = vmul.f32 %v838_v38, %v2004_v31 }
 0x146   :  { %v1041_v44 = vmul.f32 0.7978846, %v1025_v28  ;;  %v930_v35 = vadd.f32 1.0, %v1514_v32  ;;  %v2022_v8 = vadd.f32 %v1774_v12, %v784_v61  ;;  %v819_v29 = vmul.f32 0.5, %v1956_v21 }
 0x147   :  { %1519 = vtanh.f32 %v1040_v55  ;;  %v901_v46 = vmul.f32 0.7978846, %v885_v47  ;;  %v1086_v51 = vmul.f32 %v1070_v7, %v958_v20  ;;  %v870_v59 = vmul.f32 %v854_v53, %v2004_v31 }
 0x148   :  { %v1516_v39 = vpop.eup %1515  ;;  %1521 = vtanh.f32 %v1041_v44  ;;  %v2014_v40 = vmul.f32 %v930_v35, %v818_v34  ;;  %v839_v33 = vmul.f32 0.044715, %v2022_v8  ;;  %v960_v52 = vmul.f32 0.5, %v1969_v1 }
 0x149   :  { %v1071_v58 = vadd.f32 1.0, %v1516_v39  ;;  %1523 = vtanh.f32 %v900_v15  ;;  %v1518_v24 = vpop.eup %1517  ;;  %v886_v60 = vadd.f32 %v870_v59, %v2004_v31  ;;  %v961_v10 = vmul.f32 0.5, %v1975_v23 }
 0x14a   :  { %v978_v27 = vmul.f32 0.044715, %v2014_v40  ;;  %v931_v5 = vadd.f32 1.0, %v1518_v24  ;;  %1525 = vtanh.f32 %v901_v46  ;;  %v855_v26 = vmul.f32 %v839_v33, %v2022_v8 }
 0x14b   :  { %v1087_v54 = vmul.f32 %v1071_v58, %v959_v41  ;;  %v902_v63 = vmul.f32 0.7978846, %v886_v60  ;;  %v820_v42 = vmul.f32 0.5, %v1973_v49  ;;  %v821_v32 = vmul.f32 0.5, %v1990_v11 }
 0x14c   :  { %v994_v57 = vmul.f32 %v978_v27, %v2014_v40  ;;  %v947_v12 = vmul.f32 %v931_v5, %v819_v29  ;;  %v871_v4 = vmul.f32 %v855_v26, %v2022_v8  ;;  %v822_v34 = vmul.f32 0.5, %v2004_v31 }
 0x14d   :  { %v1279_v48 = vpack.c.bf16 %v1087_v54, %v1086_v51  ;;  %1527 = vtanh.f32 %v902_v63  ;;  %v823_v53 = vmul.f32 0.5, %v2022_v8  ;;  %v962_v59 = vmul.f32 0.5, %v2014_v40 }
 0x14e   :  { %v1010_v45 = vmul.f32 %v994_v57, %v2014_v40  ;;  %v979_v21 = vmul.f32 0.044715, %v947_v12  ;;  %v887_v17 = vadd.f32 %v871_v4, %v2022_v8  ;;  %v963_v57 = vmul.f32 0.5, %v947_v12 }
 0x14f   :  { %1303 = vst [vmem:[%s2062_s6 + $0x18] sm:$0xff] %v1279_v48  }
 0x150   :  { %v1026_v2 = vadd.f32 %v1010_v45, %v2014_v40  ;;  %v995_v9 = vmul.f32 %v979_v21, %v947_v12  ;;  %v903_v22 = vmul.f32 0.7978846, %v887_v17 }
 0x151   :  { %v1520_v36 = vpop.eup %1519 }
 0x152   :  { %v1522_v3 = vpop.eup %1521  ;;  %v1072_v43 = vadd.f32 1.0, %v1520_v36  ;;  %v1042_v6 = vmul.f32 0.7978846, %v1026_v2  ;;  %v1011_v62 = vmul.f32 %v995_v9, %v947_v12 }
 0x153   :  { %v1524_v14 = vpop.eup %1523  ;;  %v1073_v16 = vadd.f32 1.0, %v1522_v3 }
 0x154   :  { %v932_v19 = vadd.f32 1.0, %v1524_v14  ;;  %v1088_v13 = vmul.f32 %v1072_v43, %v960_v52  ;;  %v1526_v25 = vpop.eup %1525  ;;  %1529 = vtanh.f32 %v1042_v6  ;;  %v1027_v18 = vadd.f32 %v1011_v62, %v947_v12 }
 0x155   :  { %v1089_v0 = vmul.f32 %v1073_v16, %v961_v10  ;;  %v933_v1 = vadd.f32 1.0, %v1526_v25  ;;  %1531 = vtanh.f32 %v903_v22 }
 0x156   :  { %v948_v28 = vmul.f32 %v932_v19, %v820_v42  ;;  %v1043_v23 = vmul.f32 0.7978846, %v1027_v18 }
 0x157   :  { %v1284_v30 = vpack.c.bf16 %v1089_v0, %v1088_v13  ;;  %v949_v49 = vmul.f32 %v933_v1, %v821_v32  ;;  %v1528_v50 = vpop.eup %1527 }
 0x158   :  { %v980_v20 = vmul.f32 0.044715, %v948_v28  ;;  %1533 = vtanh.f32 %v1043_v23  ;;  %v934_v35 = vadd.f32 1.0, %v1528_v50  ;;  %v964_v4 = vmul.f32 0.5, %v948_v28 }
 0x159   :  { %1304 = vst [vmem:[%s2062_s6 + $0x20] sm:$0xff] %v1284_v30   ;;  %v981_v56 = vmul.f32 0.044715, %v949_v49  ;;  %v965_v3 = vmul.f32 0.5, %v949_v49 }
 0x15a   :  { %v996_v55 = vmul.f32 %v980_v20, %v948_v28  ;;  %v950_v11 = vmul.f32 %v934_v35, %v822_v34 }
 0x15b   :  { %v997_v37 = vmul.f32 %v981_v56, %v949_v49 }
 0x15c   :  { %v1012_v44 = vmul.f32 %v996_v55, %v948_v28  ;;  %v982_v47 = vmul.f32 0.044715, %v950_v11  ;;  %v966_v17 = vmul.f32 0.5, %v950_v11 }
 0x15d   :  { %v1013_v15 = vmul.f32 %v997_v37, %v949_v49 }
 0x15e   :  { %v1028_v7 = vadd.f32 %v1012_v44, %v948_v28  ;;  %v1530_v38 = vpop.eup %1529  ;;  %v998_v58 = vmul.f32 %v982_v47, %v950_v11 }
 0x15f   :  { %v1532_v61 = vpop.eup %1531  ;;  %v1029_v41 = vadd.f32 %v1013_v15, %v949_v49  ;;  %v1074_v46 = vadd.f32 1.0, %v1530_v38 }
 0x160   :  { %v1044_v39 = vmul.f32 0.7978846, %v1028_v7  ;;  %v935_v27 = vadd.f32 1.0, %v1532_v61  ;;  %v1014_v54 = vmul.f32 %v998_v58, %v950_v11 }
 0x161   :  { %v1045_v24 = vmul.f32 0.7978846, %v1029_v41  ;;  %v1090_v60 = vmul.f32 %v1074_v46, %v962_v59 }
 0x162   :  { %1535 = vtanh.f32 %v1044_v39  ;;  %v1534_v51 = vpop.eup %1533  ;;  %v951_v31 = vmul.f32 %v935_v27, %v823_v53  ;;  %v1030_v5 = vadd.f32 %v1014_v54, %v950_v11 }
 0x163   :  { %v1075_v29 = vadd.f32 1.0, %v1534_v51  ;;  %1537 = vtanh.f32 %v1045_v24 }
 0x164   :  { %v983_v48 = vmul.f32 0.044715, %v951_v31  ;;  %v1046_v45 = vmul.f32 0.7978846, %v1030_v5  ;;  %v967_v62 = vmul.f32 0.5, %v951_v31 }
 0x165   :  { %v1091_v33 = vmul.f32 %v1075_v29, %v963_v57 }
 0x166   :  { %v999_v63 = vmul.f32 %v983_v48, %v951_v31  ;;  %1539 = vtanh.f32 %v1046_v45 }
 0x167   :  { %v1289_v26 = vpack.c.bf16 %v1091_v33, %v1090_v60 }
 0x168   :  { %v1015_v2 = vmul.f32 %v999_v63, %v951_v31 }
 0x169   :  { %1305 = vst [vmem:[%s2062_s6 + $0x28] sm:$0xff] %v1289_v26  }
 0x16a   :  { %v1031_v21 = vadd.f32 %v1015_v2, %v951_v31 }
 0x16c   :  { %v1536_v8 = vpop.eup %1535  ;;  %v1047_v40 = vmul.f32 0.7978846, %v1031_v21 }
 0x16d   :  { %v1076_v36 = vadd.f32 1.0, %v1536_v8  ;;  %v1538_v12 = vpop.eup %1537 }
 0x16e   :  { %v1077_v43 = vadd.f32 1.0, %v1538_v12  ;;  %1541 = vtanh.f32 %v1047_v40 }
 0x16f   :  { %v1092_v6 = vmul.f32 %v1076_v36, %v964_v4 }
 0x170   :  { %v1093_v9 = vmul.f32 %v1077_v43, %v965_v3  ;;  %v1540_v52 = vpop.eup %1539 }
 0x171   :  { %v1078_v10 = vadd.f32 1.0, %v1540_v52 }
 0x172   :  { %v1294_v14 = vpack.c.bf16 %v1093_v9, %v1092_v6 }
 0x173   :  { %v1094_v19 = vmul.f32 %v1078_v10, %v966_v17 }
 0x174   :  { %1306 = vst [vmem:[%s2062_s6 + $0x30] sm:$0xff] %v1294_v14  }
 0x178   :  { %v1542_v16 = vpop.eup %1541 }
 0x179   :  { %v1079_v42 = vadd.f32 1.0, %v1542_v16 }
 0x17b   :  { %v1095_v13 = vmul.f32 %v1079_v42, %v967_v62 }
 0x17d   :  { %v1299_v0 = vpack.c.bf16 %v1095_v13, %v1094_v19 }
 0x17f   :  { %1307 = vst [vmem:[%s2062_s6 + $0x38] sm:$0xff] %v1299_v0  }

// kernel: gmmnet_u_forward.19
= control target key start
LH: loop header
LB: loop body
LE: loop exit
PB: predicated region body
PF: predicated region fallthrough
CT: control target
= control target key end

     0   :  { %v1367_v1 = vmov 0   ;;  %s1768_s1 = inlined_call_operand.vmem [shape: bf16[256,128], index: 1, kind: input, shape index: {}]   ;;  %s1769_s3 = inlined_call_operand.vmem [shape: bf16[128,128], index: 3, kind: input, shape index: {}]   ;;  %s1770_s0 = inlined_call_operand.vmem [shape: bf16[128,256], index: 0, kind: input, shape index: {}]   ;;  %s1771_s2 = inlined_call_operand.vmem [shape: bf16[128,128], index: 2, kind: input, shape index: {}]   ;;  %s1772_s5 = inlined_call_operand.vmem [shape: f32[128,1], index: 5, kind: input, shape index: {}]   ;;  %s1773_s4 = inlined_call_operand.vmem [shape: f32[1,128], index: 4, kind: input, shape index: {}]   ;;  %s1774_s6 = inlined_call_operand.vmem [shape: bf16[128,128], index: 6, kind: output, shape index: {}]  }
   0x1   :  { %v1279_v0 = vld [vmem:[%s1768_s1 + $0x40] sm:$0xff]   ;;  %1277 = vset.pattern.permute.xlu0 %v1367_v1  ;;  %1278 = vset.pattern.permute.xlu1 %v1367_v1  ;;  %v1281_v3 = vld [vmem:[%s1768_s1 + $0x48] sm:$0xff]   ;;  %v1284_v6 = vld [vmem:[%s1768_s1 + $0x50] sm:$0xff]  }
   0x2   :  { %v1280_v2 = vld [vmem:[%s1768_s1] sm:$0xff]   ;;  %1164 = vmatprep.subr.bf16.mxu0 %v1279_v0  ;;  %v1283_v5 = vld [vmem:[%s1768_s1 + $0x8] sm:$0xff]   ;;  %v1286_v8 = vld [vmem:[%s1768_s1 + $0x10] sm:$0xff]  }
   0x3   :  { %1165 = vmatpush3.bf16.msra.mxu0 %v1280_v2  ;;  %v1282_v4 = vld [vmem:[%s1769_s3] sm:$0xff]   ;;  %v1285_v7 = vld [vmem:[%s1769_s3 + $0x8] sm:$0xff]   ;;  %v1287_v9 = vld [vmem:[%s1768_s1 + $0x58] sm:$0xff]  }
   0x4   :  { %1166 = vmatprep.subr.bf16.mxu0 %v1281_v3  ;;  %1244 = vmatprep.subr.bf16.mxu1 %v1282_v4  ;;  %v1288_v10 = vld [vmem:[%s1769_s3 + $0x10] sm:$0xff]   ;;  %v1289_v11 = vld [vmem:[%s1768_s1 + $0x18] sm:$0xff]   ;;  %v1290_v12 = vld [vmem:[%s1768_s1 + $0x60] sm:$0xff]  }
   0x5   :  { %1245 = vmatpush3.bf16.msra.mxu1 %v1282_v4  ;;  %v1291_v13 = vld [vmem:[%s1769_s3 + $0x18] sm:$0xff]   ;;  %v1292_v14 = vld [vmem:[%s1768_s1 + $0x20] sm:$0xff]   ;;  %v1293_v16 = vld [vmem:[%s1768_s1 + $0x68] sm:$0xff]  }
   0x6   :  { %1246 = vmatprep.subr.bf16.mxu1 %v1285_v7  ;;  %v1294_v15 = vld [vmem:[%s1769_s3 + $0x20] sm:$0xff]   ;;  %v1295_v17 = vld [vmem:[%s1768_s1 + $0x28] sm:$0xff]   ;;  %v1296_v19 = vld [vmem:[%s1768_s1 + $0x70] sm:$0xff]  }
   0x7   :  { %1167 = vmatpush3.bf16.msra.mxu0 %v1283_v5  ;;  %v1297_v18 = vld [vmem:[%s1769_s3 + $0x28] sm:$0xff]   ;;  %v1298_v20 = vld [vmem:[%s1768_s1 + $0x30] sm:$0xff]   ;;  %v1299_v21 = vld [vmem:[%s1768_s1 + $0x78] sm:$0xff]  }
   0x8   :  { %1168 = vmatprep.subr.bf16.mxu0 %v1284_v6  ;;  %v1300_v22 = vld [vmem:[%s1769_s3 + $0x30] sm:$0xff]   ;;  %v1304_v23 = vld [vmem:[%s1770_s0 + $0x4] ss:$8 sps:$4 sm:$0xff]   ;;  %v1301_v24 = vld [vmem:[%s1768_s1 + $0x38] sm:$0xff]  }
   0x9   :  { %1247 = vmatpush3.bf16.msra.mxu1 %v1285_v7  ;;  %316 = vmatprep.mubr.bf16.mxu0 %v1304_v23  ;;  %v1306_v25 = vld [vmem:[%s1771_s2] sm:$0xff]   ;;  %v1305_v26 = vld [vmem:[%s1769_s3 + $0x38] sm:$0xff]   ;;  %v1307_v29 = vld [vmem:[%s1771_s2 + $0x8] sm:$0xff]  }
   0xa   :  { %1248 = vmatprep.subr.bf16.mxu1 %v1288_v10  ;;  %1260 = vmatprep.mubr.bf16.mxu1 %v1306_v25  ;;  %v1302_v27 = vld [vmem:[%s1770_s0] ss:$8 sps:$4 sm:$0xff]   ;;  %v1308_v28 = vld [vmem:[%s1770_s0 + $0x14] ss:$8 sps:$4 sm:$0xff]   ;;  %v1310_v31 = vld [vmem:[%s1770_s0 + $0x10] ss:$8 sps:$4 sm:$0xff]  }
   0xb   :  { %1169 = vmatpush3.bf16.msra.mxu0 %v1286_v8  ;;  %v1314_v30 = vld [vmem:[%s1771_s2 + $0x10] sm:$0xff]   ;;  %v1311_v32 = vld [vmem:[%s1770_s0 + $0x24] ss:$8 sps:$4 sm:$0xff]   ;;  %v1315_v33 = vld [vmem:[%s1771_s2 + $0x18] sm:$0xff]  }
   0xc   :  { %1170 = vmatprep.subr.bf16.mxu0 %v1287_v9  ;;  %v1322_v34 = vld [vmem:[%s1771_s2 + $0x20] sm:$0xff]   ;;  %v434_v36 = vld [vmem:[%s1772_s5 + $0x10] sm:$0xff]  ;;  %v433_v37 = vld [vmem:[%s1772_s5 + $0x8] sm:$0xff] }
   0xd   :  { %1249 = vmatpush3.bf16.msra.mxu1 %v1288_v10  ;;  %v432_v35 = vld [vmem:[%s1772_s5] sm:$0xff]  ;;  %460 = vperm.xlu1 %1278, %v434_v36   ;;  %v435_v38 = vld [vmem:[%s1772_s5 + $0x18] sm:$0xff]  ;;  %v1323_v42 = vld [vmem:[%s1771_s2 + $0x28] sm:$0xff]  }
   0xe   :  { %1250 = vmatprep.subr.bf16.mxu1 %v1291_v13  ;;  %450 = vperm.xlu0 %1277, %v432_v35   ;;  %v1313_v39 = vld [vmem:[%s1770_s0 + $0x20] ss:$8 sps:$4 sm:$0xff]   ;;  %v1316_v40 = vld [vmem:[%s1770_s0 + $0x34] ss:$8 sps:$4 sm:$0xff]   ;;  %v1318_v47 = vld [vmem:[%s1770_s0 + $0x30] ss:$8 sps:$4 sm:$0xff]  }
   0xf   :  { %1171 = vmatpush3.bf16.msra.mxu0 %v1289_v11  ;;  %v436_v41 = vld [vmem:[%s1772_s5 + $0x20] sm:$0xff]  ;;  %v437_v43 = vld [vmem:[%s1772_s5 + $0x28] sm:$0xff]  ;;  %v1330_v44 = vld [vmem:[%s1771_s2 + $0x30] sm:$0xff]  }
  0x10   :  { %1172 = vmatprep.subr.bf16.mxu0 %v1290_v12  ;;  %v438_v45 = vld [vmem:[%s1772_s5 + $0x30] sm:$0xff]  ;;  %v439_v46 = vld [vmem:[%s1772_s5 + $0x38] sm:$0xff]  ;;  %v1319_v48 = vld [vmem:[%s1770_s0 + $0x44] ss:$8 sps:$4 sm:$0xff]  }
  0x11   :  { %1251 = vmatpush3.bf16.msra.mxu1 %v1291_v13  ;;  %465 = vperm.xlu1 %1278, %v435_v38   ;;  %v440_v49 = vld [vmem:[%s1772_s5 + $0x40] sm:$0xff]  ;;  %v1331_v50 = vld [vmem:[%s1771_s2 + $0x38] sm:$0xff]   ;;  %v441_v51 = vld [vmem:[%s1772_s5 + $0x48] sm:$0xff] }
  0x12   :  { %1252 = vmatprep.subr.bf16.mxu1 %v1294_v15  ;;  %455 = vperm.xlu0 %1277, %v433_v37   ;;  %v442_v52 = vld [vmem:[%s1772_s5 + $0x50] sm:$0xff]  ;;  %v443_v53 = vld [vmem:[%s1772_s5 + $0x58] sm:$0xff]  ;;  %v1321_v54 = vld [vmem:[%s1770_s0 + $0x40] ss:$8 sps:$4 sm:$0xff]  }
  0x13   :  { %1173 = vmatpush3.bf16.msra.mxu0 %v1292_v14  ;;  %v1324_v55 = vld [vmem:[%s1770_s0 + $0x54] ss:$8 sps:$4 sm:$0xff]   ;;  %v444_v56 = vld [vmem:[%s1772_s5 + $0x60] sm:$0xff]  ;;  %v445_v57 = vld [vmem:[%s1772_s5 + $0x68] sm:$0xff] }
  0x14   :  { %1174 = vmatprep.subr.bf16.mxu0 %v1293_v16  ;;  %v446_v58 = vld [vmem:[%s1772_s5 + $0x70] sm:$0xff]  ;;  %v447_v59 = vld [vmem:[%s1772_s5 + $0x78] sm:$0xff]  ;;  %v1327_v61 = vld [vmem:[%s1770_s0 + $0x64] ss:$8 sps:$4 sm:$0xff]  }
  0x15   :  { %1253 = vmatpush3.bf16.msra.mxu1 %v1294_v15  ;;  %475 = vperm.xlu1 %1278, %v437_v43   ;;  %v1326_v60 = vld [vmem:[%s1770_s0 + $0x50] ss:$8 sps:$4 sm:$0xff]   ;;  %v1329_v62 = vld [vmem:[%s1770_s0 + $0x60] ss:$8 sps:$4 sm:$0xff]   ;;  %v1332_v63 = vld [vmem:[%s1770_s0 + $0x74] ss:$8 sps:$4 sm:$0xff]  }
  0x16   :  { %1254 = vmatprep.subr.bf16.mxu1 %v1297_v18  ;;  %470 = vperm.xlu0 %1277, %v436_v41   ;;  %v1334_v0 = vld [vmem:[%s1770_s0 + $0x70] ss:$8 sps:$4 sm:$0xff]   ;;  %v1598_v12 = vld [vmem:[%s1773_s4] ss:$0 sm:$0xff] }
  0x17   :  { %1175 = vmatpush3.bf16.msra.mxu0 %v1295_v17 }
  0x18   :  { %1176 = vmatprep.subr.bf16.mxu0 %v1296_v19 }
  0x19   :  { %1255 = vmatpush3.bf16.msra.mxu1 %v1297_v18  ;;  %485 = vperm.xlu1 %1278, %v439_v46  }
  0x1a   :  { %1256 = vmatprep.subr.bf16.mxu1 %v1300_v22  ;;  %480 = vperm.xlu0 %1277, %v438_v45  }
  0x1b   :  { %1177 = vmatpush3.bf16.msra.mxu0 %v1298_v20 }
  0x1c   :  { %1178 = vmatprep.subr.bf16.mxu0 %v1299_v21 }
  0x1d   :  { %1257 = vmatpush3.bf16.msra.mxu1 %v1300_v22  ;;  %495 = vperm.xlu1 %1278, %v441_v51  }
  0x1e   :  { %1258 = vmatprep.subr.bf16.mxu1 %v1305_v26  ;;  %490 = vperm.xlu0 %1277, %v440_v49  }
  0x1f   :  { %1179 = vmatpush3.bf16.msra.mxu0 %v1301_v24 }
  0x21   :  { %1259 = vmatpush3.bf16.msra.mxu1 %v1305_v26  ;;  %505 = vperm.xlu1 %1278, %v443_v53  }
  0x22   :  { %317 = vmatmul.mubr.bf16.vlgmr.msra.gmra.mrb[0].mxu0 %v1302_v27  ;;  %500 = vperm.xlu0 %1277, %v442_v52  }
  0x23   :  { %324 = vmatprep.mubr.bf16.mxu0 %v1308_v28 }
  0x24   :  { %1261 = vmatmul.mubr.bf16.vlgmr.msra.gmra.mrb[0].mxu1 %v1307_v29 }
  0x25   :  { %1264 = vmatprep.mubr.bf16.mxu1 %v1314_v30  ;;  %515 = vperm.xlu1 %1278, %v445_v57  }
  0x26   :  { %510 = vperm.xlu0 %1277, %v444_v56  }
  0x29   :  { %525 = vperm.xlu1 %1278, %v447_v59  }
  0x2a   :  { %325 = vmatmul.mubr.bf16.gmra.mrb[4].mxu0 %v1310_v31  ;;  %520 = vperm.xlu0 %1277, %v446_v58  }
  0x2b   :  { %332 = vmatprep.mubr.bf16.mxu0 %v1311_v32 }
  0x2c   :  { %1265 = vmatmul.mubr.bf16.gmra.mrb[4].mxu1 %v1315_v33 }
  0x2d   :  { %1268 = vmatprep.mubr.bf16.mxu1 %v1322_v34 }
  0x32   :  { %333 = vmatmul.mubr.bf16.gmra.mrb[8].mxu0 %v1313_v39 }
  0x33   :  { %340 = vmatprep.mubr.bf16.mxu0 %v1316_v40 }
  0x34   :  { %1269 = vmatmul.mubr.bf16.gmra.mrb[8].mxu1 %v1323_v42 }
  0x35   :  { %1272 = vmatprep.mubr.bf16.mxu1 %v1330_v44 }
  0x3a   :  { %341 = vmatmul.mubr.bf16.gmra.mrb[12].mxu0 %v1318_v47 }
  0x3b   :  { %348 = vmatprep.mubr.bf16.mxu0 %v1319_v48 }
  0x3c   :  { %1273 = vmatmul.mubr.bf16.gmra.mrb[12].mxu1 %v1331_v50 }
  0x42   :  { %349 = vmatmul.mubr.bf16.gmra.mrb[16].mxu0 %v1321_v54 }
  0x43   :  { %356 = vmatprep.mubr.bf16.mxu0 %v1324_v55 }
  0x4a   :  { %357 = vmatmul.mubr.bf16.gmra.mrb[20].mxu0 %v1326_v60 }
  0x4b   :  { %364 = vmatprep.mubr.bf16.mxu0 %v1327_v61 }
  0x52   :  { %365 = vmatmul.mubr.bf16.gmra.mrb[24].mxu0 %v1329_v62 }
  0x53   :  { %372 = vmatprep.mubr.bf16.mxu0 %v1332_v63 }
  0x5a   :  { %373 = vmatmul.mubr.bf16.gmra.mrb[28].mxu0 %v1334_v0 }
  0x8c   :  { %v461_v17 = vpop.permute.xlu1 %460 }
  0x8d   :  { %v451_v1 = vpop.permute.xlu0 %450 }
  0x90   :  { %v466_v36 = vpop.permute.xlu1 %465 }
  0x91   :  { %v456_v6 = vpop.permute.xlu0 %455 }
  0x94   :  { %v476_v60 = vpop.permute.xlu1 %475 }
  0x95   :  { %v471_v56 = vpop.permute.xlu0 %470 }
  0xf5   :  { %v1180_v2 = vpop.f32.mrb[0].mxu0 }
  0xf6   :  { %v1181_v3 = vpop.f32.mrb[1].mxu0 }
  0xf7   :  { %v1182_v4 = vadd.f32 %v1181_v3, %v1180_v2  ;;  %v1183_v5 = vpop.f32.mrb[2].mxu0  ;;  %v1262_v8 = vpop.f32.mrb[0].mxu1 }
  0xf8   :  { %v1184_v7 = vpop.f32.mrb[3].mxu0  ;;  %v706_v11 = vpop.f32.mrb[1].mxu1 }
  0xf9   :  { %v1185_v9 = vadd.f32 %v1184_v7, %v1183_v5  ;;  %v528_v10 = vmul.f32 %v1182_v4, %v451_v1  ;;  %v1263_v13 = vpop.f32.mrb[2].mxu1 }
  0xfa   :  { %v709_v16 = vpop.f32.mrb[3].mxu1 }
  0xfb   :  { %v529_v14 = vmul.f32 %v1185_v9, %v456_v6  ;;  %v769_v15 = vadd.f32 %v706_v11, %v528_v10  ;;  %v481_v11 = vpop.permute.xlu0 %480 }
  0xfd   :  { %v1601_v18 = vadd.f32 %v1598_v12, %v769_v15  ;;  %v770_v19 = vadd.f32 %v709_v16, %v529_v14  ;;  %v1186_v20 = vpop.f32.mrb[4].mxu0 }
  0xfe   :  { %v1187_v21 = vpop.f32.mrb[5].mxu0 }
  0xff   :  { %v824_v22 = vmul.f32 0.044715, %v1601_v18  ;;  %v1605_v23 = vadd.f32 %v1598_v12, %v770_v19  ;;  %v1188_v24 = vadd.f32 %v1187_v21, %v1186_v20  ;;  %v1189_v25 = vpop.f32.mrb[6].mxu0  ;;  %v1607_v27 = vpop.f32.mrb[4].mxu1 }
 0x100   :  { %v1190_v26 = vpop.f32.mrb[7].mxu0  ;;  %v722_v31 = vpop.f32.mrb[5].mxu1 }
 0x101   :  { %v840_v28 = vmul.f32 %v824_v22, %v1601_v18  ;;  %v825_v29 = vmul.f32 0.044715, %v1605_v23  ;;  %v530_v30 = vmul.f32 %v1188_v24, %v461_v17  ;;  %v1191_v32 = vadd.f32 %v1190_v26, %v1189_v25  ;;  %v1611_v33 = vpop.f32.mrb[6].mxu1 }
 0x102   :  { %v725_v38 = vpop.f32.mrb[7].mxu1 }
 0x103   :  { %v856_v34 = vmul.f32 %v840_v28, %v1601_v18  ;;  %v841_v35 = vmul.f32 %v825_v29, %v1605_v23  ;;  %v771_v37 = vadd.f32 %v1262_v8, %v530_v30  ;;  %v531_v39 = vmul.f32 %v1191_v32, %v466_v36 }
 0x105   :  { %v872_v40 = vadd.f32 %v856_v34, %v1601_v18  ;;  %v857_v41 = vmul.f32 %v841_v35, %v1605_v23  ;;  %v1618_v42 = vadd.f32 %v1598_v12, %v771_v37  ;;  %v1192_v43 = vpop.f32.mrb[8].mxu0  ;;  %v772_v44 = vadd.f32 %v1263_v13, %v531_v39 }
 0x106   :  { %v1193_v45 = vpop.f32.mrb[9].mxu0 }
 0x107   :  { %v888_v46 = vmul.f32 0.7978846, %v872_v40  ;;  %v873_v47 = vadd.f32 %v857_v41, %v1605_v23  ;;  %v826_v48 = vmul.f32 0.044715, %v1618_v42  ;;  %v1195_v49 = vpop.f32.mrb[10].mxu0  ;;  %v1623_v50 = vadd.f32 %v1598_v12, %v772_v44  ;;  %v1625_v53 = vpop.f32.mrb[8].mxu1 }
 0x108   :  { %v1194_v51 = vadd.f32 %v1193_v45, %v1192_v43  ;;  %v1196_v52 = vpop.f32.mrb[11].mxu0  ;;  %v1628_v58 = vpop.f32.mrb[9].mxu1  ;;  %v808_v40 = vmul.f32 0.5, %v1601_v18  ;;  %v809_v45 = vmul.f32 0.5, %v1605_v23 }
 0x109   :  { %1335 = vtanh.f32 %v888_v46  ;;  %v889_v54 = vmul.f32 0.7978846, %v873_v47  ;;  %v842_v55 = vmul.f32 %v826_v48, %v1618_v42  ;;  %v1197_v57 = vadd.f32 %v1196_v52, %v1195_v49  ;;  %v1631_v62 = vpop.f32.mrb[10].mxu1 }
 0x10a   :  { %v827_v59 = vmul.f32 0.044715, %v1623_v50  ;;  %v532_v61 = vmul.f32 %v1194_v51, %v471_v56  ;;  %v1634_v1 = vpop.f32.mrb[11].mxu1  ;;  %v491_v56 = vpop.permute.xlu0 %490 }
 0x10b   :  { %1337 = vtanh.f32 %v889_v54  ;;  %v858_v63 = vmul.f32 %v842_v55, %v1618_v42  ;;  %v533_v0 = vmul.f32 %v1197_v57, %v476_v60 }
 0x10c   :  { %v843_v2 = vmul.f32 %v827_v59, %v1623_v50  ;;  %v773_v3 = vadd.f32 %v722_v31, %v532_v61  ;;  %v486_v31 = vpop.permute.xlu1 %485 }
 0x10d   :  { %v874_v4 = vadd.f32 %v858_v63, %v1618_v42  ;;  %v774_v5 = vadd.f32 %v725_v38, %v533_v0  ;;  %v1198_v6 = vpop.f32.mrb[12].mxu0 }
 0x10e   :  { %v859_v7 = vmul.f32 %v843_v2, %v1623_v50  ;;  %v1640_v8 = vadd.f32 %v1598_v12, %v773_v3  ;;  %v1199_v9 = vpop.f32.mrb[13].mxu0 }
 0x10f   :  { %v890_v10 = vmul.f32 0.7978846, %v874_v4  ;;  %v1643_v13 = vadd.f32 %v1598_v12, %v774_v5  ;;  %v1200_v14 = vadd.f32 %v1199_v9, %v1198_v6  ;;  %v1201_v15 = vpop.f32.mrb[14].mxu0  ;;  %v1647_v20 = vpop.f32.mrb[12].mxu1 }
 0x110   :  { %v875_v16 = vadd.f32 %v859_v7, %v1623_v50  ;;  %v828_v17 = vmul.f32 0.044715, %v1640_v8  ;;  %v1202_v19 = vpop.f32.mrb[15].mxu0  ;;  %v1650_v24 = vpop.f32.mrb[13].mxu1 }
 0x111   :  { %1339 = vtanh.f32 %v890_v10  ;;  %v829_v21 = vmul.f32 0.044715, %v1643_v13  ;;  %v534_v22 = vmul.f32 %v1200_v14, %v481_v11  ;;  %v1203_v28 = vadd.f32 %v1202_v19, %v1201_v15  ;;  %v1653_v29 = vpop.f32.mrb[14].mxu1  ;;  %v496_v2 = vpop.permute.xlu1 %495 }
 0x112   :  { %v891_v25 = vmul.f32 0.7978846, %v875_v16  ;;  %v844_v26 = vmul.f32 %v828_v17, %v1640_v8  ;;  %v1657_v35 = vpop.f32.mrb[15].mxu1  ;;  %v810_v19 = vmul.f32 0.5, %v1618_v42 }
 0x113   :  { %v1336_v30 = vpop.eup %1335  ;;  %v845_v32 = vmul.f32 %v829_v21, %v1643_v13  ;;  %v775_v34 = vadd.f32 %v1607_v27, %v534_v22  ;;  %v535_v38 = vmul.f32 %v1203_v28, %v486_v31  ;;  %v811_v22 = vmul.f32 0.5, %v1623_v50 }
 0x114   :  { %v920_v36 = vadd.f32 1.0, %v1336_v30  ;;  %1341 = vtanh.f32 %v891_v25  ;;  %v860_v37 = vmul.f32 %v844_v26, %v1640_v8 }
 0x115   :  { %v1338_v39 = vpop.eup %1337  ;;  %v861_v41 = vmul.f32 %v845_v32, %v1643_v13  ;;  %v1663_v43 = vadd.f32 %v1598_v12, %v775_v34  ;;  %v1204_v44 = vpop.f32.mrb[16].mxu0  ;;  %v776_v47 = vadd.f32 %v1611_v33, %v535_v38 }
 0x116   :  { %v921_v46 = vadd.f32 1.0, %v1338_v39  ;;  %v876_v27 = vadd.f32 %v860_v37, %v1640_v8  ;;  %v1205_v48 = vpop.f32.mrb[17].mxu0  ;;  %v936_v54 = vmul.f32 %v920_v36, %v808_v40  ;;  %v501_v37 = vpop.permute.xlu0 %500 }
 0x117   :  { %v877_v49 = vadd.f32 %v861_v41, %v1643_v13  ;;  %v830_v51 = vmul.f32 0.044715, %v1663_v43  ;;  %v1206_v52 = vadd.f32 %v1205_v48, %v1204_v44  ;;  %v1207_v18 = vpop.f32.mrb[18].mxu0  ;;  %v1671_v59 = vadd.f32 %v1598_v12, %v776_v47 }
 0x118   :  { %v937_v55 = vmul.f32 %v921_v46, %v809_v45  ;;  %v892_v57 = vmul.f32 0.7978846, %v876_v27  ;;  %v1208_v23 = vpop.f32.mrb[19].mxu0  ;;  %v506_v27 = vpop.permute.xlu1 %505 }
 0x119   :  { %v893_v60 = vmul.f32 0.7978846, %v877_v49  ;;  %v846_v61 = vmul.f32 %v830_v51, %v1663_v43  ;;  %v1209_v63 = vadd.f32 %v1208_v23, %v1207_v18  ;;  %v536_v33 = vmul.f32 %v1206_v52, %v491_v56 }
 0x11a   :  { %v1120_v0 = vpack.c.bf16 %v937_v55, %v936_v54  ;;  %1343 = vtanh.f32 %v892_v57  ;;  %v831_v3 = vmul.f32 0.044715, %v1671_v59  ;;  %v812_v51 = vmul.f32 0.5, %v1640_v8 }
 0x11b   :  { %v1340_v4 = vpop.eup %1339  ;;  %1345 = vtanh.f32 %v893_v60  ;;  %v862_v5 = vmul.f32 %v846_v61, %v1663_v43  ;;  %v777_v6 = vadd.f32 %v1628_v58, %v536_v33  ;;  %v537_v7 = vmul.f32 %v1209_v63, %v496_v2 }
 0x11c   :  { %1121 = vst [vmem:[%s1774_s6] sm:$0xff] %v1120_v0   ;;  %v847_v9 = vmul.f32 %v831_v3, %v1671_v59  ;;  %v922_v10 = vadd.f32 1.0, %v1340_v4  ;;  %v813_v56 = vmul.f32 0.5, %v1643_v13  ;;  %v511_v3 = vpop.permute.xlu0 %510 }
 0x11d   :  { %v878_v11 = vadd.f32 %v862_v5, %v1663_v43  ;;  %v1683_v14 = vadd.f32 %v1598_v12, %v777_v6  ;;  %v778_v15 = vadd.f32 %v1634_v1, %v537_v7  ;;  %v1210_v16 = vpop.f32.mrb[20].mxu0 }
 0x11e   :  { %v1342_v17 = vpop.eup %1341  ;;  %v863_v58 = vmul.f32 %v847_v9, %v1671_v59  ;;  %v1211_v21 = vpop.f32.mrb[21].mxu0  ;;  %v938_v34 = vmul.f32 %v922_v10, %v810_v19 }
 0x11f   :  { %v923_v25 = vadd.f32 1.0, %v1342_v17  ;;  %v894_v26 = vmul.f32 0.7978846, %v878_v11  ;;  %v832_v28 = vmul.f32 0.044715, %v1683_v14  ;;  %v1692_v31 = vadd.f32 %v1598_v12, %v778_v15  ;;  %v1213_v1 = vpop.f32.mrb[22].mxu0  ;;  %v516_v11 = vpop.permute.xlu1 %515 }
 0x120   :  { %v879_v30 = vadd.f32 %v863_v58, %v1671_v59  ;;  %v1212_v32 = vadd.f32 %v1211_v21, %v1210_v16  ;;  %v1214_v38 = vpop.f32.mrb[23].mxu0 }
 0x121   :  { %v939_v36 = vmul.f32 %v923_v25, %v811_v22  ;;  %1347 = vtanh.f32 %v894_v26  ;;  %v848_v42 = vmul.f32 %v832_v28, %v1683_v14  ;;  %v833_v50 = vmul.f32 0.044715, %v1692_v31 }
 0x122   :  { %v895_v39 = vmul.f32 0.7978846, %v879_v30  ;;  %v538_v40 = vmul.f32 %v1212_v32, %v501_v37  ;;  %v1215_v45 = vadd.f32 %v1214_v38, %v1213_v1 }
 0x123   :  { %v1125_v41 = vpack.c.bf16 %v939_v36, %v938_v34  ;;  %v864_v44 = vmul.f32 %v848_v42, %v1683_v14  ;;  %v849_v47 = vmul.f32 %v833_v50, %v1692_v31  ;;  %v815_v36 = vmul.f32 0.5, %v1671_v59 }
 0x124   :  { %v1344_v46 = vpop.eup %1343  ;;  %1349 = vtanh.f32 %v895_v39  ;;  %v779_v48 = vadd.f32 %v1625_v53, %v538_v40  ;;  %v539_v54 = vmul.f32 %v1215_v45, %v506_v27 }
 0x125   :  { %v1346_v49 = vpop.eup %1345  ;;  %1157 = vst [vmem:[%s1774_s6 + $0x8] sm:$0xff] %v1125_v41   ;;  %v924_v52 = vadd.f32 1.0, %v1344_v46  ;;  %v880_v18 = vadd.f32 %v864_v44, %v1683_v14  ;;  %v1216_v55 = vpop.f32.mrb[24].mxu0  ;;  %v865_v23 = vmul.f32 %v849_v47, %v1692_v31 }
 0x126   :  { %v925_v57 = vadd.f32 1.0, %v1346_v49  ;;  %v1707_v60 = vadd.f32 %v1598_v12, %v779_v48  ;;  %v1217_v53 = vpop.f32.mrb[25].mxu0  ;;  %v780_v63 = vadd.f32 %v1631_v62, %v539_v54  ;;  %v526_v47 = vpop.permute.xlu1 %525 }
 0x127   :  { %v896_v61 = vmul.f32 0.7978846, %v880_v18  ;;  %v1218_v33 = vadd.f32 %v1217_v53, %v1216_v55  ;;  %v1219_v0 = vpop.f32.mrb[26].mxu0  ;;  %v940_v8 = vmul.f32 %v924_v52, %v812_v51  ;;  %v881_v4 = vadd.f32 %v865_v23, %v1692_v31 }
 0x128   :  { %v941_v2 = vmul.f32 %v925_v57, %v813_v56  ;;  %v834_v5 = vmul.f32 0.044715, %v1707_v60  ;;  %v1220_v13 = vpop.f32.mrb[27].mxu0  ;;  %v1713_v6 = vadd.f32 %v1598_v12, %v780_v63 }
 0x129   :  { %1351 = vtanh.f32 %v896_v61  ;;  %v1221_v7 = vadd.f32 %v1220_v13, %v1219_v0  ;;  %v540_v9 = vmul.f32 %v1218_v33, %v511_v3  ;;  %v897_v15 = vmul.f32 0.7978846, %v881_v4 }
 0x12a   :  { %v1130_v10 = vpack.c.bf16 %v941_v2, %v940_v8  ;;  %v850_v62 = vmul.f32 %v834_v5, %v1707_v60  ;;  %v835_v17 = vmul.f32 0.044715, %v1713_v6  ;;  %v816_v33 = vmul.f32 0.5, %v1683_v14 }
 0x12b   :  { %v1348_v16 = vpop.eup %1347  ;;  %v781_v19 = vadd.f32 %v1650_v24, %v540_v9  ;;  %v541_v58 = vmul.f32 %v1221_v7, %v516_v11  ;;  %1353 = vtanh.f32 %v897_v15  ;;  %v814_v24 = vmul.f32 0.5, %v1663_v43  ;;  %v521_v43 = vpop.permute.xlu0 %520 }
 0x12c   :  { %1158 = vst [vmem:[%s1774_s6 + $0x10] sm:$0xff] %v1130_v10   ;;  %v926_v21 = vadd.f32 1.0, %v1348_v16  ;;  %v866_v22 = vmul.f32 %v850_v62, %v1707_v60  ;;  %v851_v25 = vmul.f32 %v835_v17, %v1713_v6  ;;  %v817_v2 = vmul.f32 0.5, %v1692_v31 }
 0x12d   :  { %v1724_v26 = vadd.f32 %v1598_v12, %v781_v19  ;;  %v782_v28 = vadd.f32 %v1657_v35, %v541_v58  ;;  %v1222_v30 = vpop.f32.mrb[28].mxu0 }
 0x12e   :  { %v1350_v32 = vpop.eup %1349  ;;  %v882_v1 = vadd.f32 %v866_v22, %v1707_v60  ;;  %v1223_v34 = vpop.f32.mrb[29].mxu0  ;;  %v867_v42 = vmul.f32 %v851_v25, %v1713_v6  ;;  %v942_v50 = vmul.f32 %v926_v21, %v814_v24  ;;  %v818_v21 = vmul.f32 0.5, %v1707_v60 }
 0x12f   :  { %v927_v37 = vadd.f32 1.0, %v1350_v32  ;;  %v836_v38 = vmul.f32 0.044715, %v1724_v26  ;;  %v1225_v39 = vpop.f32.mrb[30].mxu0  ;;  %v1733_v41 = vadd.f32 %v1598_v12, %v782_v28  ;;  %v1224_v35 = vadd.f32 %v1223_v34, %v1222_v30 }
 0x130   :  { %v898_v40 = vmul.f32 0.7978846, %v882_v1  ;;  %v1226_v44 = vpop.f32.mrb[31].mxu0  ;;  %v883_v46 = vadd.f32 %v867_v42, %v1713_v6  ;;  %v819_v22 = vmul.f32 0.5, %v1713_v6  ;;  %v820_v42 = vmul.f32 0.5, %v1724_v26 }
 0x131   :  { %v943_v45 = vmul.f32 %v927_v37, %v815_v36  ;;  %v852_v27 = vmul.f32 %v836_v38, %v1724_v26  ;;  %v1227_v59 = vadd.f32 %v1226_v44, %v1225_v39  ;;  %v837_v48 = vmul.f32 0.044715, %v1733_v41 }
 0x132   :  { %1355 = vtanh.f32 %v898_v40  ;;  %v542_v49 = vmul.f32 %v1224_v35, %v521_v43  ;;  %v899_v18 = vmul.f32 0.7978846, %v883_v46  ;;  %v821_v60 = vmul.f32 0.5, %v1733_v41 }
 0x133   :  { %v1352_v51 = vpop.eup %1351  ;;  %v1135_v52 = vpack.c.bf16 %v943_v45, %v942_v50  ;;  %v868_v54 = vmul.f32 %v852_v27, %v1724_v26  ;;  %v543_v55 = vmul.f32 %v1227_v59, %v526_v47  ;;  %v853_v56 = vmul.f32 %v837_v48, %v1733_v41 }
 0x134   :  { %v783_v57 = vadd.f32 %v1647_v20, %v542_v49  ;;  %v928_v23 = vadd.f32 1.0, %v1352_v51  ;;  %1357 = vtanh.f32 %v899_v18 }
 0x135   :  { %1159 = vst [vmem:[%s1774_s6 + $0x18] sm:$0xff] %v1135_v52   ;;  %v884_v53 = vadd.f32 %v868_v54, %v1724_v26  ;;  %v784_v61 = vadd.f32 %v1653_v29, %v543_v55  ;;  %v1354_v63 = vpop.eup %1353  ;;  %v869_v0 = vmul.f32 %v853_v56, %v1733_v41 }
 0x136   :  { %v806_v8 = vadd.f32 %v1598_v12, %v783_v57  ;;  %v929_v20 = vadd.f32 1.0, %v1354_v63  ;;  %v944_v7 = vmul.f32 %v928_v23, %v816_v33 }
 0x137   :  { %v900_v3 = vmul.f32 0.7978846, %v884_v53  ;;  %v807_v4 = vadd.f32 %v1598_v12, %v784_v61  ;;  %v885_v5 = vadd.f32 %v869_v0, %v1733_v41 }
 0x138   :  { %v838_v13 = vmul.f32 0.044715, %v806_v8  ;;  %v945_v9 = vmul.f32 %v929_v20, %v817_v2  ;;  %v822_v45 = vmul.f32 0.5, %v806_v8 }
 0x139   :  { %1359 = vtanh.f32 %v900_v3  ;;  %v839_v29 = vmul.f32 0.044715, %v807_v4  ;;  %v901_v10 = vmul.f32 0.7978846, %v885_v5  ;;  %v823_v43 = vmul.f32 0.5, %v807_v4 }
 0x13a   :  { %v854_v11 = vmul.f32 %v838_v13, %v806_v8  ;;  %v1140_v14 = vpack.c.bf16 %v945_v9, %v944_v7 }
 0x13b   :  { %v855_v15 = vmul.f32 %v839_v29, %v807_v4  ;;  %1361 = vtanh.f32 %v901_v10 }
 0x13c   :  { %v1356_v62 = vpop.eup %1355  ;;  %v870_v16 = vmul.f32 %v854_v11, %v806_v8  ;;  %1160 = vst [vmem:[%s1774_s6 + $0x20] sm:$0xff] %v1140_v14  }
 0x13d   :  { %v871_v31 = vmul.f32 %v855_v15, %v807_v4  ;;  %v930_v12 = vadd.f32 1.0, %v1356_v62 }
 0x13e   :  { %v886_v17 = vadd.f32 %v870_v16, %v806_v8  ;;  %v1358_v19 = vpop.eup %1357 }
 0x13f   :  { %v887_v58 = vadd.f32 %v871_v31, %v807_v4  ;;  %v931_v25 = vadd.f32 1.0, %v1358_v19  ;;  %v946_v32 = vmul.f32 %v930_v12, %v818_v21 }
 0x140   :  { %v902_v28 = vmul.f32 0.7978846, %v886_v17 }
 0x141   :  { %v903_v30 = vmul.f32 0.7978846, %v887_v58  ;;  %v947_v24 = vmul.f32 %v931_v25, %v819_v22 }
 0x142   :  { %1363 = vtanh.f32 %v902_v28 }
 0x143   :  { %v1360_v1 = vpop.eup %1359  ;;  %1365 = vtanh.f32 %v903_v30  ;;  %v1145_v34 = vpack.c.bf16 %v947_v24, %v946_v32 }
 0x144   :  { %v932_v36 = vadd.f32 1.0, %v1360_v1 }
 0x145   :  { %v1362_v37 = vpop.eup %1361  ;;  %1161 = vst [vmem:[%s1774_s6 + $0x28] sm:$0xff] %v1145_v34  }
 0x146   :  { %v933_v6 = vadd.f32 1.0, %v1362_v37  ;;  %v948_v38 = vmul.f32 %v932_v36, %v820_v42 }
 0x148   :  { %v949_v39 = vmul.f32 %v933_v6, %v821_v60 }
 0x14a   :  { %v1150_v50 = vpack.c.bf16 %v949_v39, %v948_v38 }
 0x14c   :  { %v1364_v40 = vpop.eup %1363  ;;  %1162 = vst [vmem:[%s1774_s6 + $0x30] sm:$0xff] %v1150_v50  }
 0x14d   :  { %v1366_v35 = vpop.eup %1365  ;;  %v934_v44 = vadd.f32 1.0, %v1364_v40 }
 0x14e   :  { %v935_v46 = vadd.f32 1.0, %v1366_v35 }
 0x14f   :  { %v950_v27 = vmul.f32 %v934_v44, %v822_v45 }
 0x150   :  { %v951_v59 = vmul.f32 %v935_v46, %v823_v43 }
 0x152   :  { %v1155_v47 = vpack.c.bf16 %v951_v59, %v950_v27 }
 0x154   :  { %1163 = vst [vmem:[%s1774_s6 + $0x38] sm:$0xff] %v1155_v47  }

// kernel: gmmnet_u_forward.18
= control target key start
LH: loop header
LB: loop body
LE: loop exit
PB: predicated region body
PF: predicated region fallthrough
CT: control target
= control target key end

     0   :  { %v1773_v0 = vmov 0   ;;  %s2520_s0 = inlined_call_operand.vmem [shape: f32[256,3], index: 0, kind: input, shape index: {}]   ;;  %s2521_s2 = inlined_call_operand.vmem [shape: bf16[128,384], index: 2, kind: input, shape index: {}]   ;;  %s2522_s1 = inlined_call_operand.vmem [shape: bf16[256,128], index: 1, kind: input, shape index: {}]   ;;  %s2523_s3 = inlined_call_operand.vmem [shape: bf16[256,128], index: 3, kind: output, shape index: {}]  }
   0x1   :  { %1720 = vset.pattern.permute.xlu1 %v1773_v0  ;;  %1719 = vset.pattern.permute.xlu0 %v1773_v0  ;;  %v1801_v1 = vld [vmem:[%s2520_s0 + $0x10] sm:$0xff]  ;;  %v1806_v2 = vld [vmem:[%s2520_s0] sm:$0xff]  ;;  %v1819_v5 = vld [vmem:[%s2520_s0 + $0x18] sm:$0xff] }
   0x2   :  { %701 = vperm.xlu1 %1720, %v1801_v1   ;;  %691 = vperm.xlu0 %1719, %v1806_v2   ;;  %v1725_v3 = vld [vmem:[%s2521_s2 + $0x4] ss:$12 sps:$4 sm:$0xff]   ;;  %v1727_v4 = vld [vmem:[%s2521_s2] ss:$12 sps:$4 sm:$0xff]   ;;  %v1728_v7 = vld [vmem:[%s2521_s2 + $0x1c] ss:$12 sps:$4 sm:$0xff]  }
   0x3   :  { %v1824_v6 = vld [vmem:[%s2520_s0 + $0x8] sm:$0xff]  ;;  %335 = vmatprep.mubr.bf16.mxu0 %v1773_v0  ;;  %455 = vmatprep.mubr.bf16.mxu1 %v1773_v0  ;;  %v1730_v8 = vld [vmem:[%s2521_s2 + $0x18] ss:$12 sps:$4 sm:$0xff]   ;;  %v1731_v11 = vld [vmem:[%s2521_s2 + $0x34] ss:$12 sps:$4 sm:$0xff]  }
   0x4   :  { %303 = vmatprep.subr.bf16.mxu0 %v1725_v3  ;;  %1700 = vmatprep.subr.bf16.mxu1 %v1725_v3  ;;  %v1839_v9 = vld [vmem:[%s2520_s0 + $0x28] sm:$0xff]  ;;  %v1844_v10 = vld [vmem:[%s2520_s0 + $0x20] sm:$0xff]  ;;  %v1733_v12 = vld [vmem:[%s2521_s2 + $0x30] ss:$12 sps:$4 sm:$0xff]  }
   0x5   :  { %304 = vmatpush1.bf16.msra.mxu0 %v1727_v4  ;;  %1708 = vmatpush1.bf16.msra.mxu1 %v1727_v4  ;;  %v1857_v13 = vld [vmem:[%s2520_s0 + $0x38] sm:$0xff]  ;;  %v1862_v14 = vld [vmem:[%s2520_s0 + $0x30] sm:$0xff]  ;;  %v1875_v17 = vld [vmem:[%s2520_s0 + $0x48] sm:$0xff] }
   0x6   :  { %706 = vperm.xlu1 %1720, %v1819_v5   ;;  %696 = vperm.xlu0 %1719, %v1824_v6   ;;  %v1734_v15 = vld [vmem:[%s2521_s2 + $0x4c] ss:$12 sps:$4 sm:$0xff]   ;;  %v1736_v16 = vld [vmem:[%s2521_s2 + $0x48] ss:$12 sps:$4 sm:$0xff]   ;;  %v1880_v18 = vld [vmem:[%s2520_s0 + $0x40] sm:$0xff] }
   0x7   :  { %305 = vmatprep.subr.bf16.mxu0 %v1728_v7  ;;  %1701 = vmatprep.subr.bf16.mxu1 %v1728_v7  ;;  %v1737_v19 = vld [vmem:[%s2521_s2 + $0x64] ss:$12 sps:$4 sm:$0xff]   ;;  %v1739_v20 = vld [vmem:[%s2521_s2 + $0x60] ss:$12 sps:$4 sm:$0xff]   ;;  %v1891_v21 = vld [vmem:[%s2520_s0 + $0x58] sm:$0xff]  ;;  %v1774_v7 = vmov 1  }
   0x8   :  { %v1898_v22 = vld [vmem:[%s2520_s0 + $0x50] sm:$0xff]  ;;  %v1740_v23 = vld [vmem:[%s2521_s2 + $0x7c] ss:$12 sps:$4 sm:$0xff]   ;;  %v1742_v24 = vld [vmem:[%s2521_s2 + $0x78] ss:$12 sps:$4 sm:$0xff]  }
   0x9   :  { %306 = vmatpush1.bf16.msra.mxu0 %v1730_v8  ;;  %1709 = vmatpush1.bf16.msra.mxu1 %v1730_v8  ;;  %v1911_v25 = vld [vmem:[%s2520_s0 + $0x68] sm:$0xff]  ;;  %v1916_v26 = vld [vmem:[%s2520_s0 + $0x60] sm:$0xff]  ;;  %v1745_v28 = vld [vmem:[%s2521_s2 + $0x90] ss:$12 sps:$4 sm:$0xff]  }
   0xa   :  { %716 = vperm.xlu1 %1720, %v1839_v9   ;;  %711 = vperm.xlu0 %1719, %v1844_v10   ;;  %v1743_v27 = vld [vmem:[%s2521_s2 + $0x94] ss:$12 sps:$4 sm:$0xff]   ;;  %v1929_v29 = vld [vmem:[%s2520_s0 + $0x78] sm:$0xff]  ;;  %v1947_v33 = vld [vmem:[%s2520_s0 + $0x88] sm:$0xff] }
   0xb   :  { %307 = vmatprep.subr.bf16.mxu0 %v1731_v11  ;;  %1702 = vmatprep.subr.bf16.mxu1 %v1731_v11  ;;  %v1934_v30 = vld [vmem:[%s2520_s0 + $0x70] sm:$0xff]  ;;  %v1746_v31 = vld [vmem:[%s2521_s2 + $0xac] ss:$12 sps:$4 sm:$0xff]   ;;  %v1952_v34 = vld [vmem:[%s2520_s0 + $0x80] sm:$0xff] }
   0xc   :  { %v1748_v32 = vld [vmem:[%s2521_s2 + $0xa8] ss:$12 sps:$4 sm:$0xff]   ;;  %v1957_v35 = vld [vmem:[%s2522_s1] sm:$0xff]   ;;  %v1970_v38 = vld [vmem:[%s2520_s0 + $0x98] sm:$0xff] }
   0xd   :  { %308 = vmatpush1.bf16.msra.mxu0 %v1733_v12  ;;  %1710 = vmatpush1.bf16.msra.mxu1 %v1733_v12  ;;  %v1751_v36 = vld [vmem:[%s2521_s2 + $0x8] ss:$12 sps:$4 sm:$0xff]   ;;  %v1965_v37 = vld [vmem:[%s2522_s1 + $0x60] sm:$0xff]   ;;  %v2014_v46 = vld [vmem:[%s2520_s0 + $0xb8] sm:$0xff] }
   0xe   :  { %726 = vperm.xlu1 %1720, %v1857_v13   ;;  %721 = vperm.xlu0 %1719, %v1862_v14   ;;  %v1977_v39 = vld [vmem:[%s2520_s0 + $0x90] sm:$0xff]  ;;  %v1752_v40 = vld [vmem:[%s2521_s2 + $0x20] ss:$12 sps:$4 sm:$0xff]   ;;  %v1755_v44 = vld [vmem:[%s2521_s2 + $0x38] ss:$12 sps:$4 sm:$0xff]  }
   0xf   :  { %309 = vmatprep.subr.bf16.mxu0 %v1734_v15  ;;  %1703 = vmatprep.subr.bf16.mxu1 %v1734_v15  ;;  %v1987_v41 = vld [vmem:[%s2520_s0 + $0xa8] sm:$0xff]  ;;  %v1992_v42 = vld [vmem:[%s2520_s0 + $0xa0] sm:$0xff]  ;;  %v2021_v47 = vld [vmem:[%s2520_s0 + $0xb0] sm:$0xff] }
  0x10   :  { %v2000_v43 = vld [vmem:[%s2522_s1 + $0x8] sm:$0xff]   ;;  %v1756_v48 = vld [vmem:[%s2521_s2 + $0x50] ss:$12 sps:$4 sm:$0xff]   ;;  %v2039_v50 = vld [vmem:[%s2520_s0 + $0xc0] sm:$0xff] }
  0x11   :  { %310 = vmatpush1.bf16.msra.mxu0 %v1736_v16  ;;  %1711 = vmatpush1.bf16.msra.mxu1 %v1736_v16  ;;  %v2009_v45 = vld [vmem:[%s2522_s1 + $0x68] sm:$0xff]   ;;  %v1757_v52 = vld [vmem:[%s2522_s1 + $0x10] sm:$0xff]   ;;  %v2058_v54 = vld [vmem:[%s2520_s0 + $0xd8] sm:$0xff] }
  0x12   :  { %736 = vperm.xlu1 %1720, %v1875_v17   ;;  %731 = vperm.xlu0 %1719, %v1880_v18   ;;  %v2034_v49 = vld [vmem:[%s2520_s0 + $0xc8] sm:$0xff]  ;;  %v2051_v53 = vld [vmem:[%s2522_s1 + $0x70] sm:$0xff]   ;;  %v2080_v58 = vld [vmem:[%s2520_s0 + $0xe0] sm:$0xff] }
  0x13   :  { %311 = vmatprep.subr.bf16.mxu0 %v1737_v19  ;;  %1704 = vmatprep.subr.bf16.mxu1 %v1737_v19  ;;  %v1759_v51 = vld [vmem:[%s2521_s2 + $0x68] ss:$12 sps:$4 sm:$0xff]   ;;  %v1760_v56 = vld [vmem:[%s2521_s2 + $0x80] ss:$12 sps:$4 sm:$0xff]   ;;  %v1763_v59 = vld [vmem:[%s2521_s2 + $0x98] ss:$12 sps:$4 sm:$0xff]  }
  0x14   :  { %v2063_v55 = vld [vmem:[%s2520_s0 + $0xd0] sm:$0xff]  ;;  %v2075_v57 = vld [vmem:[%s2520_s0 + $0xe8] sm:$0xff]  ;;  %v1761_v60 = vld [vmem:[%s2522_s1 + $0x18] sm:$0xff]  }
  0x15   :  { %312 = vmatpush1.bf16.msra.mxu0 %v1739_v20  ;;  %1712 = vmatpush1.bf16.msra.mxu1 %v1739_v20  ;;  %v2092_v61 = vld [vmem:[%s2522_s1 + $0x78] sm:$0xff]   ;;  %v2104_v63 = vld [vmem:[%s2520_s0 + $0xf0] sm:$0xff]  ;;  %v1765_v4 = vld [vmem:[%s2522_s1 + $0x20] sm:$0xff]  }
  0x16   :  { %746 = vperm.xlu1 %1720, %v1891_v21   ;;  %741 = vperm.xlu0 %1719, %v1898_v22   ;;  %v2099_v62 = vld [vmem:[%s2520_s0 + $0xf8] sm:$0xff]  ;;  %v1766_v8 = vld [vmem:[%s2522_s1 + $0x28] sm:$0xff]   ;;  %v1767_v11 = vld [vmem:[%s2522_s1 + $0x30] sm:$0xff]  }
  0x17   :  { %313 = vmatprep.subr.bf16.mxu0 %v1740_v23  ;;  %1705 = vmatprep.subr.bf16.mxu1 %v1740_v23  ;;  %v1764_v3 = vld [vmem:[%s2521_s2 + $0xb0] ss:$12 sps:$4 sm:$0xff]   ;;  %v1769_v15 = vld [vmem:[%s2522_s1 + $0x40] sm:$0xff]   ;;  %v1770_v16 = vld [vmem:[%s2522_s1 + $0x48] sm:$0xff]  }
  0x18   :  { %v1768_v12 = vld [vmem:[%s2522_s1 + $0x38] sm:$0xff]   ;;  %v1771_v19 = vld [vmem:[%s2522_s1 + $0x50] sm:$0xff]  }
  0x19   :  { %314 = vmatpush1.bf16.msra.mxu0 %v1742_v24  ;;  %1713 = vmatpush1.bf16.msra.mxu1 %v1742_v24  ;;  %v1772_v20 = vld [vmem:[%s2522_s1 + $0x58] sm:$0xff]   ;;  %v1775_v24 = vmov 2  }
  0x1a   :  { %756 = vperm.xlu1 %1720, %v1911_v25   ;;  %751 = vperm.xlu0 %1719, %v1916_v26  }
  0x1b   :  { %315 = vmatprep.subr.bf16.mxu0 %v1743_v27  ;;  %1706 = vmatprep.subr.bf16.mxu1 %v1743_v27 }
  0x1d   :  { %316 = vmatpush1.bf16.msra.mxu0 %v1745_v28  ;;  %1714 = vmatpush1.bf16.msra.mxu1 %v1745_v28 }
  0x1e   :  { %766 = vperm.xlu1 %1720, %v1929_v29   ;;  %761 = vperm.xlu0 %1719, %v1934_v30  }
  0x1f   :  { %317 = vmatprep.subr.bf16.mxu0 %v1746_v31  ;;  %1707 = vmatprep.subr.bf16.mxu1 %v1746_v31 }
  0x21   :  { %318 = vmatpush1.bf16.msra.mxu0 %v1748_v32  ;;  %1715 = vmatpush1.bf16.msra.mxu1 %v1748_v32 }
  0x22   :  { %776 = vperm.xlu1 %1720, %v1947_v33   ;;  %771 = vperm.xlu0 %1719, %v1952_v34  }
  0x23   :  { %1652 = vmatprep.subr.bf16.mxu1 %v1751_v36 }
  0x24   :  { %336 = vmatmul.mubr.bf16.vlgmr.msra.gmra.mrb[0].mxu0 %v1957_v35  ;;  %456 = vmatmul.mubr.bf16.vlgmr.msra.gmra.mrb[0].mxu1 %v1965_v37 }
  0x25   :  { %1653 = vmatpush3.bf16.msra.mxu1 %v1751_v36  ;;  %345 = vmatprep.mubr.bf16.mxu0 %v1773_v0 }
  0x26   :  { %786 = vperm.xlu1 %1720, %v1970_v38   ;;  %781 = vperm.xlu0 %1719, %v1977_v39  }
  0x27   :  { %1654 = vmatprep.subr.bf16.mxu1 %v1752_v40  ;;  %465 = vmatprep.mubr.bf16.mxu1 %v1773_v0 }
  0x29   :  { %1655 = vmatpush3.bf16.msra.mxu1 %v1752_v40 }
  0x2a   :  { %796 = vperm.xlu1 %1720, %v1987_v41   ;;  %791 = vperm.xlu0 %1719, %v1992_v42  }
  0x2b   :  { %1656 = vmatprep.subr.bf16.mxu1 %v1755_v44 }
  0x2c   :  { %346 = vmatmul.mubr.bf16.gmra.mrb[4].mxu0 %v2000_v43  ;;  %466 = vmatmul.mubr.bf16.gmra.mrb[4].mxu1 %v2009_v45 }
  0x2d   :  { %1657 = vmatpush3.bf16.msra.mxu1 %v1755_v44  ;;  %355 = vmatprep.mubr.bf16.mxu0 %v1773_v0 }
  0x2e   :  { %806 = vperm.xlu1 %1720, %v2014_v46   ;;  %801 = vperm.xlu0 %1719, %v2021_v47  }
  0x2f   :  { %1658 = vmatprep.subr.bf16.mxu1 %v1756_v48  ;;  %475 = vmatprep.mubr.bf16.mxu1 %v1773_v0 }
  0x31   :  { %1659 = vmatpush3.bf16.msra.mxu1 %v1756_v48 }
  0x32   :  { %816 = vperm.xlu1 %1720, %v2034_v49   ;;  %811 = vperm.xlu0 %1719, %v2039_v50  }
  0x33   :  { %1660 = vmatprep.subr.bf16.mxu1 %v1759_v51 }
  0x34   :  { %356 = vmatmul.mubr.bf16.gmra.mrb[8].mxu0 %v1757_v52  ;;  %476 = vmatmul.mubr.bf16.gmra.mrb[8].mxu1 %v2051_v53 }
  0x35   :  { %1661 = vmatpush3.bf16.msra.mxu1 %v1759_v51  ;;  %365 = vmatprep.mubr.bf16.mxu0 %v1773_v0 }
  0x36   :  { %826 = vperm.xlu1 %1720, %v2058_v54   ;;  %821 = vperm.xlu0 %1719, %v2063_v55  }
  0x37   :  { %1662 = vmatprep.subr.bf16.mxu1 %v1760_v56  ;;  %485 = vmatprep.mubr.bf16.mxu1 %v1773_v0 }
  0x39   :  { %1663 = vmatpush3.bf16.msra.mxu1 %v1760_v56 }
  0x3a   :  { %836 = vperm.xlu1 %1720, %v2075_v57   ;;  %831 = vperm.xlu0 %1719, %v2080_v58  }
  0x3b   :  { %1664 = vmatprep.subr.bf16.mxu1 %v1763_v59 }
  0x3c   :  { %366 = vmatmul.mubr.bf16.gmra.mrb[12].mxu0 %v1761_v60  ;;  %486 = vmatmul.mubr.bf16.gmra.mrb[12].mxu1 %v2092_v61 }
  0x3d   :  { %1665 = vmatpush3.bf16.msra.mxu1 %v1763_v59  ;;  %375 = vmatprep.mubr.bf16.mxu0 %v1773_v0 }
  0x3e   :  { %846 = vperm.xlu1 %1720, %v2099_v62   ;;  %841 = vperm.xlu0 %1719, %v2104_v63  }
  0x3f   :  { %1666 = vmatprep.subr.bf16.mxu1 %v1764_v3  ;;  %1668 = vmatprep.mubr.bf16.mxu1 %v1957_v35 }
  0x41   :  { %1667 = vmatpush3.bf16.msra.mxu1 %v1764_v3 }
  0x42   :  { %1722 = vset.pattern.permute.xlu1 %v1774_v7  ;;  %1721 = vset.pattern.permute.xlu0 %v1774_v7 }
  0x43   :  { %886 = vperm.xlu1 %1722, %v1824_v6   ;;  %882 = vperm.xlu0 %1721, %v1806_v2  }
  0x44   :  { %376 = vmatmul.mubr.bf16.gmra.mrb[16].mxu0 %v1765_v4  ;;  %1669 = vmatmul.mubr.bf16.vlgmr.msra.gmra.mrb[16].mxu1 %v2000_v43 }
  0x45   :  { %385 = vmatprep.mubr.bf16.mxu0 %v1773_v0  ;;  %1672 = vmatprep.mubr.bf16.mxu1 %v1757_v52 }
  0x47   :  { %890 = vperm.xlu1 %1722, %v1801_v1   ;;  %894 = vperm.xlu0 %1721, %v1819_v5  }
  0x4b   :  { %898 = vperm.xlu1 %1722, %v1844_v10   ;;  %902 = vperm.xlu0 %1721, %v1839_v9  }
  0x4c   :  { %386 = vmatmul.mubr.bf16.gmra.mrb[20].mxu0 %v1766_v8  ;;  %1673 = vmatmul.mubr.bf16.gmra.mrb[20].mxu1 %v1761_v60 }
  0x4d   :  { %395 = vmatprep.mubr.bf16.mxu0 %v1773_v0  ;;  %1676 = vmatprep.mubr.bf16.mxu1 %v1765_v4 }
  0x4f   :  { %906 = vperm.xlu1 %1722, %v1862_v14   ;;  %910 = vperm.xlu0 %1721, %v1857_v13  }
  0x53   :  { %914 = vperm.xlu1 %1722, %v1880_v18   ;;  %918 = vperm.xlu0 %1721, %v1875_v17  }
  0x54   :  { %396 = vmatmul.mubr.bf16.gmra.mrb[24].mxu0 %v1767_v11  ;;  %1677 = vmatmul.mubr.bf16.gmra.mrb[24].mxu1 %v1766_v8 }
  0x55   :  { %405 = vmatprep.mubr.bf16.mxu0 %v1773_v0  ;;  %1680 = vmatprep.mubr.bf16.mxu1 %v1767_v11 }
  0x57   :  { %922 = vperm.xlu1 %1722, %v1898_v22   ;;  %926 = vperm.xlu0 %1721, %v1891_v21  }
  0x5b   :  { %930 = vperm.xlu1 %1722, %v1916_v26   ;;  %934 = vperm.xlu0 %1721, %v1911_v25  }
  0x5c   :  { %406 = vmatmul.mubr.bf16.gmra.mrb[28].mxu0 %v1768_v12  ;;  %1681 = vmatmul.mubr.bf16.gmra.mrb[28].mxu1 %v1768_v12 }
  0x5d   :  { %415 = vmatprep.mubr.bf16.mxu0 %v1773_v0  ;;  %1684 = vmatprep.mubr.bf16.mxu1 %v1769_v15 }
  0x5f   :  { %938 = vperm.xlu1 %1722, %v1934_v30   ;;  %942 = vperm.xlu0 %1721, %v1929_v29  }
  0x63   :  { %946 = vperm.xlu1 %1722, %v1952_v34   ;;  %950 = vperm.xlu0 %1721, %v1947_v33  }
  0x64   :  { %416 = vmatmul.mubr.bf16.gmra.mrb[32].mxu0 %v1769_v15  ;;  %1685 = vmatmul.mubr.bf16.gmra.mrb[32].mxu1 %v1770_v16 }
  0x65   :  { %425 = vmatprep.mubr.bf16.mxu0 %v1773_v0  ;;  %1688 = vmatprep.mubr.bf16.mxu1 %v1771_v19 }
  0x67   :  { %954 = vperm.xlu1 %1722, %v1977_v39   ;;  %958 = vperm.xlu0 %1721, %v1970_v38  }
  0x6b   :  { %962 = vperm.xlu1 %1722, %v1992_v42   ;;  %966 = vperm.xlu0 %1721, %v1987_v41  }
  0x6c   :  { %426 = vmatmul.mubr.bf16.gmra.mrb[36].mxu0 %v1770_v16  ;;  %1689 = vmatmul.mubr.bf16.gmra.mrb[36].mxu1 %v1772_v20 }
  0x6d   :  { %435 = vmatprep.mubr.bf16.mxu0 %v1773_v0  ;;  %1692 = vmatprep.mubr.bf16.mxu1 %v1965_v37 }
  0x6f   :  { %970 = vperm.xlu1 %1722, %v2021_v47   ;;  %974 = vperm.xlu0 %1721, %v2014_v46  }
  0x73   :  { %978 = vperm.xlu1 %1722, %v2039_v50   ;;  %982 = vperm.xlu0 %1721, %v2034_v49  }
  0x74   :  { %436 = vmatmul.mubr.bf16.gmra.mrb[40].mxu0 %v1771_v19  ;;  %1693 = vmatmul.mubr.bf16.gmra.mrb[40].mxu1 %v2009_v45 }
  0x75   :  { %445 = vmatprep.mubr.bf16.mxu0 %v1773_v0  ;;  %1696 = vmatprep.mubr.bf16.mxu1 %v2051_v53 }
  0x77   :  { %986 = vperm.xlu1 %1722, %v2063_v55   ;;  %990 = vperm.xlu0 %1721, %v2058_v54  }
  0x7b   :  { %994 = vperm.xlu1 %1722, %v2080_v58   ;;  %998 = vperm.xlu0 %1721, %v2075_v57  }
  0x7c   :  { %446 = vmatmul.mubr.bf16.gmra.mrb[44].mxu0 %v1772_v20  ;;  %1697 = vmatmul.mubr.bf16.gmra.mrb[44].mxu1 %v2092_v61 }
  0x7f   :  { %1002 = vperm.xlu1 %1722, %v2104_v63   ;;  %1006 = vperm.xlu0 %1721, %v2099_v62  }
  0x81   :  { %v2182_v23 = vpop.permute.xlu1 %701  ;;  %v2184_v0 = vpop.permute.xlu0 %691 }
  0x83   :  { %1723 = vset.pattern.permute.xlu1 %v1775_v24  ;;  %1724 = vset.pattern.permute.xlu0 %v1775_v24 }
  0x84   :  { %1074 = vperm.xlu1 %1723, %v1806_v2   ;;  %1078 = vperm.xlu0 %1724, %v1824_v6  }
  0x85   :  { %v2188_v27 = vpop.permute.xlu1 %706  ;;  %v2190_v28 = vpop.permute.xlu0 %696 }
  0x88   :  { %1082 = vperm.xlu1 %1723, %v1801_v1   ;;  %1090 = vperm.xlu0 %1724, %v1844_v10  }
  0x89   :  { %v2194_v31 = vpop.permute.xlu1 %716  ;;  %v2196_v32 = vpop.permute.xlu0 %711 }
  0x8c   :  { %1086 = vperm.xlu1 %1723, %v1819_v5   ;;  %1098 = vperm.xlu0 %1724, %v1862_v14  }
  0x8d   :  { %v2200_v35 = vpop.permute.xlu1 %726  ;;  %v2202_v2 = vpop.permute.xlu0 %721 }
  0x90   :  { %1094 = vperm.xlu1 %1723, %v1839_v9   ;;  %1106 = vperm.xlu0 %1724, %v1880_v18  }
  0x91   :  { %v2206_v6 = vpop.permute.xlu1 %736  ;;  %v2208_v1 = vpop.permute.xlu0 %731 }
  0x94   :  { %1102 = vperm.xlu1 %1723, %v1857_v13   ;;  %1114 = vperm.xlu0 %1724, %v1898_v22  }
  0x95   :  { %v2212_v10 = vpop.permute.xlu1 %746  ;;  %v2214_v5 = vpop.permute.xlu0 %741 }
  0x98   :  { %1110 = vperm.xlu1 %1723, %v1875_v17   ;;  %1122 = vperm.xlu0 %1724, %v1916_v26  }
  0x99   :  { %v2218_v14 = vpop.permute.xlu1 %756  ;;  %v2220_v9 = vpop.permute.xlu0 %751 }
  0x9c   :  { %1118 = vperm.xlu1 %1723, %v1891_v21   ;;  %1130 = vperm.xlu0 %1724, %v1934_v30  }
  0x9d   :  { %v2224_v18 = vpop.permute.xlu1 %766  ;;  %v2226_v13 = vpop.permute.xlu0 %761 }
  0xa0   :  { %1126 = vperm.xlu1 %1723, %v1911_v25   ;;  %1138 = vperm.xlu0 %1724, %v1952_v34  }
  0xa1   :  { %v2230_v22 = vpop.permute.xlu1 %776  ;;  %v2232_v17 = vpop.permute.xlu0 %771 }
  0xa2   :  { %2524 = vst [vmem:[#allocation2_spill] sm:$0xff] %v2230_v22 }
  0xa4   :  { %1134 = vperm.xlu1 %1723, %v1929_v29   ;;  %1146 = vperm.xlu0 %1724, %v1977_v39  }
  0xa5   :  { %v2236_v26 = vpop.permute.xlu1 %786  ;;  %v2238_v21 = vpop.permute.xlu0 %781 }
  0xa6   :  { %2525 = vst [vmem:[#allocation3_spill] sm:$0xff] %v2236_v26  ;;  %2526 = vst [vmem:[#allocation4_spill] sm:$0xff] %v2238_v21 }
  0xa8   :  { %1142 = vperm.xlu1 %1723, %v1947_v33   ;;  %1154 = vperm.xlu0 %1724, %v1992_v42  }
  0xa9   :  { %v2242_v30 = vpop.permute.xlu1 %796  ;;  %v2244_v25 = vpop.permute.xlu0 %791 }
  0xaa   :  { %2527 = vst [vmem:[#allocation5_spill] sm:$0xff] %v2242_v30  ;;  %2528 = vst [vmem:[#allocation6_spill] sm:$0xff] %v2244_v25 }
  0xac   :  { %1150 = vperm.xlu1 %1723, %v1970_v38   ;;  %1162 = vperm.xlu0 %1724, %v2021_v47  }
  0xad   :  { %v2248_v34 = vpop.permute.xlu1 %806  ;;  %v2250_v29 = vpop.permute.xlu0 %801 }
  0xae   :  { %2529 = vst [vmem:[#allocation7_spill] sm:$0xff] %v2248_v34  ;;  %2530 = vst [vmem:[#allocation8_spill] sm:$0xff] %v2250_v29 }
  0xb0   :  { %1158 = vperm.xlu1 %1723, %v1987_v41   ;;  %1170 = vperm.xlu0 %1724, %v2039_v50  }
  0xb1   :  { %v817_v36 = vpop.permute.xlu1 %816  ;;  %v812_v33 = vpop.permute.xlu0 %811 }
  0xb4   :  { %1166 = vperm.xlu1 %1723, %v2014_v46   ;;  %1178 = vperm.xlu0 %1724, %v2063_v55  }
  0xb5   :  { %v2256_v37 = vpop.permute.xlu1 %826  ;;  %v2258_v39 = vpop.permute.xlu0 %821 }
  0xb8   :  { %1174 = vperm.xlu1 %1723, %v2034_v49   ;;  %1186 = vperm.xlu0 %1724, %v2080_v58  }
  0xb9   :  { %v2262_v38 = vpop.permute.xlu1 %836  ;;  %v2264_v40 = vpop.permute.xlu0 %831 }
  0xbc   :  { %1182 = vperm.xlu1 %1723, %v2058_v54   ;;  %1194 = vperm.xlu0 %1724, %v2104_v63  }
  0xbd   :  { %v2268_v41 = vpop.permute.xlu1 %846  ;;  %v2270_v42 = vpop.permute.xlu0 %841 }
  0xc0   :  { %1190 = vperm.xlu1 %1723, %v2075_v57  }
  0xc2   :  { %v887_v43 = vpop.permute.xlu1 %886  ;;  %v883_v44 = vpop.permute.xlu0 %882 }
  0xc4   :  { %1198 = vperm.xlu1 %1723, %v2099_v62  }
  0xc6   :  { %v891_v45 = vpop.permute.xlu1 %890  ;;  %v2274_v46 = vpop.permute.xlu0 %894 }
  0xca   :  { %v2276_v47 = vpop.permute.xlu1 %898  ;;  %v2278_v48 = vpop.permute.xlu0 %902 }
  0xce   :  { %v2280_v49 = vpop.permute.xlu1 %906  ;;  %v2282_v50 = vpop.permute.xlu0 %910 }
  0xd2   :  { %v2284_v51 = vpop.permute.xlu1 %914  ;;  %v2286_v52 = vpop.permute.xlu0 %918 }
  0xd6   :  { %v2288_v53 = vpop.permute.xlu1 %922  ;;  %v2290_v54 = vpop.permute.xlu0 %926 }
  0xda   :  { %v2292_v55 = vpop.permute.xlu1 %930  ;;  %v2294_v56 = vpop.permute.xlu0 %934 }
  0xde   :  { %v2296_v57 = vpop.permute.xlu1 %938  ;;  %v2298_v58 = vpop.permute.xlu0 %942 }
  0xe2   :  { %v2300_v59 = vpop.permute.xlu1 %946  ;;  %v2302_v60 = vpop.permute.xlu0 %950 }
  0xe3   :  { %2531 = vst [vmem:[#allocation9_spill] sm:$0xff] %v2300_v59  ;;  %2532 = vst [vmem:[#allocation10_spill] sm:$0xff] %v2302_v60 }
  0xe6   :  { %v2304_v61 = vpop.permute.xlu1 %954  ;;  %v2306_v62 = vpop.permute.xlu0 %958 }
  0xe7   :  { %2533 = vst [vmem:[#allocation11_spill] sm:$0xff] %v2304_v61  ;;  %2534 = vst [vmem:[#allocation12_spill] sm:$0xff] %v2306_v62 }
  0xea   :  { %v2308_v63 = vpop.permute.xlu1 %962  ;;  %v2310_v3 = vpop.permute.xlu0 %966 }
  0xeb   :  { %2535 = vst [vmem:[#allocation13_spill] sm:$0xff] %v2308_v63  ;;  %2536 = vst [vmem:[#allocation14_spill] sm:$0xff] %v2310_v3 }
  0xee   :  { %v2312_v4 = vpop.permute.xlu1 %970  ;;  %v2314_v7 = vpop.permute.xlu0 %974 }
  0xef   :  { %2537 = vst [vmem:[#allocation15_spill] sm:$0xff] %v2312_v4  ;;  %2538 = vst [vmem:[#allocation16_spill] sm:$0xff] %v2314_v7 }
  0xf2   :  { %v979_v8 = vpop.permute.xlu1 %978  ;;  %v983_v11 = vpop.permute.xlu0 %982 }
  0xf6   :  { %v987_v12 = vpop.permute.xlu1 %986  ;;  %v991_v15 = vpop.permute.xlu0 %990 }
  0xf7   :  { %v337_v16 = vpop.f32.mrb[0].mxu0  ;;  %v457_v19 = vpop.f32.mrb[0].mxu1 }
  0xf8   :  { %v849_v20 = vmul.f32 %v2184_v0, %v337_v16  ;;  %v873_v24 = vmul.f32 %v812_v33, %v457_v19  ;;  %v339_v34 = vpop.f32.mrb[1].mxu0  ;;  %v459_v29 = vpop.f32.mrb[1].mxu1 }
  0xf9   :  { %v1009_v30 = vmul.f32 %v883_v44, %v339_v34  ;;  %v1033_v25 = vmul.f32 %v979_v8, %v459_v29  ;;  %v341_v63 = vpop.f32.mrb[2].mxu0  ;;  %v461_v62 = vpop.f32.mrb[2].mxu1 }
  0xfa   :  { %v850_v3 = vmul.f32 %v2190_v28, %v341_v63  ;;  %v874_v4 = vmul.f32 %v817_v36, %v461_v62  ;;  %v343_v26 = vpop.f32.mrb[3].mxu0  ;;  %v463_v7 = vpop.f32.mrb[3].mxu1 }
  0xfb   :  { %v2318_v61 = vadd.f32 %v1009_v30, %v849_v20  ;;  %v2320_v21 = vadd.f32 %v1033_v25, %v873_v24  ;;  %v1010_v60 = vmul.f32 %v887_v43, %v343_v26  ;;  %v1034_v22 = vmul.f32 %v983_v11, %v463_v7  ;;  %v995_v59 = vpop.permute.xlu1 %994  ;;  %v999_v0 = vpop.permute.xlu0 %998 }
  0xfd   :  { %v2322_v33 = vadd.f32 %v1010_v60, %v850_v3  ;;  %v2324_v16 = vadd.f32 %v1034_v22, %v874_v4 }
  0xff   :  { %v1003_v34 = vpop.permute.xlu1 %1002  ;;  %v2326_v29 = vpop.permute.xlu0 %1006 }
 0x100   :  { %v347_v44 = vpop.f32.mrb[4].mxu0  ;;  %v467_v28 = vpop.f32.mrb[4].mxu1 }
 0x101   :  { %v851_v36 = vmul.f32 %v2182_v23, %v347_v44  ;;  %v875_v30 = vmul.f32 %v2258_v39, %v467_v28  ;;  %v349_v62 = vpop.f32.mrb[5].mxu0  ;;  %v469_v25 = vpop.f32.mrb[5].mxu1 }
 0x102   :  { %v1011_v63 = vmul.f32 %v891_v45, %v349_v62  ;;  %v1035_v26 = vmul.f32 %v987_v12, %v469_v25  ;;  %v351_v43 = vpop.f32.mrb[6].mxu0  ;;  %v471_v7 = vpop.f32.mrb[6].mxu1 }
 0x103   :  { %v852_v60 = vmul.f32 %v2188_v27, %v351_v43  ;;  %v876_v22 = vmul.f32 %v2256_v37, %v471_v7  ;;  %v353_v3 = vpop.f32.mrb[7].mxu0  ;;  %v473_v4 = vpop.f32.mrb[7].mxu1 }
 0x104   :  { %v2332_v8 = vadd.f32 %v1011_v63, %v851_v36  ;;  %v2334_v11 = vadd.f32 %v1035_v26, %v875_v30  ;;  %v1012_v23 = vmul.f32 %v2274_v46, %v353_v3  ;;  %v1036_v19 = vmul.f32 %v991_v15, %v473_v4  ;;  %v1075_v39 = vpop.permute.xlu1 %1074  ;;  %v2337_v20 = vpop.permute.xlu0 %1078 }
 0x106   :  { %v2339_v45 = vadd.f32 %v1012_v23, %v852_v60  ;;  %v2341_v12 = vadd.f32 %v1036_v19, %v876_v22 }
 0x107   :  { %v357_v24 = vpop.f32.mrb[8].mxu0  ;;  %v477_v27 = vpop.f32.mrb[8].mxu1 }
 0x108   :  { %v853_v37 = vmul.f32 %v2196_v32, %v357_v24  ;;  %v877_v44 = vmul.f32 %v2264_v40, %v477_v27  ;;  %v1083_v28 = vpop.permute.xlu1 %1082  ;;  %v2345_v36 = vpop.permute.xlu0 %1090 }
 0x109   :  { %v359_v30 = vpop.f32.mrb[9].mxu0  ;;  %v479_v62 = vpop.f32.mrb[9].mxu1 }
 0x10a   :  { %v1013_v46 = vmul.f32 %v2276_v47, %v359_v30  ;;  %v1037_v15 = vmul.f32 %v995_v59, %v479_v62  ;;  %v361_v25 = vpop.f32.mrb[10].mxu0  ;;  %v481_v63 = vpop.f32.mrb[10].mxu1 }
 0x10b   :  { %v854_v26 = vmul.f32 %v2194_v31, %v361_v25  ;;  %v878_v43 = vmul.f32 %v2262_v38, %v481_v63  ;;  %v363_v7 = vpop.f32.mrb[11].mxu0  ;;  %v483_v60 = vpop.f32.mrb[11].mxu1 }
 0x10c   :  { %v2350_v22 = vadd.f32 %v1013_v46, %v853_v37  ;;  %v2352_v32 = vadd.f32 %v1037_v15, %v877_v44  ;;  %v1014_v40 = vmul.f32 %v2278_v48, %v363_v7  ;;  %v1038_v3 = vmul.f32 %v999_v0, %v483_v60  ;;  %v1087_v4 = vpop.permute.xlu1 %1086  ;;  %v1099_v23 = vpop.permute.xlu0 %1098 }
 0x10e   :  { %v2355_v19 = vadd.f32 %v1014_v40, %v854_v26  ;;  %v2357_v47 = vadd.f32 %v1038_v3, %v878_v43 }
 0x10f   :  { %v367_v59 = vpop.f32.mrb[12].mxu0  ;;  %v487_v24 = vpop.f32.mrb[12].mxu1 }
 0x110   :  { %v855_v31 = vmul.f32 %v2202_v2, %v367_v59  ;;  %v879_v38 = vmul.f32 %v2270_v42, %v487_v24  ;;  %v2361_v27 = vpop.permute.xlu1 %1094  ;;  %v2363_v37 = vpop.permute.xlu0 %1106 }
 0x111   :  { %v369_v44 = vpop.f32.mrb[13].mxu0  ;;  %v489_v30 = vpop.f32.mrb[13].mxu1 }
 0x112   :  { %v1015_v48 = vmul.f32 %v2280_v49, %v369_v44  ;;  %v1039_v0 = vmul.f32 %v1003_v34, %v489_v30  ;;  %v371_v62 = vpop.f32.mrb[14].mxu0  ;;  %v491_v46 = vpop.f32.mrb[14].mxu1 }
 0x113   :  { %v856_v15 = vmul.f32 %v2200_v35, %v371_v62  ;;  %v880_v25 = vmul.f32 %v2268_v41, %v491_v46  ;;  %v373_v63 = vpop.f32.mrb[15].mxu0  ;;  %v493_v26 = vpop.f32.mrb[15].mxu1 }
 0x114   :  { %v1047_v2 = vadd.f32 %v1015_v48, %v855_v31  ;;  %v2368_v43 = vadd.f32 %v1039_v0, %v879_v38  ;;  %v1016_v42 = vmul.f32 %v2282_v50, %v373_v63  ;;  %v1040_v7 = vmul.f32 %v2326_v29, %v493_v26  ;;  %v1103_v60 = vpop.permute.xlu1 %1102  ;;  %v2372_v40 = vpop.permute.xlu0 %1114 }
 0x116   :  { %v1048_v49 = vadd.f32 %v1016_v42, %v856_v15  ;;  %v2374_v34 = vadd.f32 %v1040_v7, %v880_v25 }
 0x117   :  { %v377_v3 = vpop.f32.mrb[16].mxu0  ;;  %v1670_v59 = vpop.f32.mrb[16].mxu1 }
 0x118   :  { %v857_v35 = vmul.f32 %v2208_v1, %v377_v3  ;;  %v1203_v41 = vmul.f32 %v1670_v59, %v1083_v28  ;;  %v2377_v24 = vpop.permute.xlu1 %1110  ;;  %v2379_v31 = vpop.permute.xlu0 %1122 }
 0x119   :  { %v379_v38 = vpop.f32.mrb[17].mxu0  ;;  %v530_v44 = vpop.f32.mrb[17].mxu1 }
 0x11a   :  { %v1235_v50 = vadd.f32 %v1203_v41, %v2332_v8  ;;  %v1017_v29 = vmul.f32 %v2284_v51, %v379_v38  ;;  %v1201_v30 = vmul.f32 %v1075_v39, %v530_v44  ;;  %v381_v48 = vpop.f32.mrb[18].mxu0  ;;  %v1671_v0 = vpop.f32.mrb[18].mxu1 }
 0x11b   :  { %v858_v62 = vmul.f32 %v2206_v6, %v381_v48  ;;  %v1204_v46 = vmul.f32 %v1671_v0, %v1087_v4  ;;  %v383_v15 = vpop.f32.mrb[19].mxu0  ;;  %v533_v25 = vpop.f32.mrb[19].mxu1 }
 0x11c   :  { %v1049_v1 = vadd.f32 %v1017_v29, %v857_v35  ;;  %v1233_v28 = vadd.f32 %v1201_v30, %v2318_v61  ;;  %v1018_v63 = vmul.f32 %v2286_v52, %v383_v15  ;;  %v1202_v26 = vmul.f32 %v2337_v20, %v533_v25  ;;  %v1119_v42 = vpop.permute.xlu1 %1118  ;;  %v2387_v7 = vpop.permute.xlu0 %1130 }
 0x11d   :  { %v1236_v51 = vadd.f32 %v1204_v46, %v2339_v45 }
 0x11e   :  { %v1050_v8 = vadd.f32 %v1018_v63, %v858_v62  ;;  %v1234_v39 = vadd.f32 %v1202_v26, %v2322_v33 }
 0x11f   :  { %v1541_v3 = vpack.c.bf16 %v1236_v51, %v1235_v50  ;;  %v387_v6 = vpop.f32.mrb[20].mxu0  ;;  %v1674_v4 = vpop.f32.mrb[20].mxu1 }
 0x120   :  { %v1536_v59 = vpack.c.bf16 %v1234_v39, %v1233_v28  ;;  %v859_v35 = vmul.f32 %v2214_v5, %v387_v6  ;;  %v1207_v41 = vmul.f32 %v1674_v4, %v1099_v23  ;;  %v2392_v61 = vpop.permute.xlu1 %1126  ;;  %v2394_v52 = vpop.permute.xlu0 %1138 }
 0x121   :  { %1613 = vst [vmem:[%s2523_s3 + $0x8] sm:$0xff] %v1541_v3   ;;  %v389_v20 = vpop.f32.mrb[21].mxu0  ;;  %v546_v45 = vpop.f32.mrb[21].mxu1 }
 0x122   :  { %1537 = vst [vmem:[%s2523_s3] sm:$0xff] %v1536_v59   ;;  %v1239_v33 = vadd.f32 %v1207_v41, %v1047_v2  ;;  %v1019_v38 = vmul.f32 %v2288_v53, %v389_v20  ;;  %v1205_v5 = vmul.f32 %v2345_v36, %v546_v45  ;;  %v391_v23 = vpop.f32.mrb[22].mxu0  ;;  %v1675_v44 = vpop.f32.mrb[22].mxu1 }
 0x123   :  { %v860_v50 = vmul.f32 %v2212_v10, %v391_v23  ;;  %v1208_v29 = vmul.f32 %v1675_v44, %v1103_v60  ;;  %v393_v30 = vpop.f32.mrb[23].mxu0  ;;  %v549_v48 = vpop.f32.mrb[23].mxu1 }
 0x124   :  { %v1051_v0 = vadd.f32 %v1019_v38, %v859_v35  ;;  %v1237_v62 = vadd.f32 %v1205_v5, %v2350_v22  ;;  %v1020_v46 = vmul.f32 %v2290_v54, %v393_v30  ;;  %v1206_v15 = vmul.f32 %v2361_v27, %v549_v48  ;;  %v1135_v25 = vpop.permute.xlu1 %1134  ;;  %v2408_v2 = vpop.permute.xlu0 %1146 }
 0x125   :  { %v1240_v53 = vadd.f32 %v1208_v29, %v1048_v49 }
 0x126   :  { %v1052_v28 = vadd.f32 %v1020_v46, %v860_v50  ;;  %v1238_v36 = vadd.f32 %v1206_v15, %v2355_v19 }
 0x127   :  { %v1551_v63 = vpack.c.bf16 %v1240_v53, %v1239_v33  ;;  %v397_v26 = vpop.f32.mrb[24].mxu0  ;;  %v1678_v10 = vpop.f32.mrb[24].mxu1 }
 0x128   :  { %v1546_v60 = vpack.c.bf16 %v1238_v36, %v1237_v62  ;;  %v861_v51 = vmul.f32 %v2220_v9, %v397_v26  ;;  %v1211_v39 = vmul.f32 %v1678_v10, %v2372_v40  ;;  %v2413_v22 = vpop.permute.xlu1 %1142  ;;  %v2415_v54 = vpop.permute.xlu0 %1154 }
 0x129   :  { %1615 = vst [vmem:[%s2523_s3 + $0x18] sm:$0xff] %v1551_v63   ;;  %v399_v27 = vpop.f32.mrb[25].mxu0  ;;  %v562_v49 = vpop.f32.mrb[25].mxu1 }
 0x12a   :  { %1614 = vst [vmem:[%s2523_s3 + $0x10] sm:$0xff] %v1546_v60   ;;  %v1243_v19 = vadd.f32 %v1211_v39, %v1051_v0  ;;  %v1021_v3 = vmul.f32 %v2292_v55, %v399_v27  ;;  %v1209_v9 = vmul.f32 %v2363_v37, %v562_v49  ;;  %v401_v40 = vpop.f32.mrb[26].mxu0  ;;  %v1679_v6 = vpop.f32.mrb[26].mxu1 }
 0x12b   :  { %v862_v4 = vmul.f32 %v2218_v14, %v401_v40  ;;  %v1212_v59 = vmul.f32 %v1679_v6, %v1119_v42  ;;  %v403_v35 = vpop.f32.mrb[27].mxu0  ;;  %v565_v41 = vpop.f32.mrb[27].mxu1 }
 0x12c   :  { %v1053_v20 = vadd.f32 %v1021_v3, %v861_v51  ;;  %v1241_v45 = vadd.f32 %v1209_v9, %v1049_v1  ;;  %v1022_v33 = vmul.f32 %v2294_v56, %v403_v35  ;;  %v1210_v38 = vmul.f32 %v2377_v24, %v565_v41  ;;  %v2428_v5 = vpop.permute.xlu1 %1150  ;;  %v2430_v48 = vpop.permute.xlu0 %1162 }
 0x12d   :  { %v1244_v23 = vadd.f32 %v1212_v59, %v1052_v28  ;;  %v2540_v59 = vld [vmem:[#allocation2_spill] sm:$0xff] }
 0x12e   :  { %v1054_v44 = vadd.f32 %v1022_v33, %v862_v4  ;;  %v1242_v55 = vadd.f32 %v1210_v38, %v1050_v8  ;;  %v2541_v33 = vld [vmem:[#allocation10_spill] sm:$0xff] }
 0x12f   :  { %v1561_v50 = vpack.c.bf16 %v1244_v23, %v1243_v19  ;;  %v407_v37 = vpop.f32.mrb[28].mxu0  ;;  %v1682_v29 = vpop.f32.mrb[28].mxu1 }
 0x130   :  { %v1556_v30 = vpack.c.bf16 %v1242_v55, %v1241_v45  ;;  %v863_v14 = vmul.f32 %v2226_v13, %v407_v37  ;;  %v2433_v42 = vpop.permute.xlu1 %1158  ;;  %v409_v56 = vpop.f32.mrb[29].mxu0  ;;  %v1215_v13 = vmul.f32 %v1682_v29, %v2387_v7 }
 0x131   :  { %1617 = vst [vmem:[%s2523_s3 + $0x28] sm:$0xff] %v1561_v50   ;;  %v578_v24 = vpop.f32.mrb[29].mxu1  ;;  %v1023_v1 = vmul.f32 %v2296_v57, %v409_v56  ;;  %v411_v0 = vpop.f32.mrb[30].mxu0  ;;  %v2542_v56 = vld [vmem:[#allocation4_spill] sm:$0xff] }
 0x132   :  { %1616 = vst [vmem:[%s2523_s3 + $0x20] sm:$0xff] %v1556_v30   ;;  %v1213_v8 = vmul.f32 %v2379_v31, %v578_v24  ;;  %v1683_v62 = vpop.f32.mrb[30].mxu1  ;;  %v864_v46 = vmul.f32 %v2224_v18, %v411_v0  ;;  %v413_v15 = vpop.f32.mrb[31].mxu0 }
 0x133   :  { %v581_v53 = vpop.f32.mrb[31].mxu1  ;;  %v1055_v28 = vadd.f32 %v1023_v1, %v863_v14  ;;  %v1024_v63 = vmul.f32 %v2298_v58, %v413_v15  ;;  %v1216_v57 = vmul.f32 %v1683_v62, %v1135_v25  ;;  %v1171_v49 = vpop.permute.xlu0 %1170 }
 0x134   :  { %v1245_v36 = vadd.f32 %v1213_v8, %v1053_v20  ;;  %v1214_v26 = vmul.f32 %v2392_v61, %v581_v53  ;;  %v2447_v10 = vpop.permute.xlu1 %1166  ;;  %v2539_v61 = vld [vmem:[#allocation9_spill] sm:$0xff]  ;;  %v2543_v8 = vld [vmem:[#allocation11_spill] sm:$0xff] }
 0x135   :  { %v1247_v60 = vadd.f32 %v1215_v13, %v1055_v28  ;;  %v1056_v51 = vadd.f32 %v1024_v63, %v864_v46  ;;  %v2544_v46 = vld [vmem:[#allocation3_spill] sm:$0xff]  ;;  %v2545_v63 = vld [vmem:[#allocation12_spill] sm:$0xff] }
 0x136   :  { %v1246_v31 = vadd.f32 %v1214_v26, %v1054_v44 }
 0x137   :  { %v417_v39 = vpop.f32.mrb[32].mxu0  ;;  %v1686_v27 = vpop.f32.mrb[32].mxu1  ;;  %v1248_v7 = vadd.f32 %v1216_v57, %v1056_v51 }
 0x138   :  { %v1566_v19 = vpack.c.bf16 %v1246_v31, %v1245_v36  ;;  %v865_v18 = vmul.f32 %v2232_v17, %v417_v39  ;;  %v2450_v3 = vpop.permute.xlu1 %1174  ;;  %v419_v9 = vpop.f32.mrb[33].mxu0 }
 0x139   :  { %v594_v40 = vpop.f32.mrb[33].mxu1  ;;  %v1571_v58 = vpack.c.bf16 %v1248_v7, %v1247_v60  ;;  %v1025_v25 = vmul.f32 %v2539_v61, %v419_v9  ;;  %v421_v6 = vpop.f32.mrb[34].mxu0 }
 0x13a   :  { %1618 = vst [vmem:[%s2523_s3 + $0x30] sm:$0xff] %v1566_v19   ;;  %v1687_v4 = vpop.f32.mrb[34].mxu1  ;;  %v866_v35 = vmul.f32 %v2540_v59, %v421_v6  ;;  %v423_v41 = vpop.f32.mrb[35].mxu0  ;;  %v1217_v45 = vmul.f32 %v2394_v52, %v594_v40  ;;  %v2546_v40 = vld [vmem:[#allocation6_spill] sm:$0xff]  ;;  %v2547_v6 = vld [vmem:[#allocation13_spill] sm:$0xff] }
 0x13b   :  { %v597_v20 = vpop.f32.mrb[35].mxu1  ;;  %1619 = vst [vmem:[%s2523_s3 + $0x38] sm:$0xff] %v1571_v58   ;;  %v1057_v17 = vadd.f32 %v1025_v25, %v865_v18  ;;  %v1026_v38 = vmul.f32 %v2541_v33, %v423_v41  ;;  %v1179_v23 = vpop.permute.xlu0 %1178  ;;  %v1220_v57 = vmul.f32 %v1687_v4, %v2428_v5 }
 0x13c   :  { %v1218_v50 = vmul.f32 %v2413_v22, %v597_v20  ;;  %v1183_v14 = vpop.permute.xlu1 %1182  ;;  %v1219_v22 = vmul.f32 %v1686_v27, %v2408_v2 }
 0x13d   :  { %v1249_v44 = vadd.f32 %v1217_v45, %v1057_v17  ;;  %v1058_v55 = vadd.f32 %v1026_v38, %v866_v35  ;;  %v2548_v17 = vld [vmem:[#allocation5_spill] sm:$0xff] }
 0x13f   :  { %v427_v37 = vpop.f32.mrb[36].mxu0  ;;  %v2463_v29 = vpop.f32.mrb[36].mxu1  ;;  %v1250_v30 = vadd.f32 %v1218_v50, %v1058_v55  ;;  %v2549_v50 = vld [vmem:[#allocation14_spill] sm:$0xff] }
 0x140   :  { %v867_v24 = vmul.f32 %v2542_v56, %v427_v37  ;;  %v429_v1 = vpop.f32.mrb[37].mxu0  ;;  %v610_v62 = vpop.f32.mrb[37].mxu1 }
 0x141   :  { %v1027_v0 = vmul.f32 %v2543_v8, %v429_v1  ;;  %v431_v13 = vpop.f32.mrb[38].mxu0  ;;  %v1576_v52 = vpack.c.bf16 %v1250_v30, %v1249_v44  ;;  %v2468_v53 = vpop.f32.mrb[38].mxu1  ;;  %v1221_v5 = vmul.f32 %v2415_v54, %v610_v62 }
 0x142   :  { %v868_v15 = vmul.f32 %v2544_v46, %v431_v13  ;;  %v433_v28 = vpop.f32.mrb[39].mxu0  ;;  %v613_v60 = vpop.f32.mrb[39].mxu1 }
 0x143   :  { %v1059_v36 = vadd.f32 %v1027_v0, %v867_v24  ;;  %v1028_v26 = vmul.f32 %v2545_v63, %v433_v28  ;;  %1620 = vst [vmem:[%s2523_s3 + $0x40] sm:$0xff] %v1576_v52   ;;  %v1187_v39 = vpop.permute.xlu0 %1186  ;;  %v1191_v7 = vpop.permute.xlu1 %1190 }
 0x145   :  { %v1251_v51 = vadd.f32 %v1219_v22, %v1059_v36  ;;  %v1060_v31 = vadd.f32 %v1028_v26, %v868_v15  ;;  %v1223_v26 = vmul.f32 %v2463_v29, %v2430_v48 }
 0x147   :  { %v1252_v19 = vadd.f32 %v1220_v57, %v1060_v31  ;;  %v437_v18 = vpop.f32.mrb[40].mxu0  ;;  %v1694_v9 = vpop.f32.mrb[40].mxu1  ;;  %v2552_v57 = vld [vmem:[#allocation7_spill] sm:$0xff] }
 0x148   :  { %v869_v58 = vmul.f32 %v2546_v40, %v437_v18  ;;  %v1227_v2 = vmul.f32 %v1694_v9, %v1179_v23  ;;  %v439_v27 = vpop.f32.mrb[41].mxu0  ;;  %v626_v61 = vpop.f32.mrb[41].mxu1 }
 0x149   :  { %v1581_v25 = vpack.c.bf16 %v1252_v19, %v1251_v51  ;;  %v1029_v59 = vmul.f32 %v2547_v6, %v439_v27  ;;  %v1225_v35 = vmul.f32 %v1171_v49, %v626_v61  ;;  %v441_v41 = vpop.f32.mrb[42].mxu0  ;;  %v1695_v20 = vpop.f32.mrb[42].mxu1 }
 0x14a   :  { %v1259_v4 = vadd.f32 %v1227_v2, %v2334_v11  ;;  %v870_v45 = vmul.f32 %v2548_v17, %v441_v41  ;;  %v1228_v33 = vmul.f32 %v1695_v20, %v1183_v14  ;;  %v443_v38 = vpop.f32.mrb[43].mxu0  ;;  %v629_v44 = vpop.f32.mrb[43].mxu1  ;;  %v1222_v11 = vmul.f32 %v2433_v42, %v613_v60 }
 0x14b   :  { %1621 = vst [vmem:[%s2523_s3 + $0x48] sm:$0xff] %v1581_v25   ;;  %v1061_v23 = vadd.f32 %v1029_v59, %v869_v58  ;;  %v1257_v55 = vadd.f32 %v1225_v35, %v2320_v21  ;;  %v1030_v49 = vmul.f32 %v2549_v50, %v443_v38  ;;  %v1226_v37 = vmul.f32 %v2450_v3, %v629_v44  ;;  %v1195_v24 = vpop.permute.xlu0 %1194  ;;  %v1199_v1 = vpop.permute.xlu1 %1198  ;;  %v2550_v21 = vld [vmem:[#allocation8_spill] sm:$0xff] }
 0x14c   :  { %v1260_v54 = vadd.f32 %v1228_v33, %v2341_v12 }
 0x14d   :  { %v1253_v30 = vadd.f32 %v1221_v5, %v1061_v23  ;;  %v1062_v56 = vadd.f32 %v1030_v49, %v870_v45  ;;  %v1258_v14 = vadd.f32 %v1226_v37, %v2324_v16  ;;  %v2551_v16 = vld [vmem:[#allocation15_spill] sm:$0xff] }
 0x14e   :  { %v1601_v8 = vpack.c.bf16 %v1260_v54, %v1259_v4 }
 0x14f   :  { %v1254_v0 = vadd.f32 %v1222_v11, %v1062_v56  ;;  %v1596_v62 = vpack.c.bf16 %v1258_v14, %v1257_v55  ;;  %v447_v13 = vpop.f32.mrb[44].mxu0  ;;  %v1698_v52 = vpop.f32.mrb[44].mxu1 }
 0x150   :  { %1625 = vst [vmem:[%s2523_s3 + $0x68] sm:$0xff] %v1601_v8   ;;  %v871_v3 = vmul.f32 %v2550_v21, %v447_v13  ;;  %v1231_v12 = vmul.f32 %v1698_v52, %v1195_v24  ;;  %v449_v46 = vpop.f32.mrb[45].mxu0  ;;  %v642_v42 = vpop.f32.mrb[45].mxu1 }
 0x151   :  { %v1586_v15 = vpack.c.bf16 %v1254_v0, %v1253_v30  ;;  %1624 = vst [vmem:[%s2523_s3 + $0x60] sm:$0xff] %v1596_v62   ;;  %v1031_v28 = vmul.f32 %v2551_v16, %v449_v46  ;;  %v1229_v22 = vmul.f32 %v1187_v39, %v642_v42  ;;  %v451_v36 = vpop.f32.mrb[46].mxu0  ;;  %v1699_v63 = vpop.f32.mrb[46].mxu1  ;;  %v2553_v39 = vld [vmem:[#allocation16_spill] sm:$0xff] }
 0x152   :  { %v1263_v60 = vadd.f32 %v1231_v12, %v2368_v43  ;;  %v872_v51 = vmul.f32 %v2552_v57, %v451_v36  ;;  %v1232_v31 = vmul.f32 %v1699_v63, %v1199_v1  ;;  %v453_v19 = vpop.f32.mrb[47].mxu0  ;;  %v645_v18 = vpop.f32.mrb[47].mxu1  ;;  %v1224_v43 = vmul.f32 %v2468_v53, %v2447_v10 }
 0x153   :  { %1622 = vst [vmem:[%s2523_s3 + $0x50] sm:$0xff] %v1586_v15   ;;  %v1063_v9 = vadd.f32 %v1031_v28, %v871_v3  ;;  %v1261_v40 = vadd.f32 %v1229_v22, %v2352_v32  ;;  %v1032_v58 = vmul.f32 %v2553_v39, %v453_v19  ;;  %v1230_v2 = vmul.f32 %v1191_v7, %v645_v18 }
 0x154   :  { %v1264_v27 = vadd.f32 %v1232_v31, %v2374_v34 }
 0x155   :  { %v1255_v48 = vadd.f32 %v1223_v26, %v1063_v9  ;;  %v1064_v29 = vadd.f32 %v1032_v58, %v872_v51  ;;  %v1262_v61 = vadd.f32 %v1230_v2, %v2357_v47 }
 0x156   :  { %v1611_v25 = vpack.c.bf16 %v1264_v27, %v1263_v60 }
 0x157   :  { %v1256_v6 = vadd.f32 %v1224_v43, %v1064_v29  ;;  %v1606_v59 = vpack.c.bf16 %v1262_v61, %v1261_v40 }
 0x158   :  { %1627 = vst [vmem:[%s2523_s3 + $0x78] sm:$0xff] %v1611_v25  }
 0x159   :  { %v1591_v32 = vpack.c.bf16 %v1256_v6, %v1255_v48  ;;  %1626 = vst [vmem:[%s2523_s3 + $0x70] sm:$0xff] %v1606_v59  }
 0x15b   :  { %1623 = vst [vmem:[%s2523_s3 + $0x58] sm:$0xff] %v1591_v32  }

// kernel: gmmnet_u_forward.31
= control target key start
LH: loop header
LB: loop body
LE: loop exit
PB: predicated region body
PF: predicated region fallthrough
CT: control target
= control target key end

     0   :  { %v1633_v1 = vmov 0   ;;  %s2219_s1 = inlined_call_operand.vmem [shape: bf16[256,128], index: 1, kind: input, shape index: {}]   ;;  %s2220_s3 = inlined_call_operand.vmem [shape: bf16[128,128], index: 3, kind: input, shape index: {}]   ;;  %s2221_s0 = inlined_call_operand.vmem [shape: bf16[128,256], index: 0, kind: input, shape index: {}]   ;;  %s2222_s2 = inlined_call_operand.vmem [shape: bf16[128,128], index: 2, kind: input, shape index: {}]   ;;  %s2223_s5 = inlined_call_operand.vmem [shape: f32[128,1], index: 5, kind: input, shape index: {}]   ;;  %s2224_s4 = inlined_call_operand.vmem [shape: f32[1,128], index: 4, kind: input, shape index: {}]   ;;  %s2225_s6 = inlined_call_operand.vmem [shape: bf16[128,128], index: 6, kind: input, shape index: {}]   ;;  %s2226_s7 = inlined_call_operand.vmem [shape: bf16[128,128], index: 7, kind: output, shape index: {}]  }
   0x1   :  { %v1513_v0 = vld [vmem:[%s2219_s1 + $0x40] sm:$0xff]   ;;  %1511 = vset.pattern.permute.xlu0 %v1633_v1  ;;  %1512 = vset.pattern.permute.xlu1 %v1633_v1  ;;  %v1515_v3 = vld [vmem:[%s2219_s1 + $0x48] sm:$0xff]   ;;  %v1518_v6 = vld [vmem:[%s2219_s1 + $0x50] sm:$0xff]  }
   0x2   :  { %v1514_v2 = vld [vmem:[%s2219_s1] sm:$0xff]   ;;  %1398 = vmatprep.subr.bf16.mxu0 %v1513_v0  ;;  %v1517_v5 = vld [vmem:[%s2219_s1 + $0x8] sm:$0xff]   ;;  %v1520_v8 = vld [vmem:[%s2219_s1 + $0x10] sm:$0xff]  }
   0x3   :  { %1399 = vmatpush3.bf16.msra.mxu0 %v1514_v2  ;;  %v1516_v4 = vld [vmem:[%s2220_s3] sm:$0xff]   ;;  %v1519_v7 = vld [vmem:[%s2220_s3 + $0x8] sm:$0xff]   ;;  %v1521_v9 = vld [vmem:[%s2219_s1 + $0x58] sm:$0xff]  }
   0x4   :  { %1400 = vmatprep.subr.bf16.mxu0 %v1515_v3  ;;  %1478 = vmatprep.subr.bf16.mxu1 %v1516_v4  ;;  %v1522_v10 = vld [vmem:[%s2220_s3 + $0x10] sm:$0xff]   ;;  %v1523_v11 = vld [vmem:[%s2219_s1 + $0x18] sm:$0xff]   ;;  %v1524_v12 = vld [vmem:[%s2219_s1 + $0x60] sm:$0xff]  }
   0x5   :  { %1479 = vmatpush3.bf16.msra.mxu1 %v1516_v4  ;;  %v1525_v13 = vld [vmem:[%s2220_s3 + $0x18] sm:$0xff]   ;;  %v1526_v14 = vld [vmem:[%s2219_s1 + $0x20] sm:$0xff]   ;;  %v1527_v16 = vld [vmem:[%s2219_s1 + $0x68] sm:$0xff]  }
   0x6   :  { %1480 = vmatprep.subr.bf16.mxu1 %v1519_v7  ;;  %v1528_v15 = vld [vmem:[%s2220_s3 + $0x20] sm:$0xff]   ;;  %v1529_v17 = vld [vmem:[%s2219_s1 + $0x28] sm:$0xff]   ;;  %v1530_v19 = vld [vmem:[%s2219_s1 + $0x70] sm:$0xff]  }
   0x7   :  { %1401 = vmatpush3.bf16.msra.mxu0 %v1517_v5  ;;  %v1531_v18 = vld [vmem:[%s2220_s3 + $0x28] sm:$0xff]   ;;  %v1532_v20 = vld [vmem:[%s2219_s1 + $0x30] sm:$0xff]   ;;  %v1533_v21 = vld [vmem:[%s2219_s1 + $0x78] sm:$0xff]  }
   0x8   :  { %1402 = vmatprep.subr.bf16.mxu0 %v1518_v6  ;;  %v1534_v22 = vld [vmem:[%s2220_s3 + $0x30] sm:$0xff]   ;;  %v1538_v23 = vld [vmem:[%s2221_s0 + $0x4] ss:$8 sps:$4 sm:$0xff]   ;;  %v1535_v24 = vld [vmem:[%s2219_s1 + $0x38] sm:$0xff]  }
   0x9   :  { %1481 = vmatpush3.bf16.msra.mxu1 %v1519_v7  ;;  %319 = vmatprep.mubr.bf16.mxu0 %v1538_v23  ;;  %v1540_v25 = vld [vmem:[%s2222_s2] sm:$0xff]   ;;  %v1539_v26 = vld [vmem:[%s2220_s3 + $0x38] sm:$0xff]   ;;  %v1541_v29 = vld [vmem:[%s2222_s2 + $0x8] sm:$0xff]  }
   0xa   :  { %1482 = vmatprep.subr.bf16.mxu1 %v1522_v10  ;;  %1494 = vmatprep.mubr.bf16.mxu1 %v1540_v25  ;;  %v1536_v27 = vld [vmem:[%s2221_s0] ss:$8 sps:$4 sm:$0xff]   ;;  %v1542_v28 = vld [vmem:[%s2221_s0 + $0x14] ss:$8 sps:$4 sm:$0xff]   ;;  %v1544_v31 = vld [vmem:[%s2221_s0 + $0x10] ss:$8 sps:$4 sm:$0xff]  }
   0xb   :  { %1403 = vmatpush3.bf16.msra.mxu0 %v1520_v8  ;;  %v1548_v30 = vld [vmem:[%s2222_s2 + $0x10] sm:$0xff]   ;;  %v1545_v32 = vld [vmem:[%s2221_s0 + $0x24] ss:$8 sps:$4 sm:$0xff]   ;;  %v1549_v33 = vld [vmem:[%s2222_s2 + $0x18] sm:$0xff]  }
   0xc   :  { %1404 = vmatprep.subr.bf16.mxu0 %v1521_v9  ;;  %v1556_v34 = vld [vmem:[%s2222_s2 + $0x20] sm:$0xff]   ;;  %v437_v36 = vld [vmem:[%s2223_s5 + $0x10] sm:$0xff]  ;;  %v436_v37 = vld [vmem:[%s2223_s5 + $0x8] sm:$0xff] }
   0xd   :  { %1483 = vmatpush3.bf16.msra.mxu1 %v1522_v10  ;;  %v435_v35 = vld [vmem:[%s2223_s5] sm:$0xff]  ;;  %463 = vperm.xlu1 %1512, %v437_v36   ;;  %v438_v38 = vld [vmem:[%s2223_s5 + $0x18] sm:$0xff]  ;;  %v1557_v42 = vld [vmem:[%s2222_s2 + $0x28] sm:$0xff]  }
   0xe   :  { %1484 = vmatprep.subr.bf16.mxu1 %v1525_v13  ;;  %453 = vperm.xlu0 %1511, %v435_v35   ;;  %v1547_v39 = vld [vmem:[%s2221_s0 + $0x20] ss:$8 sps:$4 sm:$0xff]   ;;  %v1550_v40 = vld [vmem:[%s2221_s0 + $0x34] ss:$8 sps:$4 sm:$0xff]   ;;  %v1552_v47 = vld [vmem:[%s2221_s0 + $0x30] ss:$8 sps:$4 sm:$0xff]  }
   0xf   :  { %1405 = vmatpush3.bf16.msra.mxu0 %v1523_v11  ;;  %v439_v41 = vld [vmem:[%s2223_s5 + $0x20] sm:$0xff]  ;;  %v440_v43 = vld [vmem:[%s2223_s5 + $0x28] sm:$0xff]  ;;  %v1564_v44 = vld [vmem:[%s2222_s2 + $0x30] sm:$0xff]  }
  0x10   :  { %1406 = vmatprep.subr.bf16.mxu0 %v1524_v12  ;;  %v441_v45 = vld [vmem:[%s2223_s5 + $0x30] sm:$0xff]  ;;  %v442_v46 = vld [vmem:[%s2223_s5 + $0x38] sm:$0xff]  ;;  %v1553_v48 = vld [vmem:[%s2221_s0 + $0x44] ss:$8 sps:$4 sm:$0xff]  }
  0x11   :  { %1485 = vmatpush3.bf16.msra.mxu1 %v1525_v13  ;;  %468 = vperm.xlu1 %1512, %v438_v38   ;;  %v443_v49 = vld [vmem:[%s2223_s5 + $0x40] sm:$0xff]  ;;  %v1565_v50 = vld [vmem:[%s2222_s2 + $0x38] sm:$0xff]   ;;  %v444_v51 = vld [vmem:[%s2223_s5 + $0x48] sm:$0xff] }
  0x12   :  { %1486 = vmatprep.subr.bf16.mxu1 %v1528_v15  ;;  %458 = vperm.xlu0 %1511, %v436_v37   ;;  %v445_v52 = vld [vmem:[%s2223_s5 + $0x50] sm:$0xff]  ;;  %v446_v53 = vld [vmem:[%s2223_s5 + $0x58] sm:$0xff]  ;;  %v1555_v54 = vld [vmem:[%s2221_s0 + $0x40] ss:$8 sps:$4 sm:$0xff]  }
  0x13   :  { %1407 = vmatpush3.bf16.msra.mxu0 %v1526_v14  ;;  %v1558_v55 = vld [vmem:[%s2221_s0 + $0x54] ss:$8 sps:$4 sm:$0xff]   ;;  %v447_v56 = vld [vmem:[%s2223_s5 + $0x60] sm:$0xff]  ;;  %v448_v57 = vld [vmem:[%s2223_s5 + $0x68] sm:$0xff] }
  0x14   :  { %1408 = vmatprep.subr.bf16.mxu0 %v1527_v16  ;;  %v449_v58 = vld [vmem:[%s2223_s5 + $0x70] sm:$0xff]  ;;  %v450_v59 = vld [vmem:[%s2223_s5 + $0x78] sm:$0xff]  ;;  %v1561_v61 = vld [vmem:[%s2221_s0 + $0x64] ss:$8 sps:$4 sm:$0xff]  }
  0x15   :  { %1487 = vmatpush3.bf16.msra.mxu1 %v1528_v15  ;;  %478 = vperm.xlu1 %1512, %v440_v43   ;;  %v1560_v60 = vld [vmem:[%s2221_s0 + $0x50] ss:$8 sps:$4 sm:$0xff]   ;;  %v1563_v62 = vld [vmem:[%s2221_s0 + $0x60] ss:$8 sps:$4 sm:$0xff]   ;;  %v1566_v63 = vld [vmem:[%s2221_s0 + $0x74] ss:$8 sps:$4 sm:$0xff]  }
  0x16   :  { %1488 = vmatprep.subr.bf16.mxu1 %v1531_v18  ;;  %473 = vperm.xlu0 %1511, %v439_v41   ;;  %v1568_v0 = vld [vmem:[%s2221_s0 + $0x70] ss:$8 sps:$4 sm:$0xff]   ;;  %v1869_v12 = vld [vmem:[%s2224_s4] ss:$0 sm:$0xff] }
  0x17   :  { %1409 = vmatpush3.bf16.msra.mxu0 %v1529_v17 }
  0x18   :  { %1410 = vmatprep.subr.bf16.mxu0 %v1530_v19 }
  0x19   :  { %1489 = vmatpush3.bf16.msra.mxu1 %v1531_v18  ;;  %488 = vperm.xlu1 %1512, %v442_v46  }
  0x1a   :  { %1490 = vmatprep.subr.bf16.mxu1 %v1534_v22  ;;  %483 = vperm.xlu0 %1511, %v441_v45  }
  0x1b   :  { %1411 = vmatpush3.bf16.msra.mxu0 %v1532_v20 }
  0x1c   :  { %1412 = vmatprep.subr.bf16.mxu0 %v1533_v21 }
  0x1d   :  { %1491 = vmatpush3.bf16.msra.mxu1 %v1534_v22  ;;  %498 = vperm.xlu1 %1512, %v444_v51  }
  0x1e   :  { %1492 = vmatprep.subr.bf16.mxu1 %v1539_v26  ;;  %493 = vperm.xlu0 %1511, %v443_v49  }
  0x1f   :  { %1413 = vmatpush3.bf16.msra.mxu0 %v1535_v24 }
  0x21   :  { %1493 = vmatpush3.bf16.msra.mxu1 %v1539_v26  ;;  %508 = vperm.xlu1 %1512, %v446_v53  }
  0x22   :  { %320 = vmatmul.mubr.bf16.vlgmr.msra.gmra.mrb[0].mxu0 %v1536_v27  ;;  %503 = vperm.xlu0 %1511, %v445_v52  }
  0x23   :  { %327 = vmatprep.mubr.bf16.mxu0 %v1542_v28 }
  0x24   :  { %1495 = vmatmul.mubr.bf16.vlgmr.msra.gmra.mrb[0].mxu1 %v1541_v29 }
  0x25   :  { %1498 = vmatprep.mubr.bf16.mxu1 %v1548_v30  ;;  %518 = vperm.xlu1 %1512, %v448_v57  }
  0x26   :  { %513 = vperm.xlu0 %1511, %v447_v56  }
  0x29   :  { %528 = vperm.xlu1 %1512, %v450_v59  }
  0x2a   :  { %328 = vmatmul.mubr.bf16.gmra.mrb[4].mxu0 %v1544_v31  ;;  %523 = vperm.xlu0 %1511, %v449_v58  }
  0x2b   :  { %335 = vmatprep.mubr.bf16.mxu0 %v1545_v32 }
  0x2c   :  { %1499 = vmatmul.mubr.bf16.gmra.mrb[4].mxu1 %v1549_v33 }
  0x2d   :  { %1502 = vmatprep.mubr.bf16.mxu1 %v1556_v34 }
  0x32   :  { %336 = vmatmul.mubr.bf16.gmra.mrb[8].mxu0 %v1547_v39 }
  0x33   :  { %343 = vmatprep.mubr.bf16.mxu0 %v1550_v40 }
  0x34   :  { %1503 = vmatmul.mubr.bf16.gmra.mrb[8].mxu1 %v1557_v42 }
  0x35   :  { %1506 = vmatprep.mubr.bf16.mxu1 %v1564_v44 }
  0x3a   :  { %344 = vmatmul.mubr.bf16.gmra.mrb[12].mxu0 %v1552_v47 }
  0x3b   :  { %351 = vmatprep.mubr.bf16.mxu0 %v1553_v48 }
  0x3c   :  { %1507 = vmatmul.mubr.bf16.gmra.mrb[12].mxu1 %v1565_v50 }
  0x42   :  { %352 = vmatmul.mubr.bf16.gmra.mrb[16].mxu0 %v1555_v54 }
  0x43   :  { %359 = vmatprep.mubr.bf16.mxu0 %v1558_v55 }
  0x4a   :  { %360 = vmatmul.mubr.bf16.gmra.mrb[20].mxu0 %v1560_v60 }
  0x4b   :  { %367 = vmatprep.mubr.bf16.mxu0 %v1561_v61 }
  0x52   :  { %368 = vmatmul.mubr.bf16.gmra.mrb[24].mxu0 %v1563_v62 }
  0x53   :  { %375 = vmatprep.mubr.bf16.mxu0 %v1566_v63 }
  0x5a   :  { %376 = vmatmul.mubr.bf16.gmra.mrb[28].mxu0 %v1568_v0 }
  0x8c   :  { %v464_v17 = vpop.permute.xlu1 %463 }
  0x8d   :  { %v454_v1 = vpop.permute.xlu0 %453 }
  0x90   :  { %v469_v36 = vpop.permute.xlu1 %468 }
  0x91   :  { %v459_v6 = vpop.permute.xlu0 %458 }
  0x94   :  { %v479_v60 = vpop.permute.xlu1 %478 }
  0x95   :  { %v474_v56 = vpop.permute.xlu0 %473 }
  0xf5   :  { %v1414_v2 = vpop.f32.mrb[0].mxu0 }
  0xf6   :  { %v1415_v3 = vpop.f32.mrb[1].mxu0 }
  0xf7   :  { %v1416_v4 = vadd.f32 %v1415_v3, %v1414_v2  ;;  %v1417_v5 = vpop.f32.mrb[2].mxu0  ;;  %v1496_v8 = vpop.f32.mrb[0].mxu1  ;;  %v1910_v2 = vld [vmem:[%s2225_s6] sm:$0xff]  }
  0xf8   :  { %v1418_v7 = vpop.f32.mrb[3].mxu0  ;;  %v709_v11 = vpop.f32.mrb[1].mxu1 }
  0xf9   :  { %v1419_v9 = vadd.f32 %v1418_v7, %v1417_v5  ;;  %v531_v10 = vmul.f32 %v1416_v4, %v454_v1  ;;  %v1497_v13 = vpop.f32.mrb[2].mxu1 }
  0xfa   :  { %v712_v16 = vpop.f32.mrb[3].mxu1 }
  0xfb   :  { %v532_v14 = vmul.f32 %v1419_v9, %v459_v6  ;;  %v772_v15 = vadd.f32 %v709_v11, %v531_v10  ;;  %v1917_v6 = vld [vmem:[%s2225_s6 + $0x8] sm:$0xff]  }
  0xfd   :  { %v1872_v18 = vadd.f32 %v1869_v12, %v772_v15  ;;  %v773_v19 = vadd.f32 %v712_v16, %v532_v14  ;;  %v1420_v20 = vpop.f32.mrb[4].mxu0  ;;  %v484_v15 = vpop.permute.xlu0 %483  ;;  %v1927_v16 = vld [vmem:[%s2225_s6 + $0x10] sm:$0xff]  }
  0xfe   :  { %v1421_v21 = vpop.f32.mrb[5].mxu0 }
  0xff   :  { %v827_v22 = vmul.f32 0.044715, %v1872_v18  ;;  %v1876_v23 = vadd.f32 %v1869_v12, %v773_v19  ;;  %v1422_v24 = vadd.f32 %v1421_v21, %v1420_v20  ;;  %v1423_v25 = vpop.f32.mrb[6].mxu0  ;;  %v1878_v27 = vpop.f32.mrb[4].mxu1  ;;  %v1315_v21 = vunpack.c.h.bf16 %v1910_v2 }
 0x100   :  { %v1424_v26 = vpop.f32.mrb[7].mxu0  ;;  %v725_v31 = vpop.f32.mrb[5].mxu1 }
 0x101   :  { %v843_v28 = vmul.f32 %v827_v22, %v1872_v18  ;;  %v828_v29 = vmul.f32 0.044715, %v1876_v23  ;;  %v533_v30 = vmul.f32 %v1422_v24, %v464_v17  ;;  %v1425_v32 = vadd.f32 %v1424_v26, %v1423_v25  ;;  %v1882_v33 = vpop.f32.mrb[6].mxu1 }
 0x102   :  { %v728_v38 = vpop.f32.mrb[7].mxu1  ;;  %v1318_v22 = vunpack.c.l.bf16 %v1917_v6 }
 0x103   :  { %v859_v34 = vmul.f32 %v843_v28, %v1872_v18  ;;  %v844_v35 = vmul.f32 %v828_v29, %v1876_v23  ;;  %v774_v37 = vadd.f32 %v1496_v8, %v533_v30  ;;  %v534_v39 = vmul.f32 %v1425_v32, %v469_v36 }
 0x104   :  { %v1319_v29 = vunpack.c.h.bf16 %v1917_v6  ;;  %v1322_v36 = vunpack.c.l.bf16 %v1927_v16 }
 0x105   :  { %v875_v40 = vadd.f32 %v859_v34, %v1872_v18  ;;  %v860_v41 = vmul.f32 %v844_v35, %v1876_v23  ;;  %v1889_v42 = vadd.f32 %v1869_v12, %v774_v37  ;;  %v1426_v43 = vpop.f32.mrb[8].mxu0  ;;  %v775_v44 = vadd.f32 %v1497_v13, %v534_v39  ;;  %v1947_v37 = vld [vmem:[%s2225_s6 + $0x18] sm:$0xff]  }
 0x106   :  { %v1427_v45 = vpop.f32.mrb[9].mxu0  ;;  %v1314_v13 = vunpack.c.l.bf16 %v1910_v2 }
 0x107   :  { %v891_v46 = vmul.f32 0.7978846, %v875_v40  ;;  %v876_v47 = vadd.f32 %v860_v41, %v1876_v23  ;;  %v829_v48 = vmul.f32 0.044715, %v1889_v42  ;;  %v1429_v49 = vpop.f32.mrb[10].mxu0  ;;  %v1894_v50 = vadd.f32 %v1869_v12, %v775_v44  ;;  %v1896_v53 = vpop.f32.mrb[8].mxu1 }
 0x108   :  { %v1428_v51 = vadd.f32 %v1427_v45, %v1426_v43  ;;  %v1430_v52 = vpop.f32.mrb[11].mxu0  ;;  %v1899_v58 = vpop.f32.mrb[9].mxu1  ;;  %v811_v41 = vmul.f32 0.5, %v1872_v18  ;;  %v1323_v45 = vunpack.c.h.bf16 %v1927_v16 }
 0x109   :  { %1569 = vtanh.f32 %v891_v46  ;;  %v892_v54 = vmul.f32 0.7978846, %v876_v47  ;;  %v845_v55 = vmul.f32 %v829_v48, %v1889_v42  ;;  %v1431_v57 = vadd.f32 %v1430_v52, %v1429_v49  ;;  %v1902_v62 = vpop.f32.mrb[10].mxu1  ;;  %v489_v43 = vpop.permute.xlu1 %488 }
 0x10a   :  { %v830_v59 = vmul.f32 0.044715, %v1894_v50  ;;  %v535_v61 = vmul.f32 %v1428_v51, %v474_v56  ;;  %v1905_v1 = vpop.f32.mrb[11].mxu1  ;;  %v1326_v56 = vunpack.c.l.bf16 %v1947_v37 }
 0x10b   :  { %1571 = vtanh.f32 %v892_v54  ;;  %v861_v63 = vmul.f32 %v845_v55, %v1889_v42  ;;  %v536_v0 = vmul.f32 %v1431_v57, %v479_v60  ;;  %v812_v54 = vmul.f32 0.5, %v1876_v23 }
 0x10c   :  { %v846_v3 = vmul.f32 %v830_v59, %v1894_v50  ;;  %v776_v4 = vadd.f32 %v725_v31, %v535_v61  ;;  %v1327_v23 = vunpack.c.h.bf16 %v1947_v37 }
 0x10d   :  { %v877_v5 = vadd.f32 %v861_v63, %v1889_v42  ;;  %v777_v7 = vadd.f32 %v728_v38, %v536_v0  ;;  %v1432_v8 = vpop.f32.mrb[12].mxu0 }
 0x10e   :  { %v862_v9 = vmul.f32 %v846_v3, %v1894_v50  ;;  %v1921_v10 = vadd.f32 %v1869_v12, %v776_v4  ;;  %v1433_v11 = vpop.f32.mrb[13].mxu0 }
 0x10f   :  { %v893_v14 = vmul.f32 0.7978846, %v877_v5  ;;  %v1930_v17 = vadd.f32 %v1869_v12, %v777_v7  ;;  %v1434_v19 = vadd.f32 %v1433_v11, %v1432_v8  ;;  %v1435_v20 = vpop.f32.mrb[14].mxu0  ;;  %v1936_v28 = vpop.f32.mrb[12].mxu1  ;;  %v1972_v5 = vld [vmem:[%s2225_s6 + $0x20] sm:$0xff]  }
 0x110   :  { %v878_v24 = vadd.f32 %v862_v9, %v1894_v50  ;;  %v831_v25 = vmul.f32 0.044715, %v1921_v10  ;;  %v1436_v26 = vpop.f32.mrb[15].mxu0  ;;  %v1940_v32 = vpop.f32.mrb[13].mxu1 }
 0x111   :  { %1573 = vtanh.f32 %v893_v14  ;;  %v832_v30 = vmul.f32 0.044715, %v1930_v17  ;;  %v537_v31 = vmul.f32 %v1434_v19, %v484_v15  ;;  %v1437_v38 = vadd.f32 %v1436_v26, %v1435_v20  ;;  %v1949_v39 = vpop.f32.mrb[14].mxu1  ;;  %v494_v9 = vpop.permute.xlu0 %493 }
 0x112   :  { %v894_v34 = vmul.f32 0.7978846, %v878_v24  ;;  %v847_v35 = vmul.f32 %v831_v25, %v1921_v10  ;;  %v1955_v47 = vpop.f32.mrb[15].mxu1 }
 0x113   :  { %v1570_v40 = vpop.eup %1569  ;;  %v848_v44 = vmul.f32 %v832_v30, %v1930_v17  ;;  %v778_v46 = vadd.f32 %v1878_v27, %v537_v31  ;;  %v538_v51 = vmul.f32 %v1437_v38, %v489_v43 }
 0x114   :  { %v923_v48 = vadd.f32 1.0, %v1570_v40  ;;  %1575 = vtanh.f32 %v894_v34  ;;  %v863_v49 = vmul.f32 %v847_v35, %v1921_v10  ;;  %v1331_v35 = vunpack.c.h.bf16 %v1972_v5 }
 0x115   :  { %v1572_v52 = vpop.eup %1571  ;;  %v864_v55 = vmul.f32 %v848_v44, %v1930_v17  ;;  %v1961_v18 = vadd.f32 %v1869_v12, %v778_v46  ;;  %v1438_v57 = vpop.f32.mrb[16].mxu0  ;;  %v779_v61 = vadd.f32 %v1882_v33, %v538_v51 }
 0x116   :  { %v939_v59 = vmul.f32 %v923_v48, %v811_v41  ;;  %v924_v27 = vadd.f32 1.0, %v1572_v52  ;;  %v879_v60 = vadd.f32 %v863_v49, %v1921_v10  ;;  %v1439_v63 = vpop.f32.mrb[17].mxu0  ;;  %v813_v41 = vmul.f32 0.5, %v1889_v42 }
 0x117   :  { %v880_v0 = vadd.f32 %v864_v55, %v1930_v17  ;;  %v833_v2 = vmul.f32 0.044715, %v1961_v18  ;;  %v1440_v3 = vadd.f32 %v1439_v63, %v1438_v57  ;;  %v1441_v4 = vpop.f32.mrb[18].mxu0  ;;  %v1977_v33 = vadd.f32 %v1869_v12, %v779_v61 }
 0x118   :  { %v1974_v7 = vadd.f32 %v1314_v13, %v939_v59  ;;  %v940_v8 = vmul.f32 %v924_v27, %v812_v54  ;;  %v895_v11 = vmul.f32 0.7978846, %v879_v60  ;;  %v1442_v14 = vpop.f32.mrb[19].mxu0  ;;  %v1330_v13 = vunpack.c.l.bf16 %v1972_v5 }
 0x119   :  { %v896_v15 = vmul.f32 0.7978846, %v880_v0  ;;  %v849_v19 = vmul.f32 %v833_v2, %v1961_v18  ;;  %v1443_v20 = vadd.f32 %v1442_v14, %v1441_v4  ;;  %v539_v24 = vmul.f32 %v1440_v3, %v494_v9 }
 0x11a   :  { %v1019_v25 = vmul.f32 0.044715, %v1974_v7  ;;  %v1981_v26 = vadd.f32 %v1315_v21, %v940_v8  ;;  %1577 = vtanh.f32 %v895_v11  ;;  %v834_v34 = vmul.f32 0.044715, %v1977_v33  ;;  %v499_v21 = vpop.permute.xlu1 %498 }
 0x11b   :  { %v1574_v30 = vpop.eup %1573  ;;  %1579 = vtanh.f32 %v896_v15  ;;  %v865_v31 = vmul.f32 %v849_v19, %v1961_v18  ;;  %v780_v48 = vadd.f32 %v1899_v58, %v539_v24  ;;  %v540_v49 = vmul.f32 %v1443_v20, %v499_v21 }
 0x11c   :  { %v1035_v38 = vmul.f32 %v1019_v25, %v1974_v7  ;;  %v1020_v40 = vmul.f32 0.044715, %v1981_v26  ;;  %v925_v43 = vadd.f32 1.0, %v1574_v30  ;;  %v850_v46 = vmul.f32 %v834_v34, %v1977_v33 }
 0x11d   :  { %v881_v44 = vadd.f32 %v865_v31, %v1961_v18  ;;  %v1444_v51 = vpop.f32.mrb[20].mxu0  ;;  %v814_v59 = vmul.f32 0.5, %v1894_v50  ;;  %v1998_v63 = vadd.f32 %v1869_v12, %v780_v48  ;;  %v781_v4 = vadd.f32 %v1905_v1, %v540_v49 }
 0x11e   :  { %v1576_v52 = vpop.eup %1575  ;;  %v1051_v54 = vmul.f32 %v1035_v38, %v1974_v7  ;;  %v1036_v55 = vmul.f32 %v1020_v40, %v1981_v26  ;;  %v941_v57 = vmul.f32 %v925_v43, %v813_v41  ;;  %v1445_v27 = vpop.f32.mrb[21].mxu0  ;;  %v866_v61 = vmul.f32 %v850_v46, %v1977_v33 }
 0x11f   :  { %v926_v42 = vadd.f32 1.0, %v1576_v52  ;;  %v897_v60 = vmul.f32 0.7978846, %v881_v44  ;;  %v1447_v0 = vpop.f32.mrb[22].mxu0  ;;  %v815_v9 = vmul.f32 0.5, %v1921_v10  ;;  %v816_v20 = vmul.f32 0.5, %v1930_v17 }
 0x120   :  { %v1067_v58 = vadd.f32 %v1051_v54, %v1974_v7  ;;  %v1052_v2 = vmul.f32 %v1036_v55, %v1981_v26  ;;  %v2004_v3 = vadd.f32 %v1318_v22, %v941_v57  ;;  %v1448_v50 = vpop.f32.mrb[23].mxu0  ;;  %v882_v11 = vadd.f32 %v866_v61, %v1977_v33 }
 0x121   :  { %v942_v8 = vmul.f32 %v926_v42, %v814_v59  ;;  %1581 = vtanh.f32 %v897_v60  ;;  %v835_v1 = vmul.f32 0.044715, %v1998_v63  ;;  %v2018_v25 = vadd.f32 %v1869_v12, %v781_v4 }
 0x122   :  { %v1083_v14 = vmul.f32 0.7978846, %v1067_v58  ;;  %v1068_v15 = vadd.f32 %v1052_v2, %v1981_v26  ;;  %v1021_v19 = vmul.f32 0.044715, %v2004_v3  ;;  %v898_v24 = vmul.f32 0.7978846, %v882_v11 }
 0x123   :  { %v2014_v22 = vadd.f32 %v1319_v29, %v942_v8  ;;  %v1446_v34 = vadd.f32 %v1445_v27, %v1444_v51  ;;  %v817_v6 = vmul.f32 0.5, %v1961_v18  ;;  %v851_v21 = vmul.f32 %v835_v1, %v1998_v63  ;;  %v504_v51 = vpop.permute.xlu0 %503 }
 0x124   :  { %v1578_v10 = vpop.eup %1577  ;;  %1583 = vtanh.f32 %v1083_v14  ;;  %v1084_v30 = vmul.f32 0.7978846, %v1068_v15  ;;  %v1037_v31 = vmul.f32 %v1021_v19, %v2004_v3  ;;  %v1003_v46 = vmul.f32 0.5, %v1974_v7 }
 0x125   :  { %v1580_v38 = vpop.eup %1579  ;;  %v1022_v40 = vmul.f32 0.044715, %v2014_v22  ;;  %v927_v17 = vadd.f32 1.0, %v1578_v10  ;;  %1585 = vtanh.f32 %v898_v24  ;;  %v2023_v29 = vpop.f32.mrb[24].mxu0  ;;  %v836_v52 = vmul.f32 0.044715, %v2018_v25 }
 0x126   :  { %1587 = vtanh.f32 %v1084_v30  ;;  %v1053_v41 = vmul.f32 %v1037_v31, %v2004_v3  ;;  %v928_v43 = vadd.f32 1.0, %v1580_v38  ;;  %v2027_v44 = vpop.f32.mrb[25].mxu0  ;;  %v867_v57 = vmul.f32 %v851_v21, %v1998_v63 }
 0x127   :  { %v1038_v48 = vmul.f32 %v1022_v40, %v2014_v22  ;;  %v943_v49 = vmul.f32 %v927_v17, %v815_v9  ;;  %v2032_v18 = vpop.f32.mrb[26].mxu0  ;;  %v541_v59 = vmul.f32 %v1446_v34, %v504_v51  ;;  %v852_v60 = vmul.f32 %v836_v52, %v2018_v25  ;;  %v514_v37 = vpop.permute.xlu0 %513 }
 0x128   :  { %v1069_v54 = vadd.f32 %v1053_v41, %v2004_v3  ;;  %v944_v55 = vmul.f32 %v928_v43, %v816_v20  ;;  %v2036_v27 = vpop.f32.mrb[27].mxu0  ;;  %v1449_v61 = vadd.f32 %v1448_v50, %v1447_v0  ;;  %v883_v4 = vadd.f32 %v867_v57, %v1998_v63  ;;  %v509_v20 = vpop.permute.xlu1 %508 }
 0x129   :  { %v1054_v42 = vmul.f32 %v1038_v48, %v2014_v22  ;;  %v2041_v7 = vadd.f32 %v1322_v36, %v943_v49  ;;  %v782_v8 = vadd.f32 %v1896_v53, %v541_v59  ;;  %v818_v36 = vmul.f32 0.5, %v1977_v33 }
 0x12a   :  { %v1085_v58 = vmul.f32 0.7978846, %v1069_v54  ;;  %v2046_v2 = vadd.f32 %v1323_v45, %v944_v55  ;;  %v868_v15 = vmul.f32 %v852_v60, %v2018_v25  ;;  %v1004_v0 = vmul.f32 0.5, %v1981_v26 }
 0x12b   :  { %v1582_v9 = vpop.eup %1581  ;;  %v1070_v11 = vadd.f32 %v1054_v42, %v2014_v22  ;;  %v1023_v14 = vmul.f32 0.044715, %v2041_v7  ;;  %v899_v53 = vmul.f32 0.7978846, %v883_v4  ;;  %v2060_v31 = vadd.f32 %v1869_v12, %v782_v8 }
 0x12c   :  { %1589 = vtanh.f32 %v1085_v58  ;;  %v1024_v16 = vmul.f32 0.044715, %v2046_v2  ;;  %v929_v45 = vadd.f32 1.0, %v1582_v9  ;;  %v884_v24 = vadd.f32 %v868_v15, %v2018_v25 }
 0x12d   :  { %v1086_v50 = vmul.f32 0.7978846, %v1070_v11  ;;  %v1039_v19 = vmul.f32 %v1023_v14, %v2041_v7  ;;  %v1456_v1 = vpop.f32.mrb[28].mxu0  ;;  %v542_v26 = vmul.f32 %v1449_v61, %v509_v20  ;;  %v819_v55 = vmul.f32 0.5, %v1998_v63 }
 0x12e   :  { %v1584_v10 = vpop.eup %1583  ;;  %v1040_v30 = vmul.f32 %v1024_v16, %v2046_v2  ;;  %v945_v33 = vmul.f32 %v929_v45, %v817_v6  ;;  %v1457_v34 = vpop.f32.mrb[29].mxu0  ;;  %v900_v41 = vmul.f32 0.7978846, %v884_v24  ;;  %v1005_v57 = vmul.f32 0.5, %v2004_v3 }
 0x12f   :  { %v1586_v38 = vpop.eup %1585  ;;  %v1115_v40 = vadd.f32 1.0, %v1584_v10  ;;  %1591 = vtanh.f32 %v1086_v50  ;;  %v1055_v17 = vmul.f32 %v1039_v19, %v2041_v7  ;;  %v2063_v43 = vpop.f32.mrb[30].mxu0  ;;  %v837_v4 = vmul.f32 0.044715, %v2060_v31 }
 0x130   :  { %v1588_v21 = vpop.eup %1587  ;;  %v1056_v48 = vmul.f32 %v1040_v30, %v2046_v2  ;;  %v2068_v49 = vadd.f32 %v1326_v56, %v945_v33  ;;  %v930_v6 = vadd.f32 1.0, %v1586_v38  ;;  %1593 = vtanh.f32 %v899_v53  ;;  %v2070_v51 = vpop.f32.mrb[31].mxu0 }
 0x131   :  { %v1116_v52 = vadd.f32 1.0, %v1588_v21  ;;  %v1071_v54 = vadd.f32 %v1055_v17, %v2041_v7  ;;  %1595 = vtanh.f32 %v900_v41  ;;  %v1131_v61 = vmul.f32 %v1115_v40, %v1003_v46 }
 0x132   :  { %v1072_v59 = vadd.f32 %v1056_v48, %v2046_v2  ;;  %v1025_v42 = vmul.f32 0.044715, %v2068_v49  ;;  %v946_v60 = vmul.f32 %v930_v6, %v818_v36  ;;  %v783_v63 = vadd.f32 %v1902_v62, %v542_v26 }
 0x133   :  { %v1132_v56 = vmul.f32 %v1116_v52, %v1004_v0  ;;  %v1087_v58 = vmul.f32 0.7978846, %v1071_v54  ;;  %v853_v14 = vmul.f32 %v837_v4, %v2060_v31  ;;  %v1452_v46 = vadd.f32 %v2027_v44, %v2023_v29 }
 0x134   :  { %v1088_v8 = vmul.f32 0.7978846, %v1072_v59  ;;  %v1041_v9 = vmul.f32 %v1025_v42, %v2068_v49  ;;  %v2081_v11 = vadd.f32 %v1327_v23, %v946_v60  ;;  %v1006_v15 = vmul.f32 0.5, %v2014_v22 }
 0x135   :  { %v1347_v3 = vpack.c.bf16 %v1132_v56, %v1131_v61  ;;  %1597 = vtanh.f32 %v1087_v58  ;;  %v869_v23 = vmul.f32 %v853_v14, %v2060_v31  ;;  %v2095_v45 = vadd.f32 %v1869_v12, %v783_v63 }
 0x136   :  { %v1590_v36 = vpop.eup %1589  ;;  %1599 = vtanh.f32 %v1088_v8  ;;  %v1057_v0 = vmul.f32 %v1041_v9, %v2068_v49  ;;  %v1026_v16 = vmul.f32 0.044715, %v2081_v11  ;;  %v1455_v29 = vadd.f32 %v2036_v27, %v2032_v18  ;;  %v519_v18 = vpop.permute.xlu1 %518 }
 0x137   :  { %1348 = vst [vmem:[%s2226_s7] sm:$0xff] %v1347_v3   ;;  %v1117_v62 = vadd.f32 1.0, %v1590_v36  ;;  %v543_v50 = vmul.f32 %v1452_v46, %v514_v37  ;;  %v1458_v19 = vadd.f32 %v1457_v34, %v1456_v1  ;;  %v820_v24 = vmul.f32 0.5, %v2018_v25  ;;  %v2136_v36 = vld [vmem:[%s2225_s6 + $0x28] sm:$0xff]  }
 0x138   :  { %v1073_v22 = vadd.f32 %v1057_v0, %v2068_v49  ;;  %v1042_v44 = vmul.f32 %v1026_v16, %v2081_v11  ;;  %v885_v10 = vadd.f32 %v869_v23, %v2060_v31  ;;  %v838_v30 = vmul.f32 0.044715, %v2095_v45  ;;  %v524_v0 = vpop.permute.xlu0 %523 }
 0x139   :  { %v1592_v20 = vpop.eup %1591  ;;  %v1133_v53 = vmul.f32 %v1117_v62, %v1005_v57  ;;  %v784_v27 = vadd.f32 %v1940_v32, %v543_v50  ;;  %v544_v34 = vmul.f32 %v1455_v29, %v519_v18  ;;  %v1007_v56 = vmul.f32 0.5, %v2041_v7 }
 0x13a   :  { %v1594_v33 = vpop.eup %1593  ;;  %v1118_v26 = vadd.f32 1.0, %v1592_v20  ;;  %v1089_v38 = vmul.f32 0.7978846, %v1073_v22  ;;  %v1058_v40 = vmul.f32 %v1042_v44, %v2081_v11  ;;  %v901_v21 = vmul.f32 0.7978846, %v885_v10 }
 0x13b   :  { %v1596_v17 = vpop.eup %1595  ;;  %v931_v41 = vadd.f32 1.0, %v1594_v33  ;;  %v854_v1 = vmul.f32 %v838_v30, %v2095_v45  ;;  %v2110_v57 = vadd.f32 %v1869_v12, %v784_v27  ;;  %v785_v60 = vadd.f32 %v1955_v47, %v544_v34 }
 0x13c   :  { %v1134_v48 = vmul.f32 %v1118_v26, %v1006_v15  ;;  %1601 = vtanh.f32 %v1089_v38  ;;  %v1074_v25 = vadd.f32 %v1058_v40, %v2081_v11  ;;  %v932_v6 = vadd.f32 1.0, %v1596_v17 }
 0x13d   :  { %v947_v52 = vmul.f32 %v931_v41, %v819_v55  ;;  %1603 = vtanh.f32 %v901_v21  ;;  %v870_v54 = vmul.f32 %v854_v1, %v2095_v45  ;;  %v839_v4 = vmul.f32 0.044715, %v2110_v57 }
 0x13e   :  { %v1352_v59 = vpack.c.bf16 %v1134_v48, %v1133_v53  ;;  %v1090_v32 = vmul.f32 0.7978846, %v1074_v25  ;;  %v948_v42 = vmul.f32 %v932_v6, %v820_v24  ;;  %v2128_v7 = vadd.f32 %v1869_v12, %v785_v60  ;;  %v529_v53 = vpop.permute.xlu1 %528 }
 0x13f   :  { %v1598_v61 = vpop.eup %1597  ;;  %v2116_v58 = vadd.f32 %v1330_v13, %v947_v52  ;;  %v886_v55 = vadd.f32 %v870_v54, %v2095_v45  ;;  %v1008_v13 = vmul.f32 0.5, %v2046_v2  ;;  %v855_v5 = vmul.f32 %v839_v4, %v2110_v57 }
 0x140   :  { %v1600_v8 = vpop.eup %1599  ;;  %1391 = vst [vmem:[%s2226_s7 + $0x8] sm:$0xff] %v1352_v59   ;;  %v1119_v9 = vadd.f32 1.0, %v1598_v61  ;;  %1605 = vtanh.f32 %v1090_v32  ;;  %v2125_v47 = vadd.f32 %v1331_v35, %v948_v42  ;;  %v840_v37 = vmul.f32 0.044715, %v2128_v7 }
 0x141   :  { %v1120_v63 = vadd.f32 1.0, %v1600_v8  ;;  %v1027_v3 = vmul.f32 0.044715, %v2116_v58  ;;  %v902_v14 = vmul.f32 0.7978846, %v886_v55  ;;  %v871_v62 = vmul.f32 %v855_v5, %v2110_v57 }
 0x142   :  { %v1028_v46 = vmul.f32 0.044715, %v2125_v47  ;;  %v1135_v35 = vmul.f32 %v1119_v9, %v1007_v56  ;;  %v545_v23 = vmul.f32 %v1458_v19, %v524_v0  ;;  %v1334_v44 = vunpack.c.l.bf16 %v2136_v36 }
 0x143   :  { %v1136_v15 = vmul.f32 %v1120_v63, %v1008_v13  ;;  %v1043_v16 = vmul.f32 %v1027_v3, %v2116_v58  ;;  %1607 = vtanh.f32 %v902_v14  ;;  %v1461_v50 = vadd.f32 %v2070_v51, %v2063_v43  ;;  %v1389_v3 = vld [vmem:[%s2225_s6 + $0x30] sm:$0xff]  }
 0x144   :  { %v1044_v2 = vmul.f32 %v1028_v46, %v2125_v47  ;;  %v887_v10 = vadd.f32 %v871_v62, %v2110_v57  ;;  %v856_v30 = vmul.f32 %v840_v37, %v2128_v7  ;;  %v786_v33 = vadd.f32 %v1936_v28, %v545_v23 }
 0x145   :  { %v1357_v29 = vpack.c.bf16 %v1136_v15, %v1135_v35  ;;  %v1059_v22 = vmul.f32 %v1043_v16, %v2116_v58  ;;  %v1009_v19 = vmul.f32 0.5, %v2068_v49  ;;  %v821_v43 = vmul.f32 0.5, %v2060_v31 }
 0x146   :  { %v1602_v20 = vpop.eup %1601  ;;  %v1060_v24 = vmul.f32 %v1044_v2, %v2125_v47  ;;  %v546_v51 = vmul.f32 %v1461_v50, %v529_v53  ;;  %v903_v27 = vmul.f32 0.7978846, %v887_v10  ;;  %v872_v17 = vmul.f32 %v856_v30, %v2128_v7 }
 0x147   :  { %v1604_v26 = vpop.eup %1603  ;;  %1392 = vst [vmem:[%s2226_s7 + $0x10] sm:$0xff] %v1357_v29   ;;  %v1075_v38 = vadd.f32 %v1059_v22, %v2116_v58  ;;  %v1121_v41 = vadd.f32 1.0, %v1602_v20  ;;  %v2160_v21 = vadd.f32 %v1869_v12, %v786_v33  ;;  %v1010_v25 = vmul.f32 0.5, %v2081_v11 }
 0x148   :  { %v1076_v40 = vadd.f32 %v1060_v24, %v2125_v47  ;;  %v933_v18 = vadd.f32 1.0, %v1604_v26  ;;  %v787_v1 = vadd.f32 %v1949_v39, %v546_v51  ;;  %1609 = vtanh.f32 %v903_v27 }
 0x149   :  { %v1091_v28 = vmul.f32 0.7978846, %v1075_v38  ;;  %v888_v31 = vadd.f32 %v872_v17, %v2128_v7  ;;  %v841_v52 = vmul.f32 0.044715, %v2160_v21  ;;  %v1137_v42 = vmul.f32 %v1121_v41, %v1009_v19 }
 0x14a   :  { %v1606_v34 = vpop.eup %1605  ;;  %v1092_v49 = vmul.f32 0.7978846, %v1076_v40  ;;  %v949_v48 = vmul.f32 %v933_v18, %v821_v43  ;;  %v2169_v32 = vadd.f32 %v1869_v12, %v787_v1  ;;  %v1335_v61 = vunpack.c.h.bf16 %v2136_v36 }
 0x14b   :  { %v1122_v6 = vadd.f32 1.0, %v1606_v34  ;;  %1611 = vtanh.f32 %v1091_v28  ;;  %v904_v59 = vmul.f32 0.7978846, %v888_v31  ;;  %v857_v56 = vmul.f32 %v841_v52, %v2160_v21 }
 0x14c   :  { %1613 = vtanh.f32 %v1092_v49  ;;  %v2166_v54 = vadd.f32 %v1334_v44, %v949_v48  ;;  %v822_v55 = vmul.f32 0.5, %v2095_v45  ;;  %v842_v13 = vmul.f32 0.044715, %v2169_v32 }
 0x14d   :  { %v1608_v39 = vpop.eup %1607  ;;  %v1138_v60 = vmul.f32 %v1122_v6, %v1010_v25  ;;  %1615 = vtanh.f32 %v904_v59  ;;  %v873_v9 = vmul.f32 %v857_v56, %v2160_v21  ;;  %v1338_v2 = vunpack.c.l.bf16 %v1389_v3 }
 0x14e   :  { %v1029_v11 = vmul.f32 0.044715, %v2166_v54  ;;  %v934_v4 = vadd.f32 1.0, %v1608_v39  ;;  %v858_v14 = vmul.f32 %v842_v13, %v2169_v32  ;;  %v823_v37 = vmul.f32 0.5, %v2110_v57 }
 0x14f   :  { %v1362_v8 = vpack.c.bf16 %v1138_v60, %v1137_v42  ;;  %v889_v45 = vadd.f32 %v873_v9, %v2160_v21  ;;  %v1011_v44 = vmul.f32 0.5, %v2116_v58  ;;  %v1012_v24 = vmul.f32 0.5, %v2125_v47 }
 0x150   :  { %v1045_v12 = vmul.f32 %v1029_v11, %v2166_v54  ;;  %v950_v63 = vmul.f32 %v934_v4, %v822_v55  ;;  %v874_v35 = vmul.f32 %v858_v14, %v2169_v32  ;;  %v824_v38 = vmul.f32 0.5, %v2128_v7  ;;  %v1390_v7 = vld [vmem:[%s2225_s6 + $0x38] sm:$0xff]  }
 0x151   :  { %1393 = vst [vmem:[%s2226_s7 + $0x18] sm:$0xff] %v1362_v8   ;;  %v905_v5 = vmul.f32 0.7978846, %v889_v45  ;;  %v1339_v43 = vunpack.c.h.bf16 %v1389_v3  ;;  %v825_v31 = vmul.f32 0.5, %v2160_v21  ;;  %v1342_v6 = vunpack.c.l.bf16 %v1390_v7 }
 0x152   :  { %v1061_v46 = vmul.f32 %v1045_v12, %v2166_v54  ;;  %v2187_v36 = vadd.f32 %v1335_v61, %v950_v63  ;;  %v1610_v15 = vpop.eup %1609  ;;  %v890_v29 = vadd.f32 %v874_v35, %v2169_v32  ;;  %v826_v55 = vmul.f32 0.5, %v2169_v32 }
 0x153   :  { %v935_v23 = vadd.f32 1.0, %v1610_v15  ;;  %1617 = vtanh.f32 %v905_v5  ;;  %v1343_v8 = vunpack.c.h.bf16 %v1390_v7 }
 0x154   :  { %v1077_v0 = vadd.f32 %v1061_v46, %v2166_v54  ;;  %v1030_v16 = vmul.f32 0.044715, %v2187_v36  ;;  %v906_v33 = vmul.f32 0.7978846, %v890_v29  ;;  %v1013_v46 = vmul.f32 0.5, %v2166_v54 }
 0x155   :  { %v1612_v62 = vpop.eup %1611  ;;  %v951_v30 = vmul.f32 %v935_v23, %v823_v37  ;;  %v1014_v5 = vmul.f32 0.5, %v2187_v36 }
 0x156   :  { %v1614_v22 = vpop.eup %1613  ;;  %v1123_v50 = vadd.f32 1.0, %v1612_v62  ;;  %v1093_v20 = vmul.f32 0.7978846, %v1077_v0  ;;  %v1046_v53 = vmul.f32 %v1030_v16, %v2187_v36  ;;  %1619 = vtanh.f32 %v906_v33 }
 0x157   :  { %v1124_v10 = vadd.f32 1.0, %v1614_v22  ;;  %v1616_v26 = vpop.eup %1615  ;;  %v999_v40 = vadd.f32 %v1338_v2, %v951_v30 }
 0x158   :  { %v1139_v19 = vmul.f32 %v1123_v50, %v1011_v44  ;;  %v1062_v57 = vmul.f32 %v1046_v53, %v2187_v36  ;;  %v936_v18 = vadd.f32 1.0, %v1616_v26  ;;  %1621 = vtanh.f32 %v1093_v20 }
 0x159   :  { %v1140_v51 = vmul.f32 %v1124_v10, %v1012_v24  ;;  %v1031_v17 = vmul.f32 0.044715, %v999_v40  ;;  %v1015_v20 = vmul.f32 0.5, %v999_v40 }
 0x15a   :  { %v1078_v58 = vadd.f32 %v1062_v57, %v2187_v36  ;;  %v952_v47 = vmul.f32 %v936_v18, %v824_v38 }
 0x15b   :  { %v1367_v27 = vpack.c.bf16 %v1140_v51, %v1139_v19  ;;  %v1047_v28 = vmul.f32 %v1031_v17, %v999_v40 }
 0x15c   :  { %v1094_v41 = vmul.f32 0.7978846, %v1078_v58  ;;  %v1000_v1 = vadd.f32 %v1339_v43, %v952_v47 }
 0x15d   :  { %1394 = vst [vmem:[%s2226_s7 + $0x20] sm:$0xff] %v1367_v27   ;;  %v1618_v34 = vpop.eup %1617  ;;  %v1063_v49 = vmul.f32 %v1047_v28, %v999_v40 }
 0x15e   :  { %1623 = vtanh.f32 %v1094_v41  ;;  %v1032_v48 = vmul.f32 0.044715, %v1000_v1  ;;  %v937_v25 = vadd.f32 1.0, %v1618_v34  ;;  %v1016_v53 = vmul.f32 0.5, %v1000_v1 }
 0x15f   :  { %v1079_v52 = vadd.f32 %v1063_v49, %v999_v40 }
 0x160   :  { %v1048_v59 = vmul.f32 %v1032_v48, %v1000_v1  ;;  %v953_v39 = vmul.f32 %v937_v25, %v825_v31  ;;  %v1620_v42 = vpop.eup %1619 }
 0x161   :  { %v1095_v60 = vmul.f32 0.7978846, %v1079_v52  ;;  %v938_v4 = vadd.f32 1.0, %v1620_v42 }
 0x162   :  { %v1064_v61 = vmul.f32 %v1048_v59, %v1000_v1  ;;  %v1622_v56 = vpop.eup %1621  ;;  %v1001_v11 = vadd.f32 %v1342_v6, %v953_v39 }
 0x163   :  { %1625 = vtanh.f32 %v1095_v60  ;;  %v954_v12 = vmul.f32 %v938_v4, %v826_v55  ;;  %v1125_v63 = vadd.f32 1.0, %v1622_v56 }
 0x164   :  { %v1080_v9 = vadd.f32 %v1064_v61, %v1000_v1  ;;  %v1033_v13 = vmul.f32 0.044715, %v1001_v11  ;;  %v1017_v38 = vmul.f32 0.5, %v1001_v11 }
 0x165   :  { %v1002_v14 = vadd.f32 %v1343_v8, %v954_v12  ;;  %v1141_v32 = vmul.f32 %v1125_v63, %v1013_v46 }
 0x166   :  { %v1096_v21 = vmul.f32 0.7978846, %v1080_v9  ;;  %v1049_v45 = vmul.f32 %v1033_v13, %v1001_v11 }
 0x167   :  { %v1034_v0 = vmul.f32 0.044715, %v1002_v14  ;;  %v1018_v43 = vmul.f32 0.5, %v1002_v14 }
 0x168   :  { %v1624_v3 = vpop.eup %1623  ;;  %1627 = vtanh.f32 %v1096_v21  ;;  %v1065_v15 = vmul.f32 %v1049_v45, %v1001_v11 }
 0x169   :  { %v1126_v35 = vadd.f32 1.0, %v1624_v3  ;;  %v1050_v62 = vmul.f32 %v1034_v0, %v1002_v14 }
 0x16a   :  { %v1081_v2 = vadd.f32 %v1065_v15, %v1001_v11 }
 0x16b   :  { %v1142_v16 = vmul.f32 %v1126_v35, %v1014_v5  ;;  %v1066_v29 = vmul.f32 %v1050_v62, %v1002_v14 }
 0x16c   :  { %v1097_v23 = vmul.f32 0.7978846, %v1081_v2 }
 0x16d   :  { %v1372_v37 = vpack.c.bf16 %v1142_v16, %v1141_v32  ;;  %v1626_v22 = vpop.eup %1625  ;;  %v1082_v54 = vadd.f32 %v1066_v29, %v1002_v14 }
 0x16e   :  { %1629 = vtanh.f32 %v1097_v23  ;;  %v1127_v44 = vadd.f32 1.0, %v1626_v22 }
 0x16f   :  { %1395 = vst [vmem:[%s2226_s7 + $0x28] sm:$0xff] %v1372_v37   ;;  %v1098_v36 = vmul.f32 0.7978846, %v1082_v54 }
 0x170   :  { %v1143_v10 = vmul.f32 %v1127_v44, %v1015_v20 }
 0x171   :  { %1631 = vtanh.f32 %v1098_v36 }
 0x172   :  { %v1628_v50 = vpop.eup %1627 }
 0x173   :  { %v1128_v24 = vadd.f32 1.0, %v1628_v50 }
 0x175   :  { %v1144_v30 = vmul.f32 %v1128_v24, %v1016_v53 }
 0x177   :  { %v1377_v33 = vpack.c.bf16 %v1144_v30, %v1143_v10 }
 0x178   :  { %v1630_v26 = vpop.eup %1629 }
 0x179   :  { %1396 = vst [vmem:[%s2226_s7 + $0x30] sm:$0xff] %v1377_v33   ;;  %v1129_v19 = vadd.f32 1.0, %v1630_v26 }
 0x17b   :  { %v1632_v57 = vpop.eup %1631  ;;  %v1145_v18 = vmul.f32 %v1129_v19, %v1017_v38 }
 0x17c   :  { %v1130_v51 = vadd.f32 1.0, %v1632_v57 }
 0x17e   :  { %v1146_v58 = vmul.f32 %v1130_v51, %v1018_v43 }
 0x180   :  { %v1382_v27 = vpack.c.bf16 %v1146_v58, %v1145_v18 }
 0x182   :  { %1397 = vst [vmem:[%s2226_s7 + $0x38] sm:$0xff] %v1382_v27  }

// kernel: gmmnet_u_forward.35
= control target key start
LH: loop header
LB: loop body
LE: loop exit
PB: predicated region body
PF: predicated region fallthrough
CT: control target
= control target key end

     0   :  { %v1224_v1 = vmov 0   ;;  %s1649_s1 = inlined_call_operand.vmem [shape: bf16[256,128], index: 1, kind: input, shape index: {}]   ;;  %s1650_s3 = inlined_call_operand.vmem [shape: bf16[128,128], index: 3, kind: input, shape index: {}]   ;;  %s1651_s0 = inlined_call_operand.vmem [shape: bf16[128,256], index: 0, kind: input, shape index: {}]   ;;  %s1652_s2 = inlined_call_operand.vmem [shape: bf16[128,128], index: 2, kind: input, shape index: {}]   ;;  %s1653_s5 = inlined_call_operand.vmem [shape: f32[128,1], index: 5, kind: input, shape index: {}]   ;;  %s1654_s4 = inlined_call_operand.vmem [shape: f32[1,128], index: 4, kind: input, shape index: {}]   ;;  %s1655_s6 = inlined_call_operand.vmem [shape: f32[128,128], index: 6, kind: output, shape index: {}]  }
   0x1   :  { %v1136_v0 = vld [vmem:[%s1649_s1 + $0x40] sm:$0xff]   ;;  %1134 = vset.pattern.permute.xlu0 %v1224_v1  ;;  %1135 = vset.pattern.permute.xlu1 %v1224_v1  ;;  %v1138_v3 = vld [vmem:[%s1649_s1 + $0x48] sm:$0xff]   ;;  %v1141_v6 = vld [vmem:[%s1649_s1 + $0x50] sm:$0xff]  }
   0x2   :  { %v1137_v2 = vld [vmem:[%s1649_s1] sm:$0xff]   ;;  %1021 = vmatprep.subr.bf16.mxu0 %v1136_v0  ;;  %v1140_v5 = vld [vmem:[%s1649_s1 + $0x8] sm:$0xff]   ;;  %v1143_v8 = vld [vmem:[%s1649_s1 + $0x10] sm:$0xff]  }
   0x3   :  { %1022 = vmatpush3.bf16.msra.mxu0 %v1137_v2  ;;  %v1139_v4 = vld [vmem:[%s1650_s3] sm:$0xff]   ;;  %v1142_v7 = vld [vmem:[%s1650_s3 + $0x8] sm:$0xff]   ;;  %v1144_v9 = vld [vmem:[%s1649_s1 + $0x58] sm:$0xff]  }
   0x4   :  { %1023 = vmatprep.subr.bf16.mxu0 %v1138_v3  ;;  %1101 = vmatprep.subr.bf16.mxu1 %v1139_v4  ;;  %v1145_v10 = vld [vmem:[%s1650_s3 + $0x10] sm:$0xff]   ;;  %v1146_v11 = vld [vmem:[%s1649_s1 + $0x18] sm:$0xff]   ;;  %v1147_v12 = vld [vmem:[%s1649_s1 + $0x60] sm:$0xff]  }
   0x5   :  { %1102 = vmatpush3.bf16.msra.mxu1 %v1139_v4  ;;  %v1148_v13 = vld [vmem:[%s1650_s3 + $0x18] sm:$0xff]   ;;  %v1149_v14 = vld [vmem:[%s1649_s1 + $0x20] sm:$0xff]   ;;  %v1150_v16 = vld [vmem:[%s1649_s1 + $0x68] sm:$0xff]  }
   0x6   :  { %1103 = vmatprep.subr.bf16.mxu1 %v1142_v7  ;;  %v1151_v15 = vld [vmem:[%s1650_s3 + $0x20] sm:$0xff]   ;;  %v1152_v17 = vld [vmem:[%s1649_s1 + $0x28] sm:$0xff]   ;;  %v1153_v19 = vld [vmem:[%s1649_s1 + $0x70] sm:$0xff]  }
   0x7   :  { %1024 = vmatpush3.bf16.msra.mxu0 %v1140_v5  ;;  %v1154_v18 = vld [vmem:[%s1650_s3 + $0x28] sm:$0xff]   ;;  %v1155_v20 = vld [vmem:[%s1649_s1 + $0x30] sm:$0xff]   ;;  %v1156_v21 = vld [vmem:[%s1649_s1 + $0x78] sm:$0xff]  }
   0x8   :  { %1025 = vmatprep.subr.bf16.mxu0 %v1141_v6  ;;  %v1157_v22 = vld [vmem:[%s1650_s3 + $0x30] sm:$0xff]   ;;  %v1161_v23 = vld [vmem:[%s1651_s0 + $0x4] ss:$8 sps:$4 sm:$0xff]   ;;  %v1158_v24 = vld [vmem:[%s1649_s1 + $0x38] sm:$0xff]  }
   0x9   :  { %1104 = vmatpush3.bf16.msra.mxu1 %v1142_v7  ;;  %316 = vmatprep.mubr.bf16.mxu0 %v1161_v23  ;;  %v1163_v25 = vld [vmem:[%s1652_s2] sm:$0xff]   ;;  %v1162_v26 = vld [vmem:[%s1650_s3 + $0x38] sm:$0xff]   ;;  %v1164_v29 = vld [vmem:[%s1652_s2 + $0x8] sm:$0xff]  }
   0xa   :  { %1105 = vmatprep.subr.bf16.mxu1 %v1145_v10  ;;  %1117 = vmatprep.mubr.bf16.mxu1 %v1163_v25  ;;  %v1159_v27 = vld [vmem:[%s1651_s0] ss:$8 sps:$4 sm:$0xff]   ;;  %v1165_v28 = vld [vmem:[%s1651_s0 + $0x14] ss:$8 sps:$4 sm:$0xff]   ;;  %v1167_v31 = vld [vmem:[%s1651_s0 + $0x10] ss:$8 sps:$4 sm:$0xff]  }
   0xb   :  { %1026 = vmatpush3.bf16.msra.mxu0 %v1143_v8  ;;  %v1171_v30 = vld [vmem:[%s1652_s2 + $0x10] sm:$0xff]   ;;  %v1168_v32 = vld [vmem:[%s1651_s0 + $0x24] ss:$8 sps:$4 sm:$0xff]   ;;  %v1172_v33 = vld [vmem:[%s1652_s2 + $0x18] sm:$0xff]  }
   0xc   :  { %1027 = vmatprep.subr.bf16.mxu0 %v1144_v9  ;;  %v1179_v34 = vld [vmem:[%s1652_s2 + $0x20] sm:$0xff]   ;;  %v434_v36 = vld [vmem:[%s1653_s5 + $0x10] sm:$0xff]  ;;  %v433_v37 = vld [vmem:[%s1653_s5 + $0x8] sm:$0xff] }
   0xd   :  { %1106 = vmatpush3.bf16.msra.mxu1 %v1145_v10  ;;  %v432_v35 = vld [vmem:[%s1653_s5] sm:$0xff]  ;;  %460 = vperm.xlu1 %1135, %v434_v36   ;;  %v435_v38 = vld [vmem:[%s1653_s5 + $0x18] sm:$0xff]  ;;  %v1180_v42 = vld [vmem:[%s1652_s2 + $0x28] sm:$0xff]  }
   0xe   :  { %1107 = vmatprep.subr.bf16.mxu1 %v1148_v13  ;;  %450 = vperm.xlu0 %1134, %v432_v35   ;;  %v1170_v39 = vld [vmem:[%s1651_s0 + $0x20] ss:$8 sps:$4 sm:$0xff]   ;;  %v1173_v40 = vld [vmem:[%s1651_s0 + $0x34] ss:$8 sps:$4 sm:$0xff]   ;;  %v1175_v47 = vld [vmem:[%s1651_s0 + $0x30] ss:$8 sps:$4 sm:$0xff]  }
   0xf   :  { %1028 = vmatpush3.bf16.msra.mxu0 %v1146_v11  ;;  %v436_v41 = vld [vmem:[%s1653_s5 + $0x20] sm:$0xff]  ;;  %v437_v43 = vld [vmem:[%s1653_s5 + $0x28] sm:$0xff]  ;;  %v1187_v44 = vld [vmem:[%s1652_s2 + $0x30] sm:$0xff]  }
  0x10   :  { %1029 = vmatprep.subr.bf16.mxu0 %v1147_v12  ;;  %v438_v45 = vld [vmem:[%s1653_s5 + $0x30] sm:$0xff]  ;;  %v439_v46 = vld [vmem:[%s1653_s5 + $0x38] sm:$0xff]  ;;  %v1176_v48 = vld [vmem:[%s1651_s0 + $0x44] ss:$8 sps:$4 sm:$0xff]  }
  0x11   :  { %1108 = vmatpush3.bf16.msra.mxu1 %v1148_v13  ;;  %465 = vperm.xlu1 %1135, %v435_v38   ;;  %v440_v49 = vld [vmem:[%s1653_s5 + $0x40] sm:$0xff]  ;;  %v1188_v50 = vld [vmem:[%s1652_s2 + $0x38] sm:$0xff]   ;;  %v441_v51 = vld [vmem:[%s1653_s5 + $0x48] sm:$0xff] }
  0x12   :  { %1109 = vmatprep.subr.bf16.mxu1 %v1151_v15  ;;  %455 = vperm.xlu0 %1134, %v433_v37   ;;  %v442_v52 = vld [vmem:[%s1653_s5 + $0x50] sm:$0xff]  ;;  %v443_v53 = vld [vmem:[%s1653_s5 + $0x58] sm:$0xff]  ;;  %v1178_v54 = vld [vmem:[%s1651_s0 + $0x40] ss:$8 sps:$4 sm:$0xff]  }
  0x13   :  { %1030 = vmatpush3.bf16.msra.mxu0 %v1149_v14  ;;  %v1181_v55 = vld [vmem:[%s1651_s0 + $0x54] ss:$8 sps:$4 sm:$0xff]   ;;  %v444_v56 = vld [vmem:[%s1653_s5 + $0x60] sm:$0xff]  ;;  %v445_v57 = vld [vmem:[%s1653_s5 + $0x68] sm:$0xff] }
  0x14   :  { %1031 = vmatprep.subr.bf16.mxu0 %v1150_v16  ;;  %v446_v58 = vld [vmem:[%s1653_s5 + $0x70] sm:$0xff]  ;;  %v447_v59 = vld [vmem:[%s1653_s5 + $0x78] sm:$0xff]  ;;  %v1184_v61 = vld [vmem:[%s1651_s0 + $0x64] ss:$8 sps:$4 sm:$0xff]  }
  0x15   :  { %1110 = vmatpush3.bf16.msra.mxu1 %v1151_v15  ;;  %475 = vperm.xlu1 %1135, %v437_v43   ;;  %v1183_v60 = vld [vmem:[%s1651_s0 + $0x50] ss:$8 sps:$4 sm:$0xff]   ;;  %v1186_v62 = vld [vmem:[%s1651_s0 + $0x60] ss:$8 sps:$4 sm:$0xff]   ;;  %v1189_v63 = vld [vmem:[%s1651_s0 + $0x74] ss:$8 sps:$4 sm:$0xff]  }
  0x16   :  { %1111 = vmatprep.subr.bf16.mxu1 %v1154_v18  ;;  %470 = vperm.xlu0 %1134, %v436_v41   ;;  %v1191_v0 = vld [vmem:[%s1651_s0 + $0x70] ss:$8 sps:$4 sm:$0xff]   ;;  %v1455_v12 = vld [vmem:[%s1654_s4] ss:$0 sm:$0xff] }
  0x17   :  { %1032 = vmatpush3.bf16.msra.mxu0 %v1152_v17 }
  0x18   :  { %1033 = vmatprep.subr.bf16.mxu0 %v1153_v19 }
  0x19   :  { %1112 = vmatpush3.bf16.msra.mxu1 %v1154_v18  ;;  %485 = vperm.xlu1 %1135, %v439_v46  }
  0x1a   :  { %1113 = vmatprep.subr.bf16.mxu1 %v1157_v22  ;;  %480 = vperm.xlu0 %1134, %v438_v45  }
  0x1b   :  { %1034 = vmatpush3.bf16.msra.mxu0 %v1155_v20 }
  0x1c   :  { %1035 = vmatprep.subr.bf16.mxu0 %v1156_v21 }
  0x1d   :  { %1114 = vmatpush3.bf16.msra.mxu1 %v1157_v22  ;;  %495 = vperm.xlu1 %1135, %v441_v51  }
  0x1e   :  { %1115 = vmatprep.subr.bf16.mxu1 %v1162_v26  ;;  %490 = vperm.xlu0 %1134, %v440_v49  }
  0x1f   :  { %1036 = vmatpush3.bf16.msra.mxu0 %v1158_v24 }
  0x21   :  { %1116 = vmatpush3.bf16.msra.mxu1 %v1162_v26  ;;  %505 = vperm.xlu1 %1135, %v443_v53  }
  0x22   :  { %317 = vmatmul.mubr.bf16.vlgmr.msra.gmra.mrb[0].mxu0 %v1159_v27  ;;  %500 = vperm.xlu0 %1134, %v442_v52  }
  0x23   :  { %324 = vmatprep.mubr.bf16.mxu0 %v1165_v28 }
  0x24   :  { %1118 = vmatmul.mubr.bf16.vlgmr.msra.gmra.mrb[0].mxu1 %v1164_v29 }
  0x25   :  { %1121 = vmatprep.mubr.bf16.mxu1 %v1171_v30  ;;  %515 = vperm.xlu1 %1135, %v445_v57  }
  0x26   :  { %510 = vperm.xlu0 %1134, %v444_v56  }
  0x29   :  { %525 = vperm.xlu1 %1135, %v447_v59  }
  0x2a   :  { %325 = vmatmul.mubr.bf16.gmra.mrb[4].mxu0 %v1167_v31  ;;  %520 = vperm.xlu0 %1134, %v446_v58  }
  0x2b   :  { %332 = vmatprep.mubr.bf16.mxu0 %v1168_v32 }
  0x2c   :  { %1122 = vmatmul.mubr.bf16.gmra.mrb[4].mxu1 %v1172_v33 }
  0x2d   :  { %1125 = vmatprep.mubr.bf16.mxu1 %v1179_v34 }
  0x32   :  { %333 = vmatmul.mubr.bf16.gmra.mrb[8].mxu0 %v1170_v39 }
  0x33   :  { %340 = vmatprep.mubr.bf16.mxu0 %v1173_v40 }
  0x34   :  { %1126 = vmatmul.mubr.bf16.gmra.mrb[8].mxu1 %v1180_v42 }
  0x35   :  { %1129 = vmatprep.mubr.bf16.mxu1 %v1187_v44 }
  0x3a   :  { %341 = vmatmul.mubr.bf16.gmra.mrb[12].mxu0 %v1175_v47 }
  0x3b   :  { %348 = vmatprep.mubr.bf16.mxu0 %v1176_v48 }
  0x3c   :  { %1130 = vmatmul.mubr.bf16.gmra.mrb[12].mxu1 %v1188_v50 }
  0x42   :  { %349 = vmatmul.mubr.bf16.gmra.mrb[16].mxu0 %v1178_v54 }
  0x43   :  { %356 = vmatprep.mubr.bf16.mxu0 %v1181_v55 }
  0x4a   :  { %357 = vmatmul.mubr.bf16.gmra.mrb[20].mxu0 %v1183_v60 }
  0x4b   :  { %364 = vmatprep.mubr.bf16.mxu0 %v1184_v61 }
  0x52   :  { %365 = vmatmul.mubr.bf16.gmra.mrb[24].mxu0 %v1186_v62 }
  0x53   :  { %372 = vmatprep.mubr.bf16.mxu0 %v1189_v63 }
  0x5a   :  { %373 = vmatmul.mubr.bf16.gmra.mrb[28].mxu0 %v1191_v0 }
  0x8c   :  { %v461_v17 = vpop.permute.xlu1 %460 }
  0x8d   :  { %v451_v1 = vpop.permute.xlu0 %450 }
  0x90   :  { %v466_v36 = vpop.permute.xlu1 %465 }
  0x91   :  { %v456_v6 = vpop.permute.xlu0 %455 }
  0x94   :  { %v476_v60 = vpop.permute.xlu1 %475 }
  0x95   :  { %v471_v56 = vpop.permute.xlu0 %470 }
  0xf5   :  { %v1037_v2 = vpop.f32.mrb[0].mxu0 }
  0xf6   :  { %v1038_v3 = vpop.f32.mrb[1].mxu0 }
  0xf7   :  { %v1039_v4 = vadd.f32 %v1038_v3, %v1037_v2  ;;  %v1040_v5 = vpop.f32.mrb[2].mxu0  ;;  %v1119_v8 = vpop.f32.mrb[0].mxu1 }
  0xf8   :  { %v1041_v7 = vpop.f32.mrb[3].mxu0  ;;  %v706_v11 = vpop.f32.mrb[1].mxu1 }
  0xf9   :  { %v1042_v9 = vadd.f32 %v1041_v7, %v1040_v5  ;;  %v528_v10 = vmul.f32 %v1039_v4, %v451_v1  ;;  %v1120_v13 = vpop.f32.mrb[2].mxu1 }
  0xfa   :  { %v709_v16 = vpop.f32.mrb[3].mxu1 }
  0xfb   :  { %v529_v14 = vmul.f32 %v1042_v9, %v456_v6  ;;  %v769_v15 = vadd.f32 %v706_v11, %v528_v10  ;;  %v481_v11 = vpop.permute.xlu0 %480 }
  0xfd   :  { %v1458_v18 = vadd.f32 %v1455_v12, %v769_v15  ;;  %v770_v19 = vadd.f32 %v709_v16, %v529_v14  ;;  %v1043_v20 = vpop.f32.mrb[4].mxu0 }
  0xfe   :  { %v1044_v21 = vpop.f32.mrb[5].mxu0 }
  0xff   :  { %v824_v22 = vmul.f32 0.044715, %v1458_v18  ;;  %v1462_v23 = vadd.f32 %v1455_v12, %v770_v19  ;;  %v1045_v24 = vadd.f32 %v1044_v21, %v1043_v20  ;;  %v1046_v25 = vpop.f32.mrb[6].mxu0  ;;  %v1464_v27 = vpop.f32.mrb[4].mxu1 }
 0x100   :  { %v1047_v26 = vpop.f32.mrb[7].mxu0  ;;  %v722_v31 = vpop.f32.mrb[5].mxu1 }
 0x101   :  { %v840_v28 = vmul.f32 %v824_v22, %v1458_v18  ;;  %v825_v29 = vmul.f32 0.044715, %v1462_v23  ;;  %v530_v30 = vmul.f32 %v1045_v24, %v461_v17  ;;  %v1048_v32 = vadd.f32 %v1047_v26, %v1046_v25  ;;  %v1468_v33 = vpop.f32.mrb[6].mxu1 }
 0x102   :  { %v725_v38 = vpop.f32.mrb[7].mxu1 }
 0x103   :  { %v856_v34 = vmul.f32 %v840_v28, %v1458_v18  ;;  %v841_v35 = vmul.f32 %v825_v29, %v1462_v23  ;;  %v771_v37 = vadd.f32 %v1119_v8, %v530_v30  ;;  %v531_v39 = vmul.f32 %v1048_v32, %v466_v36  ;;  %v486_v32 = vpop.permute.xlu1 %485 }
 0x105   :  { %v872_v40 = vadd.f32 %v856_v34, %v1458_v18  ;;  %v857_v41 = vmul.f32 %v841_v35, %v1462_v23  ;;  %v1475_v42 = vadd.f32 %v1455_v12, %v771_v37  ;;  %v1049_v43 = vpop.f32.mrb[8].mxu0  ;;  %v772_v44 = vadd.f32 %v1120_v13, %v531_v39 }
 0x106   :  { %v1050_v45 = vpop.f32.mrb[9].mxu0 }
 0x107   :  { %v888_v46 = vmul.f32 0.7978846, %v872_v40  ;;  %v873_v47 = vadd.f32 %v857_v41, %v1462_v23  ;;  %v826_v48 = vmul.f32 0.044715, %v1475_v42  ;;  %v1052_v49 = vpop.f32.mrb[10].mxu0  ;;  %v1480_v50 = vadd.f32 %v1455_v12, %v772_v44  ;;  %v1482_v53 = vpop.f32.mrb[8].mxu1 }
 0x108   :  { %v1051_v51 = vadd.f32 %v1050_v45, %v1049_v43  ;;  %v1053_v52 = vpop.f32.mrb[11].mxu0  ;;  %v1485_v58 = vpop.f32.mrb[9].mxu1  ;;  %v809_v41 = vmul.f32 0.5, %v1462_v23 }
 0x109   :  { %1192 = vtanh.f32 %v888_v46  ;;  %v889_v54 = vmul.f32 0.7978846, %v873_v47  ;;  %v842_v55 = vmul.f32 %v826_v48, %v1475_v42  ;;  %v1054_v57 = vadd.f32 %v1053_v52, %v1052_v49  ;;  %v1488_v62 = vpop.f32.mrb[10].mxu1 }
 0x10a   :  { %v827_v59 = vmul.f32 0.044715, %v1480_v50  ;;  %v532_v61 = vmul.f32 %v1051_v51, %v471_v56  ;;  %v1491_v1 = vpop.f32.mrb[11].mxu1 }
 0x10b   :  { %1194 = vtanh.f32 %v889_v54  ;;  %v858_v63 = vmul.f32 %v842_v55, %v1475_v42  ;;  %v533_v0 = vmul.f32 %v1054_v57, %v476_v60  ;;  %v491_v55 = vpop.permute.xlu0 %490 }
 0x10c   :  { %v843_v2 = vmul.f32 %v827_v59, %v1480_v50  ;;  %v773_v3 = vadd.f32 %v722_v31, %v532_v61  ;;  %v808_v31 = vmul.f32 0.5, %v1458_v18 }
 0x10d   :  { %v874_v4 = vadd.f32 %v858_v63, %v1475_v42  ;;  %v774_v5 = vadd.f32 %v725_v38, %v533_v0  ;;  %v1055_v6 = vpop.f32.mrb[12].mxu0  ;;  %v496_v0 = vpop.permute.xlu1 %495 }
 0x10e   :  { %v859_v7 = vmul.f32 %v843_v2, %v1480_v50  ;;  %v1497_v8 = vadd.f32 %v1455_v12, %v773_v3  ;;  %v1056_v9 = vpop.f32.mrb[13].mxu0 }
 0x10f   :  { %v890_v10 = vmul.f32 0.7978846, %v874_v4  ;;  %v1500_v13 = vadd.f32 %v1455_v12, %v774_v5  ;;  %v1057_v14 = vadd.f32 %v1056_v9, %v1055_v6  ;;  %v1058_v15 = vpop.f32.mrb[14].mxu0  ;;  %v1504_v20 = vpop.f32.mrb[12].mxu1 }
 0x110   :  { %v875_v16 = vadd.f32 %v859_v7, %v1480_v50  ;;  %v828_v17 = vmul.f32 0.044715, %v1497_v8  ;;  %v1059_v19 = vpop.f32.mrb[15].mxu0  ;;  %v1507_v24 = vpop.f32.mrb[13].mxu1  ;;  %v810_v7 = vmul.f32 0.5, %v1475_v42 }
 0x111   :  { %1196 = vtanh.f32 %v890_v10  ;;  %v829_v21 = vmul.f32 0.044715, %v1500_v13  ;;  %v534_v22 = vmul.f32 %v1057_v14, %v481_v11  ;;  %v1060_v28 = vadd.f32 %v1059_v19, %v1058_v15  ;;  %v1510_v29 = vpop.f32.mrb[14].mxu1 }
 0x112   :  { %v891_v25 = vmul.f32 0.7978846, %v875_v16  ;;  %v844_v26 = vmul.f32 %v828_v17, %v1497_v8  ;;  %v1515_v36 = vpop.f32.mrb[15].mxu1 }
 0x113   :  { %v1193_v30 = vpop.eup %1192  ;;  %v845_v34 = vmul.f32 %v829_v21, %v1500_v13  ;;  %v775_v35 = vadd.f32 %v1464_v27, %v534_v22  ;;  %v535_v39 = vmul.f32 %v1060_v28, %v486_v32 }
 0x114   :  { %v920_v37 = vadd.f32 1.0, %v1193_v30  ;;  %1198 = vtanh.f32 %v891_v25  ;;  %v860_v38 = vmul.f32 %v844_v26, %v1497_v8 }
 0x115   :  { %v1195_v40 = vpop.eup %1194  ;;  %v861_v43 = vmul.f32 %v845_v34, %v1500_v13  ;;  %v1521_v44 = vadd.f32 %v1455_v12, %v775_v35  ;;  %v1061_v18 = vpop.f32.mrb[16].mxu0  ;;  %v776_v47 = vadd.f32 %v1468_v33, %v535_v39 }
 0x116   :  { %v936_v45 = vmul.f32 %v920_v37, %v808_v31  ;;  %v921_v46 = vadd.f32 1.0, %v1195_v40  ;;  %v876_v27 = vadd.f32 %v860_v38, %v1497_v8  ;;  %v1062_v48 = vpop.f32.mrb[17].mxu0  ;;  %v501_v34 = vpop.permute.xlu0 %500 }
 0x117   :  { %v877_v49 = vadd.f32 %v861_v43, %v1500_v13  ;;  %v830_v51 = vmul.f32 0.044715, %v1521_v44  ;;  %v1063_v52 = vadd.f32 %v1062_v48, %v1061_v18  ;;  %v1064_v54 = vpop.f32.mrb[18].mxu0  ;;  %v1531_v57 = vadd.f32 %v1455_v12, %v776_v47  ;;  %v506_v18 = vpop.permute.xlu1 %505 }
 0x118   :  { %952 = vst [vmem:[%s1655_s6] sm:$0xff] %v936_v45  ;;  %v937_v23 = vmul.f32 %v921_v46, %v809_v41  ;;  %v892_v56 = vmul.f32 0.7978846, %v876_v27  ;;  %v1065_v59 = vpop.f32.mrb[19].mxu0  ;;  %v812_v47 = vmul.f32 0.5, %v1497_v8 }
 0x119   :  { %v893_v60 = vmul.f32 0.7978846, %v877_v49  ;;  %v846_v33 = vmul.f32 %v830_v51, %v1521_v44  ;;  %v1066_v61 = vadd.f32 %v1065_v59, %v1064_v54  ;;  %v536_v63 = vmul.f32 %v1063_v52, %v491_v55 }
 0x11a   :  { %953 = vst [vmem:[%s1655_s6 + $0x8] sm:$0xff] %v937_v23  ;;  %1200 = vtanh.f32 %v892_v56  ;;  %v831_v2 = vmul.f32 0.044715, %v1531_v57  ;;  %v813_v54 = vmul.f32 0.5, %v1500_v13 }
 0x11b   :  { %v1197_v3 = vpop.eup %1196  ;;  %1202 = vtanh.f32 %v893_v60  ;;  %v862_v4 = vmul.f32 %v846_v33, %v1521_v44  ;;  %v777_v5 = vadd.f32 %v1485_v58, %v536_v63  ;;  %v537_v6 = vmul.f32 %v1066_v61, %v496_v0  ;;  %v511_v0 = vpop.permute.xlu0 %510 }
 0x11c   :  { %v922_v9 = vadd.f32 1.0, %v1197_v3  ;;  %v847_v10 = vmul.f32 %v831_v2, %v1531_v57  ;;  %v811_v58 = vmul.f32 0.5, %v1480_v50 }
 0x11d   :  { %v878_v11 = vadd.f32 %v862_v4, %v1521_v44  ;;  %v1544_v14 = vadd.f32 %v1455_v12, %v777_v5  ;;  %v778_v15 = vadd.f32 %v1491_v1, %v537_v6  ;;  %v1067_v16 = vpop.f32.mrb[20].mxu0 }
 0x11e   :  { %v1199_v17 = vpop.eup %1198  ;;  %v938_v19 = vmul.f32 %v922_v9, %v810_v7  ;;  %v863_v21 = vmul.f32 %v847_v10, %v1531_v57  ;;  %v1068_v22 = vpop.f32.mrb[21].mxu0 }
 0x11f   :  { %v923_v25 = vadd.f32 1.0, %v1199_v17  ;;  %v894_v42 = vmul.f32 0.7978846, %v878_v11  ;;  %v832_v26 = vmul.f32 0.044715, %v1544_v14  ;;  %v1555_v1 = vadd.f32 %v1455_v12, %v778_v15  ;;  %v1070_v31 = vpop.f32.mrb[22].mxu0 }
 0x120   :  { %954 = vst [vmem:[%s1655_s6 + $0x10] sm:$0xff] %v938_v19  ;;  %v879_v28 = vadd.f32 %v863_v21, %v1531_v57  ;;  %v1069_v30 = vadd.f32 %v1068_v22, %v1067_v16  ;;  %v1071_v35 = vpop.f32.mrb[23].mxu0  ;;  %v814_v17 = vmul.f32 0.5, %v1521_v44 }
 0x121   :  { %v939_v32 = vmul.f32 %v923_v25, %v811_v58  ;;  %1204 = vtanh.f32 %v894_v42  ;;  %v848_v50 = vmul.f32 %v832_v26, %v1544_v14  ;;  %v833_v38 = vmul.f32 0.044715, %v1555_v1 }
 0x122   :  { %v895_v37 = vmul.f32 0.7978846, %v879_v28  ;;  %v538_v39 = vmul.f32 %v1069_v30, %v501_v34  ;;  %v1072_v41 = vadd.f32 %v1071_v35, %v1070_v31  ;;  %v815_v31 = vmul.f32 0.5, %v1531_v57 }
 0x123   :  { %955 = vst [vmem:[%s1655_s6 + $0x18] sm:$0xff] %v939_v32  ;;  %v864_v40 = vmul.f32 %v848_v50, %v1544_v14  ;;  %v849_v45 = vmul.f32 %v833_v38, %v1555_v1 }
 0x124   :  { %v1201_v43 = vpop.eup %1200  ;;  %1206 = vtanh.f32 %v895_v37  ;;  %v779_v46 = vadd.f32 %v1482_v53, %v538_v39  ;;  %v539_v51 = vmul.f32 %v1072_v41, %v506_v18 }
 0x125   :  { %v1203_v27 = vpop.eup %1202  ;;  %v924_v48 = vadd.f32 1.0, %v1201_v43  ;;  %v880_v49 = vadd.f32 %v864_v40, %v1544_v14  ;;  %v1073_v52 = vpop.f32.mrb[24].mxu0  ;;  %v865_v55 = vmul.f32 %v849_v45, %v1555_v1 }
 0x126   :  { %v925_v23 = vadd.f32 1.0, %v1203_v27  ;;  %v1570_v56 = vadd.f32 %v1455_v12, %v779_v46  ;;  %v1074_v59 = vpop.f32.mrb[25].mxu0  ;;  %v780_v53 = vadd.f32 %v1488_v62, %v539_v51  ;;  %v516_v62 = vpop.permute.xlu1 %515  ;;  %v816_v51 = vmul.f32 0.5, %v1544_v14 }
 0x127   :  { %v940_v60 = vmul.f32 %v924_v48, %v812_v47  ;;  %v896_v33 = vmul.f32 0.7978846, %v880_v49  ;;  %v1075_v61 = vadd.f32 %v1074_v59, %v1073_v52  ;;  %v1076_v8 = vpop.f32.mrb[26].mxu0  ;;  %v881_v2 = vadd.f32 %v865_v55, %v1555_v1  ;;  %v521_v40 = vpop.permute.xlu0 %520 }
 0x128   :  { %v941_v63 = vmul.f32 %v925_v23, %v813_v54  ;;  %v834_v3 = vmul.f32 0.044715, %v1570_v56  ;;  %v1077_v13 = vpop.f32.mrb[27].mxu0  ;;  %v1579_v4 = vadd.f32 %v1455_v12, %v780_v53 }
 0x129   :  { %956 = vst [vmem:[%s1655_s6 + $0x20] sm:$0xff] %v940_v60  ;;  %1208 = vtanh.f32 %v896_v33  ;;  %v1078_v5 = vadd.f32 %v1077_v13, %v1076_v8  ;;  %v540_v6 = vmul.f32 %v1075_v61, %v511_v0  ;;  %v897_v7 = vmul.f32 0.7978846, %v881_v2 }
 0x12a   :  { %957 = vst [vmem:[%s1655_s6 + $0x28] sm:$0xff] %v941_v63  ;;  %v850_v9 = vmul.f32 %v834_v3, %v1570_v56  ;;  %v835_v11 = vmul.f32 0.044715, %v1579_v4  ;;  %v526_v18 = vpop.permute.xlu1 %525  ;;  %v817_v8 = vmul.f32 0.5, %v1555_v1 }
 0x12b   :  { %v1205_v10 = vpop.eup %1204  ;;  %v781_v15 = vadd.f32 %v1507_v24, %v540_v6  ;;  %v541_v16 = vmul.f32 %v1078_v5, %v516_v62  ;;  %1210 = vtanh.f32 %v897_v7  ;;  %v818_v62 = vmul.f32 0.5, %v1570_v56 }
 0x12c   :  { %v926_v19 = vadd.f32 1.0, %v1205_v10  ;;  %v866_v21 = vmul.f32 %v850_v9, %v1570_v56  ;;  %v851_v22 = vmul.f32 %v835_v11, %v1579_v4 }
 0x12d   :  { %v1591_v58 = vadd.f32 %v1455_v12, %v781_v15  ;;  %v782_v25 = vadd.f32 %v1515_v36, %v541_v16  ;;  %v1079_v42 = vpop.f32.mrb[28].mxu0 }
 0x12e   :  { %v1207_v26 = vpop.eup %1206  ;;  %v942_v28 = vmul.f32 %v926_v19, %v814_v17  ;;  %v882_v30 = vadd.f32 %v866_v21, %v1570_v56  ;;  %v1080_v24 = vpop.f32.mrb[29].mxu0  ;;  %v867_v32 = vmul.f32 %v851_v22, %v1579_v4  ;;  %v819_v17 = vmul.f32 0.5, %v1579_v4 }
 0x12f   :  { %v927_v44 = vadd.f32 1.0, %v1207_v26  ;;  %v836_v34 = vmul.f32 0.044715, %v1591_v58  ;;  %v1082_v50 = vpop.f32.mrb[30].mxu0  ;;  %v1602_v36 = vadd.f32 %v1455_v12, %v782_v25  ;;  %v1081_v37 = vadd.f32 %v1080_v24, %v1079_v42 }
 0x130   :  { %958 = vst [vmem:[%s1655_s6 + $0x30] sm:$0xff] %v942_v28  ;;  %v898_v35 = vmul.f32 0.7978846, %v882_v30  ;;  %v1083_v38 = vpop.f32.mrb[31].mxu0  ;;  %v883_v57 = vadd.f32 %v867_v32, %v1579_v4  ;;  %v820_v56 = vmul.f32 0.5, %v1591_v58 }
 0x131   :  { %v943_v39 = vmul.f32 %v927_v44, %v815_v31  ;;  %v852_v41 = vmul.f32 %v836_v34, %v1591_v58  ;;  %v1084_v43 = vadd.f32 %v1083_v38, %v1082_v50  ;;  %v837_v45 = vmul.f32 0.044715, %v1602_v36 }
 0x132   :  { %1212 = vtanh.f32 %v898_v35  ;;  %v542_v46 = vmul.f32 %v1081_v37, %v521_v40  ;;  %v899_v47 = vmul.f32 0.7978846, %v883_v57  ;;  %v821_v30 = vmul.f32 0.5, %v1602_v36 }
 0x133   :  { %v1209_v27 = vpop.eup %1208  ;;  %959 = vst [vmem:[%s1655_s6 + $0x38] sm:$0xff] %v943_v39  ;;  %v868_v48 = vmul.f32 %v852_v41, %v1591_v58  ;;  %v543_v49 = vmul.f32 %v1084_v43, %v526_v18  ;;  %v853_v54 = vmul.f32 %v837_v45, %v1602_v36 }
 0x134   :  { %v928_v52 = vadd.f32 1.0, %v1209_v27  ;;  %v783_v23 = vadd.f32 %v1504_v20, %v542_v46  ;;  %1214 = vtanh.f32 %v899_v47 }
 0x135   :  { %v884_v55 = vadd.f32 %v868_v48, %v1591_v58  ;;  %v784_v59 = vadd.f32 %v1510_v29, %v543_v49  ;;  %v1211_v60 = vpop.eup %1210  ;;  %v869_v53 = vmul.f32 %v853_v54, %v1602_v36 }
 0x136   :  { %v944_v33 = vmul.f32 %v928_v52, %v816_v51  ;;  %v806_v61 = vadd.f32 %v1455_v12, %v783_v23  ;;  %v929_v63 = vadd.f32 1.0, %v1211_v60 }
 0x137   :  { %v900_v14 = vmul.f32 0.7978846, %v884_v55  ;;  %v807_v0 = vadd.f32 %v1455_v12, %v784_v59  ;;  %v885_v20 = vadd.f32 %v869_v53, %v1602_v36 }
 0x138   :  { %960 = vst [vmem:[%s1655_s6 + $0x40] sm:$0xff] %v944_v33  ;;  %v838_v2 = vmul.f32 0.044715, %v806_v61  ;;  %v945_v29 = vmul.f32 %v929_v63, %v817_v8  ;;  %v822_v34 = vmul.f32 0.5, %v806_v61 }
 0x139   :  { %1216 = vtanh.f32 %v900_v14  ;;  %v839_v3 = vmul.f32 0.044715, %v807_v0  ;;  %v901_v13 = vmul.f32 0.7978846, %v885_v20  ;;  %v823_v58 = vmul.f32 0.5, %v807_v0 }
 0x13a   :  { %v854_v5 = vmul.f32 %v838_v2, %v806_v61  ;;  %961 = vst [vmem:[%s1655_s6 + $0x48] sm:$0xff] %v945_v29 }
 0x13b   :  { %v855_v1 = vmul.f32 %v839_v3, %v807_v0  ;;  %1218 = vtanh.f32 %v901_v13 }
 0x13c   :  { %v1213_v6 = vpop.eup %1212  ;;  %v870_v12 = vmul.f32 %v854_v5, %v806_v61 }
 0x13d   :  { %v930_v7 = vadd.f32 1.0, %v1213_v6  ;;  %v871_v9 = vmul.f32 %v855_v1, %v807_v0 }
 0x13e   :  { %v886_v10 = vadd.f32 %v870_v12, %v806_v61  ;;  %v1215_v11 = vpop.eup %1214 }
 0x13f   :  { %v946_v15 = vmul.f32 %v930_v7, %v818_v62  ;;  %v887_v16 = vadd.f32 %v871_v9, %v807_v0  ;;  %v931_v19 = vadd.f32 1.0, %v1215_v11 }
 0x140   :  { %v902_v21 = vmul.f32 0.7978846, %v886_v10 }
 0x141   :  { %962 = vst [vmem:[%s1655_s6 + $0x50] sm:$0xff] %v946_v15  ;;  %v903_v22 = vmul.f32 0.7978846, %v887_v16  ;;  %v947_v25 = vmul.f32 %v931_v19, %v819_v17 }
 0x142   :  { %1220 = vtanh.f32 %v902_v21 }
 0x143   :  { %v1217_v42 = vpop.eup %1216  ;;  %1222 = vtanh.f32 %v903_v22  ;;  %963 = vst [vmem:[%s1655_s6 + $0x58] sm:$0xff] %v947_v25 }
 0x144   :  { %v932_v26 = vadd.f32 1.0, %v1217_v42 }
 0x145   :  { %v1219_v28 = vpop.eup %1218 }
 0x146   :  { %v948_v4 = vmul.f32 %v932_v26, %v820_v56  ;;  %v933_v24 = vadd.f32 1.0, %v1219_v28 }
 0x148   :  { %964 = vst [vmem:[%s1655_s6 + $0x60] sm:$0xff] %v948_v4  ;;  %v949_v31 = vmul.f32 %v933_v24, %v821_v30 }
 0x14a   :  { %965 = vst [vmem:[%s1655_s6 + $0x68] sm:$0xff] %v949_v31 }
 0x14c   :  { %v1221_v44 = vpop.eup %1220 }
 0x14d   :  { %v1223_v32 = vpop.eup %1222  ;;  %v934_v50 = vadd.f32 1.0, %v1221_v44 }
 0x14e   :  { %v935_v35 = vadd.f32 1.0, %v1223_v32 }
 0x14f   :  { %v950_v37 = vmul.f32 %v934_v50, %v822_v34 }
 0x150   :  { %v951_v38 = vmul.f32 %v935_v35, %v823_v58 }
 0x151   :  { %966 = vst [vmem:[%s1655_s6 + $0x70] sm:$0xff] %v950_v37 }
 0x152   :  { %967 = vst [vmem:[%s1655_s6 + $0x78] sm:$0xff] %v951_v38 }

</bundles_post_ra>
